<compile_context>
chip_gen: v5e
topology: v5e:2x2
jax: 0.10.0
libtpu: 0.0.40
codegen_flags: <defaults>
</compile_context>

<pallas_src>
import jax
import jax.numpy as jnp
from jax.experimental import pallas as pl
from jax.experimental.pallas import tpu as pltpu  # noqa: F401  (TPU backend)

LEAKY_SLOPE = 0.01   # nn.LeakyReLU default
BN_EPS = 1e-5        # nn.BatchNorm1d default
_LANE = 128          # lane width: pad input / output-head features to this


def _round_up(n, m):
    return (n + m - 1) // m * m


# Order in which parameter arrays are passed to the kernel (after inp).
_PARAM_ORDER = (
    "w1", "p1",
    "w2", "p2", "w3", "p3", "w4", "p4", "w5", "p5",
    "wd4u", "pd4u", "wd4ca", "wd4cb", "pd4c",
    "wd3u", "pd3u", "wd3ca", "wd3cb", "pd3c",
    "wd2u", "pd2u", "wd2ca", "wd2cb", "pd2c",
    "wout", "bout",
)


# ----------------------------------------------------------------------------
# Fused Pallas kernel: the entire UNet forward in one body.
# ----------------------------------------------------------------------------
def _fused_unet_kernel(
    inp_ref,
    w1_ref, p1_ref,
    w2_ref, p2_ref, w3_ref, p3_ref, w4_ref, p4_ref, w5_ref, p5_ref,
    wd4u_ref, pd4u_ref, wd4ca_ref, wd4cb_ref, pd4c_ref,
    wd3u_ref, pd3u_ref, wd3ca_ref, wd3cb_ref, pd3c_ref,
    wd2u_ref, pd2u_ref, wd2ca_ref, wd2cb_ref, pd2c_ref,
    wout_ref, bout_ref,
    o_ref,
):
    bf16 = jnp.bfloat16
    inv_m = 1.0 / inp_ref.shape[0]            # static batch*obs row count

    def mm(a_bf16, w_ref):
        # MXU: bf16 x bf16 -> f32 accumulation.
        return jnp.dot(a_bf16, w_ref[...], preferred_element_type=jnp.float32)

    def bn_act(y, p_ref):
        """bias + LeakyReLU + BatchNorm1d(train) fused epilogue -> bf16.

        Bias must stay: LeakyReLU sits between the bias add and BN, so the
        bias does NOT cancel with the batch statistics.
        """
        p = p_ref[...]                                   # (3, O): bias, gamma, beta
        y = y + p[0:1, :]
        y = jnp.maximum(y, LEAKY_SLOPE * y)              # LeakyReLU (slope 0.01)
        # Independent reductions (overlap on XLU), then fused affine.
        s1 = jnp.sum(y, axis=0, keepdims=True)
        s2 = jnp.sum(y * y, axis=0, keepdims=True)
        mean = s1 * inv_m
        var = jnp.maximum(s2 * inv_m - mean * mean, 0.0)  # clamp (cancellation)
        scale = p[1:2, :] * jax.lax.rsqrt(var + BN_EPS)   # EUP rsqrt (free slot)
        shift = p[2:3, :] - mean * scale
        # Single full-width pass; emit bf16 once (reused by all consumers).
        return (y * scale + shift).astype(bf16)

    # (M, 128) lane-padded [x | his | t | 1 | 0...]; one cast for layer1.
    inp = inp_ref[...].astype(bf16)

    # encoder (layer1 bias is folded into w1 via the ones column)
    e1 = bn_act(mm(inp, w1_ref), p1_ref)                  # (M, 64)
    e2 = bn_act(mm(e1, w2_ref), p2_ref)                   # (M, 128)
    e3 = bn_act(mm(e2, w3_ref), p3_ref)                   # (M, 256)
    e4 = bn_act(mm(e3, w4_ref), p4_ref)                   # (M, 512)
    f = bn_act(mm(e4, w5_ref), p5_ref)                    # (M, 64)

    # decode4: up(f) then cat-layer over [up4, e4] via split weights
    up4 = bn_act(mm(f, wd4u_ref), pd4u_ref)               # (M, 256)
    d4 = bn_act(mm(up4, wd4ca_ref) + mm(e4, wd4cb_ref), pd4c_ref)

    # decode3
    up3 = bn_act(mm(d4, wd3u_ref), pd3u_ref)              # (M, 128)
    d3 = bn_act(mm(up3, wd3ca_ref) + mm(e3, wd3cb_ref), pd3c_ref)

    # decode2
    up2 = bn_act(mm(d3, wd2u_ref), pd2u_ref)              # (M, 64)
    d2 = bn_act(mm(up2, wd2ca_ref) + mm(e2, wd2cb_ref), pd2c_ref)

    # output head: tanh(d2 @ Wout + b), lane-dense (padded to 128) store
    o_ref[...] = jnp.tanh(mm(d2, wout_ref) + bout_ref[...])


def _full_spec_2d(shape):
    # No grid: whole array is one VMEM block.
    return pl.BlockSpec(shape, lambda: (0, 0))


# ----------------------------------------------------------------------------
# Deterministic parameter construction (synthetic, matches module shapes)
# ----------------------------------------------------------------------------
def init_params(seed=0, dims=(64, 128, 256, 512), input_dim=3,
                conditional_dim=5, his_stp=11):
    his_delt_step = his_stp - 1
    x_dim = his_delt_step * input_dim              # 30
    h_dim = conditional_dim * his_stp              # 55
    in_dim = x_dim + h_dim + 1                     # 86 = [x | his | t]
    in_pad = _round_up(in_dim + 1, _LANE)          # +1 ones column -> 128
    out_dim = his_delt_step * input_dim            # 30
    out_pad = _round_up(out_dim, _LANE)            # 128 lane-dense head

    keys = jax.random.split(jax.random.PRNGKey(seed), 12)
    bf16 = jnp.bfloat16

    def lin(key, i, o):
        kw, kb = jax.random.split(key)
        s = 1.0 / float(i) ** 0.5
        w = jax.random.uniform(kw, (i, o), jnp.float32, -s, s)
        b = jax.random.uniform(kb, (1, o), jnp.float32, -s, s)
        return w, b

    def pack_bn(b, o):
        # bias / gamma(=1) / beta(=0) stacked into one (3, O) f32 operand.
        return jnp.concatenate(
            [b, jnp.ones((1, o), jnp.float32), jnp.zeros((1, o), jnp.float32)],
            axis=0)

    p = {}

    # layer1 (86 -> 64): single bf16 weight with the bias folded in as an
    # extra row (matched by the ones column in the wrapper's padded input);
    # remaining rows are zero so the lane padding contributes nothing.
    w1, b1 = lin(keys[0], in_dim, dims[0])
    w1_rows = jnp.concatenate(
        [w1, b1, jnp.zeros((in_pad - in_dim - 1, dims[0]), jnp.float32)], axis=0)
    p["w1"] = w1_rows.astype(bf16)                 # (128, 64)
    p["p1"] = pack_bn(jnp.zeros((1, dims[0]), jnp.float32), dims[0])  # bias folded

    w2, b2 = lin(keys[1], dims[0], dims[1]); p["w2"] = w2.astype(bf16); p["p2"] = pack_bn(b2, dims[1])
    w3, b3 = lin(keys[2], dims[1], dims[2]); p["w3"] = w3.astype(bf16); p["p3"] = pack_bn(b3, dims[2])
    w4, b4 = lin(keys[3], dims[2], dims[3]); p["w4"] = w4.astype(bf16); p["p4"] = pack_bn(b4, dims[3])
    w5, b5 = lin(keys[4], dims[3], 64);      p["w5"] = w5.astype(bf16); p["p5"] = pack_bn(b5, 64)

    # Decoder(64, 768, 256): cat weight rows split at 256 (up) / 512 (e4 skip)
    wu, bu = lin(keys[5], 64, dims[2])
    p["wd4u"] = wu.astype(bf16); p["pd4u"] = pack_bn(bu, dims[2])
    wc, bc = lin(keys[6], dims[2] + dims[3], dims[2])
    p["wd4ca"] = wc[:dims[2]].astype(bf16)          # (256, 256) for up4
    p["wd4cb"] = wc[dims[2]:].astype(bf16)          # (512, 256) for e4
    p["pd4c"] = pack_bn(bc, dims[2])

    # Decoder(256, 384, 128): split at 128 / 256
    wu, bu = lin(keys[7], dims[2], dims[1])
    p["wd3u"] = wu.astype(bf16); p["pd3u"] = pack_bn(bu, dims[1])
    wc, bc = lin(keys[8], dims[1] + dims[2], dims[1])
    p["wd3ca"] = wc[:dims[1]].astype(bf16)          # (128, 128) for up3
    p["wd3cb"] = wc[dims[1]:].astype(bf16)          # (256, 128) for e3
    p["pd3c"] = pack_bn(bc, dims[1])

    # Decoder(128, 192, 64): split at 64 / 128
    wu, bu = lin(keys[9], dims[1], dims[0])
    p["wd2u"] = wu.astype(bf16); p["pd2u"] = pack_bn(bu, dims[0])
    wc, bc = lin(keys[10], dims[0] + dims[1], dims[0])
    p["wd2ca"] = wc[:dims[0]].astype(bf16)          # (64, 64) for up2
    p["wd2cb"] = wc[dims[0]:].astype(bf16)          # (128, 64) for e2
    p["pd2c"] = pack_bn(bc, dims[0])

    # output head (64 -> 30), zero-padded to 128 output lanes (lane-dense vst)
    wo, bo = lin(keys[11], dims[0], out_dim)
    p["wout"] = jnp.pad(wo, ((0, 0), (0, out_pad - out_dim))).astype(bf16)  # (64, 128)
    p["bout"] = jnp.pad(bo, ((0, 0), (0, out_pad - out_dim)))               # (1, 128) f32
    return p


# ----------------------------------------------------------------------------
# Full forward pass: ONE pallas_call, everything resident in VMEM.
# ----------------------------------------------------------------------------
def unet_diffusion_forward(params, perturbed_x, t, predicted_his_traj,
                           input_dim=3, his_delt_step=10):
    B, N = perturbed_x.shape[0], perturbed_x.shape[1]
    M = B * N
    out_dim = his_delt_step * input_dim

    x_flat = perturbed_x.reshape(M, -1).astype(jnp.float32)            # (M, 30)
    his_flat = predicted_his_traj.reshape(M, -1).astype(jnp.float32)   # (M, 55)
    t_col = jnp.broadcast_to(
        t.reshape(B, 1, 1).astype(jnp.float32), (B, N, 1)).reshape(M, 1)

    # Lane-padded single input: [x | his | t | 1 (layer1 bias) | 0...]
    in_pad = params["w1"].shape[0]
    in_dim = x_flat.shape[1] + his_flat.shape[1] + 1
    inp = jnp.concatenate(
        [x_flat, his_flat, t_col,
         jnp.ones((M, 1), jnp.float32),
         jnp.zeros((M, in_pad - in_dim - 1), jnp.float32)], axis=-1)    # (M, 128)

    out_pad = params["wout"].shape[1]
    operands = [inp] + [params[k] for k in _PARAM_ORDER]
    in_specs = [_full_spec_2d(op.shape) for op in operands]

    out = pl.pallas_call(
        _fused_unet_kernel,
        out_shape=jax.ShapeDtypeStruct((M, out_pad), jnp.float32),
        in_specs=in_specs,
        out_specs=_full_spec_2d((M, out_pad)),
    )(*operands)

    return out[:, :out_dim].reshape(B, N, his_delt_step, input_dim)


# ----------------------------------------------------------------------------
if __name__ == "__main__":
    B, N = 2, 8
    input_dim, conditional_dim, his_stp = 3, 5, 11
    his_delt_step = his_stp - 1

    key = jax.random.PRNGKey(0)
    kx, kt, kh = jax.random.split(key, 3)
    perturbed_x = jax.random.normal(kx, (B, N, his_delt_step, input_dim),
                                    jnp.float32)
    t = jax.random.uniform(kt, (B,), jnp.float32)
    predicted_his_traj = jax.random.normal(kh, (B, N, his_stp, conditional_dim),
                                           jnp.float32)

    params = init_params(seed=0)

    fwd = jax.jit(unet_diffusion_forward)
    out = fwd(params, perturbed_x, t, predicted_his_traj)
    out = jax.block_until_ready(out)

    assert out.shape == (B, N, his_delt_step, input_dim), out.shape
    assert out.dtype == jnp.float32
    assert bool(jnp.all(jnp.isfinite(out)))
    print("KERNEL_OK")
</pallas_src>

<mosaic_0001>
module attributes {stable_mosaic.version = 11 : i64} {
  func.func @_fused_unet_kernel(%arg0: memref<16x128xf32, #tpu.memory_space<vmem>>, %arg1: memref<128x64xbf16, #tpu.memory_space<vmem>>, %arg2: memref<3x64xf32, #tpu.memory_space<vmem>>, %arg3: memref<64x128xbf16, #tpu.memory_space<vmem>>, %arg4: memref<3x128xf32, #tpu.memory_space<vmem>>, %arg5: memref<128x256xbf16, #tpu.memory_space<vmem>>, %arg6: memref<3x256xf32, #tpu.memory_space<vmem>>, %arg7: memref<256x512xbf16, #tpu.memory_space<vmem>>, %arg8: memref<3x512xf32, #tpu.memory_space<vmem>>, %arg9: memref<512x64xbf16, #tpu.memory_space<vmem>>, %arg10: memref<3x64xf32, #tpu.memory_space<vmem>>, %arg11: memref<64x256xbf16, #tpu.memory_space<vmem>>, %arg12: memref<3x256xf32, #tpu.memory_space<vmem>>, %arg13: memref<256x256xbf16, #tpu.memory_space<vmem>>, %arg14: memref<512x256xbf16, #tpu.memory_space<vmem>>, %arg15: memref<3x256xf32, #tpu.memory_space<vmem>>, %arg16: memref<256x128xbf16, #tpu.memory_space<vmem>>, %arg17: memref<3x128xf32, #tpu.memory_space<vmem>>, %arg18: memref<128x128xbf16, #tpu.memory_space<vmem>>, %arg19: memref<256x128xbf16, #tpu.memory_space<vmem>>, %arg20: memref<3x128xf32, #tpu.memory_space<vmem>>, %arg21: memref<128x64xbf16, #tpu.memory_space<vmem>>, %arg22: memref<3x64xf32, #tpu.memory_space<vmem>>, %arg23: memref<64x64xbf16, #tpu.memory_space<vmem>>, %arg24: memref<128x64xbf16, #tpu.memory_space<vmem>>, %arg25: memref<3x64xf32, #tpu.memory_space<vmem>>, %arg26: memref<64x128xbf16, #tpu.memory_space<vmem>>, %arg27: memref<1x128xf32, #tpu.memory_space<vmem>>, %arg28: memref<16x128xf32, #tpu.memory_space<vmem>>) attributes {dimension_semantics = [], scalar_prefetch = 0 : i64, scratch_operands = 0 : i64, tpu.core_type = #tpu.core_type<tc>} {
    %c0 = arith.constant 0 : index
    %c0_0 = arith.constant 0 : index
    %0 = vector.load %arg0[%c0, %c0_0] : memref<16x128xf32, #tpu.memory_space<vmem>>, vector<16x128xf32>
    %1 = arith.truncf %0 : vector<16x128xf32> to vector<16x128xbf16>
    %c0_1 = arith.constant 0 : index
    %c0_2 = arith.constant 0 : index
    %2 = vector.load %arg1[%c0_1, %c0_2] : memref<128x64xbf16, #tpu.memory_space<vmem>>, vector<128x64xbf16>
    %cst = arith.constant dense<0.000000e+00> : vector<16x64xf32>
    %3 = tpu.matmul %1, %2, %cst {dimension_numbers = #tpu.dot_dimension_numbers<[1], [0], [0], [1], [0, 0, 1, 1], [], []>} : vector<16x128xbf16>, vector<128x64xbf16>, vector<16x64xf32> -> vector<16x64xf32>
    %c0_3 = arith.constant 0 : index
    %c0_4 = arith.constant 0 : index
    %4 = vector.load %arg2[%c0_3, %c0_4] : memref<3x64xf32, #tpu.memory_space<vmem>>, vector<3x64xf32>
    %5 = vector.extract_strided_slice %4 {offsets = [0, 0], sizes = [1, 64], strides = [1, 1]} : vector<3x64xf32> to vector<1x64xf32>
    %6 = vector.broadcast %5 : vector<1x64xf32> to vector<16x64xf32>
    %7 = arith.addf %3, %6 : vector<16x64xf32>
    %cst_5 = arith.constant 0.00999999977 : f32
    %8 = vector.broadcast %cst_5 : f32 to vector<16x64xf32>
    %9 = arith.mulf %8, %7 : vector<16x64xf32>
    %10 = arith.maximumf %7, %9 : vector<16x64xf32>
    %cst_6 = arith.constant dense<0.000000e+00> : vector<64xf32>
    %11 = vector.multi_reduction <add>, %10, %cst_6 [0] : vector<16x64xf32> to vector<64xf32>
    %12 = vector.shape_cast %11 : vector<64xf32> to vector<1x64xf32>
    %13 = arith.mulf %10, %10 : vector<16x64xf32>
    %cst_7 = arith.constant dense<0.000000e+00> : vector<64xf32>
    %14 = vector.multi_reduction <add>, %13, %cst_7 [0] : vector<16x64xf32> to vector<64xf32>
    %15 = vector.shape_cast %14 : vector<64xf32> to vector<1x64xf32>
    %cst_8 = arith.constant 6.250000e-02 : f32
    %16 = vector.broadcast %cst_8 : f32 to vector<1x64xf32>
    %17 = arith.mulf %12, %16 : vector<1x64xf32>
    %cst_9 = arith.constant 6.250000e-02 : f32
    %18 = vector.broadcast %cst_9 : f32 to vector<1x64xf32>
    %19 = arith.mulf %15, %18 : vector<1x64xf32>
    %20 = arith.mulf %17, %17 : vector<1x64xf32>
    %21 = arith.subf %19, %20 : vector<1x64xf32>
    %cst_10 = arith.constant 0.000000e+00 : f32
    %22 = vector.broadcast %cst_10 : f32 to vector<1x64xf32>
    %23 = arith.maximumf %21, %22 : vector<1x64xf32>
    %24 = vector.extract_strided_slice %4 {offsets = [1, 0], sizes = [1, 64], strides = [1, 1]} : vector<3x64xf32> to vector<1x64xf32>
    %cst_11 = arith.constant 9.99999974E-6 : f32
    %25 = vector.broadcast %cst_11 : f32 to vector<1x64xf32>
    %26 = arith.addf %23, %25 : vector<1x64xf32>
    %27 = math.rsqrt %26 : vector<1x64xf32>
    %28 = arith.mulf %24, %27 : vector<1x64xf32>
    %29 = vector.extract_strided_slice %4 {offsets = [2, 0], sizes = [1, 64], strides = [1, 1]} : vector<3x64xf32> to vector<1x64xf32>
    %30 = arith.mulf %17, %28 : vector<1x64xf32>
    %31 = arith.subf %29, %30 : vector<1x64xf32>
    %32 = vector.broadcast %28 : vector<1x64xf32> to vector<16x64xf32>
    %33 = arith.mulf %10, %32 : vector<16x64xf32>
    %34 = vector.broadcast %31 : vector<1x64xf32> to vector<16x64xf32>
    %35 = arith.addf %33, %34 : vector<16x64xf32>
    %36 = arith.truncf %35 : vector<16x64xf32> to vector<16x64xbf16>
    %c0_12 = arith.constant 0 : index
    %c0_13 = arith.constant 0 : index
    %37 = vector.load %arg3[%c0_12, %c0_13] : memref<64x128xbf16, #tpu.memory_space<vmem>>, vector<64x128xbf16>
    %cst_14 = arith.constant dense<0.000000e+00> : vector<16x128xf32>
    %38 = tpu.matmul %36, %37, %cst_14 {dimension_numbers = #tpu.dot_dimension_numbers<[1], [0], [0], [1], [0, 0, 1, 1], [], []>} : vector<16x64xbf16>, vector<64x128xbf16>, vector<16x128xf32> -> vector<16x128xf32>
    %c0_15 = arith.constant 0 : index
    %c0_16 = arith.constant 0 : index
    %39 = vector.load %arg4[%c0_15, %c0_16] : memref<3x128xf32, #tpu.memory_space<vmem>>, vector<3x128xf32>
    %40 = vector.extract_strided_slice %39 {offsets = [0, 0], sizes = [1, 128], strides = [1, 1]} : vector<3x128xf32> to vector<1x128xf32>
    %41 = vector.broadcast %40 : vector<1x128xf32> to vector<16x128xf32>
    %42 = arith.addf %38, %41 : vector<16x128xf32>
    %cst_17 = arith.constant 0.00999999977 : f32
    %43 = vector.broadcast %cst_17 : f32 to vector<16x128xf32>
    %44 = arith.mulf %43, %42 : vector<16x128xf32>
    %45 = arith.maximumf %42, %44 : vector<16x128xf32>
    %cst_18 = arith.constant dense<0.000000e+00> : vector<128xf32>
    %46 = vector.multi_reduction <add>, %45, %cst_18 [0] : vector<16x128xf32> to vector<128xf32>
    %47 = vector.shape_cast %46 : vector<128xf32> to vector<1x128xf32>
    %48 = arith.mulf %45, %45 : vector<16x128xf32>
    %cst_19 = arith.constant dense<0.000000e+00> : vector<128xf32>
    %49 = vector.multi_reduction <add>, %48, %cst_19 [0] : vector<16x128xf32> to vector<128xf32>
    %50 = vector.shape_cast %49 : vector<128xf32> to vector<1x128xf32>
    %cst_20 = arith.constant 6.250000e-02 : f32
    %51 = vector.broadcast %cst_20 : f32 to vector<1x128xf32>
    %52 = arith.mulf %47, %51 : vector<1x128xf32>
    %cst_21 = arith.constant 6.250000e-02 : f32
    %53 = vector.broadcast %cst_21 : f32 to vector<1x128xf32>
    %54 = arith.mulf %50, %53 : vector<1x128xf32>
    %55 = arith.mulf %52, %52 : vector<1x128xf32>
    %56 = arith.subf %54, %55 : vector<1x128xf32>
    %cst_22 = arith.constant 0.000000e+00 : f32
    %57 = vector.broadcast %cst_22 : f32 to vector<1x128xf32>
    %58 = arith.maximumf %56, %57 : vector<1x128xf32>
    %59 = vector.extract_strided_slice %39 {offsets = [1, 0], sizes = [1, 128], strides = [1, 1]} : vector<3x128xf32> to vector<1x128xf32>
    %cst_23 = arith.constant 9.99999974E-6 : f32
    %60 = vector.broadcast %cst_23 : f32 to vector<1x128xf32>
    %61 = arith.addf %58, %60 : vector<1x128xf32>
    %62 = math.rsqrt %61 : vector<1x128xf32>
    %63 = arith.mulf %59, %62 : vector<1x128xf32>
    %64 = vector.extract_strided_slice %39 {offsets = [2, 0], sizes = [1, 128], strides = [1, 1]} : vector<3x128xf32> to vector<1x128xf32>
    %65 = arith.mulf %52, %63 : vector<1x128xf32>
    %66 = arith.subf %64, %65 : vector<1x128xf32>
    %67 = vector.broadcast %63 : vector<1x128xf32> to vector<16x128xf32>
    %68 = arith.mulf %45, %67 : vector<16x128xf32>
    %69 = vector.broadcast %66 : vector<1x128xf32> to vector<16x128xf32>
    %70 = arith.addf %68, %69 : vector<16x128xf32>
    %71 = arith.truncf %70 : vector<16x128xf32> to vector<16x128xbf16>
    %c0_24 = arith.constant 0 : index
    %c0_25 = arith.constant 0 : index
    %72 = vector.load %arg5[%c0_24, %c0_25] : memref<128x256xbf16, #tpu.memory_space<vmem>>, vector<128x256xbf16>
    %cst_26 = arith.constant dense<0.000000e+00> : vector<16x256xf32>
    %73 = tpu.matmul %71, %72, %cst_26 {dimension_numbers = #tpu.dot_dimension_numbers<[1], [0], [0], [1], [0, 0, 1, 1], [], []>} : vector<16x128xbf16>, vector<128x256xbf16>, vector<16x256xf32> -> vector<16x256xf32>
    %c0_27 = arith.constant 0 : index
    %c0_28 = arith.constant 0 : index
    %74 = vector.load %arg6[%c0_27, %c0_28] : memref<3x256xf32, #tpu.memory_space<vmem>>, vector<3x256xf32>
    %75 = vector.extract_strided_slice %74 {offsets = [0, 0], sizes = [1, 256], strides = [1, 1]} : vector<3x256xf32> to vector<1x256xf32>
    %76 = vector.broadcast %75 : vector<1x256xf32> to vector<16x256xf32>
    %77 = arith.addf %73, %76 : vector<16x256xf32>
    %cst_29 = arith.constant 0.00999999977 : f32
    %78 = vector.broadcast %cst_29 : f32 to vector<16x256xf32>
    %79 = arith.mulf %78, %77 : vector<16x256xf32>
    %80 = arith.maximumf %77, %79 : vector<16x256xf32>
    %cst_30 = arith.constant dense<0.000000e+00> : vector<256xf32>
    %81 = vector.multi_reduction <add>, %80, %cst_30 [0] : vector<16x256xf32> to vector<256xf32>
    %82 = vector.shape_cast %81 : vector<256xf32> to vector<1x256xf32>
    %83 = arith.mulf %80, %80 : vector<16x256xf32>
    %cst_31 = arith.constant dense<0.000000e+00> : vector<256xf32>
    %84 = vector.multi_reduction <add>, %83, %cst_31 [0] : vector<16x256xf32> to vector<256xf32>
    %85 = vector.shape_cast %84 : vector<256xf32> to vector<1x256xf32>
    %cst_32 = arith.constant 6.250000e-02 : f32
    %86 = vector.broadcast %cst_32 : f32 to vector<1x256xf32>
    %87 = arith.mulf %82, %86 : vector<1x256xf32>
    %cst_33 = arith.constant 6.250000e-02 : f32
    %88 = vector.broadcast %cst_33 : f32 to vector<1x256xf32>
    %89 = arith.mulf %85, %88 : vector<1x256xf32>
    %90 = arith.mulf %87, %87 : vector<1x256xf32>
    %91 = arith.subf %89, %90 : vector<1x256xf32>
    %cst_34 = arith.constant 0.000000e+00 : f32
    %92 = vector.broadcast %cst_34 : f32 to vector<1x256xf32>
    %93 = arith.maximumf %91, %92 : vector<1x256xf32>
    %94 = vector.extract_strided_slice %74 {offsets = [1, 0], sizes = [1, 256], strides = [1, 1]} : vector<3x256xf32> to vector<1x256xf32>
    %cst_35 = arith.constant 9.99999974E-6 : f32
    %95 = vector.broadcast %cst_35 : f32 to vector<1x256xf32>
    %96 = arith.addf %93, %95 : vector<1x256xf32>
    %97 = math.rsqrt %96 : vector<1x256xf32>
    %98 = arith.mulf %94, %97 : vector<1x256xf32>
    %99 = vector.extract_strided_slice %74 {offsets = [2, 0], sizes = [1, 256], strides = [1, 1]} : vector<3x256xf32> to vector<1x256xf32>
    %100 = arith.mulf %87, %98 : vector<1x256xf32>
    %101 = arith.subf %99, %100 : vector<1x256xf32>
    %102 = vector.broadcast %98 : vector<1x256xf32> to vector<16x256xf32>
    %103 = arith.mulf %80, %102 : vector<16x256xf32>
    %104 = vector.broadcast %101 : vector<1x256xf32> to vector<16x256xf32>
    %105 = arith.addf %103, %104 : vector<16x256xf32>
    %106 = arith.truncf %105 : vector<16x256xf32> to vector<16x256xbf16>
    %c0_36 = arith.constant 0 : index
    %c0_37 = arith.constant 0 : index
    %107 = vector.load %arg7[%c0_36, %c0_37] : memref<256x512xbf16, #tpu.memory_space<vmem>>, vector<256x512xbf16>
    %cst_38 = arith.constant dense<0.000000e+00> : vector<16x512xf32>
    %108 = tpu.matmul %106, %107, %cst_38 {dimension_numbers = #tpu.dot_dimension_numbers<[1], [0], [0], [1], [0, 0, 1, 1], [], []>} : vector<16x256xbf16>, vector<256x512xbf16>, vector<16x512xf32> -> vector<16x512xf32>
    %c0_39 = arith.constant 0 : index
    %c0_40 = arith.constant 0 : index
    %109 = vector.load %arg8[%c0_39, %c0_40] : memref<3x512xf32, #tpu.memory_space<vmem>>, vector<3x512xf32>
    %110 = vector.extract_strided_slice %109 {offsets = [0, 0], sizes = [1, 512], strides = [1, 1]} : vector<3x512xf32> to vector<1x512xf32>
    %111 = vector.broadcast %110 : vector<1x512xf32> to vector<16x512xf32>
    %112 = arith.addf %108, %111 : vector<16x512xf32>
    %cst_41 = arith.constant 0.00999999977 : f32
    %113 = vector.broadcast %cst_41 : f32 to vector<16x512xf32>
    %114 = arith.mulf %113, %112 : vector<16x512xf32>
    %115 = arith.maximumf %112, %114 : vector<16x512xf32>
    %cst_42 = arith.constant dense<0.000000e+00> : vector<512xf32>
    %116 = vector.multi_reduction <add>, %115, %cst_42 [0] : vector<16x512xf32> to vector<512xf32>
    %117 = vector.shape_cast %116 : vector<512xf32> to vector<1x512xf32>
    %118 = arith.mulf %115, %115 : vector<16x512xf32>
    %cst_43 = arith.constant dense<0.000000e+00> : vector<512xf32>
    %119 = vector.multi_reduction <add>, %118, %cst_43 [0] : vector<16x512xf32> to vector<512xf32>
    %120 = vector.shape_cast %119 : vector<512xf32> to vector<1x512xf32>
    %cst_44 = arith.constant 6.250000e-02 : f32
    %121 = vector.broadcast %cst_44 : f32 to vector<1x512xf32>
    %122 = arith.mulf %117, %121 : vector<1x512xf32>
    %cst_45 = arith.constant 6.250000e-02 : f32
    %123 = vector.broadcast %cst_45 : f32 to vector<1x512xf32>
    %124 = arith.mulf %120, %123 : vector<1x512xf32>
    %125 = arith.mulf %122, %122 : vector<1x512xf32>
    %126 = arith.subf %124, %125 : vector<1x512xf32>
    %cst_46 = arith.constant 0.000000e+00 : f32
    %127 = vector.broadcast %cst_46 : f32 to vector<1x512xf32>
    %128 = arith.maximumf %126, %127 : vector<1x512xf32>
    %129 = vector.extract_strided_slice %109 {offsets = [1, 0], sizes = [1, 512], strides = [1, 1]} : vector<3x512xf32> to vector<1x512xf32>
    %cst_47 = arith.constant 9.99999974E-6 : f32
    %130 = vector.broadcast %cst_47 : f32 to vector<1x512xf32>
    %131 = arith.addf %128, %130 : vector<1x512xf32>
    %132 = math.rsqrt %131 : vector<1x512xf32>
    %133 = arith.mulf %129, %132 : vector<1x512xf32>
    %134 = vector.extract_strided_slice %109 {offsets = [2, 0], sizes = [1, 512], strides = [1, 1]} : vector<3x512xf32> to vector<1x512xf32>
    %135 = arith.mulf %122, %133 : vector<1x512xf32>
    %136 = arith.subf %134, %135 : vector<1x512xf32>
    %137 = vector.broadcast %133 : vector<1x512xf32> to vector<16x512xf32>
    %138 = arith.mulf %115, %137 : vector<16x512xf32>
    %139 = vector.broadcast %136 : vector<1x512xf32> to vector<16x512xf32>
    %140 = arith.addf %138, %139 : vector<16x512xf32>
    %141 = arith.truncf %140 : vector<16x512xf32> to vector<16x512xbf16>
    %c0_48 = arith.constant 0 : index
    %c0_49 = arith.constant 0 : index
    %142 = vector.load %arg9[%c0_48, %c0_49] : memref<512x64xbf16, #tpu.memory_space<vmem>>, vector<512x64xbf16>
    %cst_50 = arith.constant dense<0.000000e+00> : vector<16x64xf32>
    %143 = tpu.matmul %141, %142, %cst_50 {dimension_numbers = #tpu.dot_dimension_numbers<[1], [0], [0], [1], [0, 0, 1, 1], [], []>} : vector<16x512xbf16>, vector<512x64xbf16>, vector<16x64xf32> -> vector<16x64xf32>
    %c0_51 = arith.constant 0 : index
    %c0_52 = arith.constant 0 : index
    %144 = vector.load %arg10[%c0_51, %c0_52] : memref<3x64xf32, #tpu.memory_space<vmem>>, vector<3x64xf32>
    %145 = vector.extract_strided_slice %144 {offsets = [0, 0], sizes = [1, 64], strides = [1, 1]} : vector<3x64xf32> to vector<1x64xf32>
    %146 = vector.broadcast %145 : vector<1x64xf32> to vector<16x64xf32>
    %147 = arith.addf %143, %146 : vector<16x64xf32>
    %cst_53 = arith.constant 0.00999999977 : f32
    %148 = vector.broadcast %cst_53 : f32 to vector<16x64xf32>
    %149 = arith.mulf %148, %147 : vector<16x64xf32>
    %150 = arith.maximumf %147, %149 : vector<16x64xf32>
    %cst_54 = arith.constant dense<0.000000e+00> : vector<64xf32>
    %151 = vector.multi_reduction <add>, %150, %cst_54 [0] : vector<16x64xf32> to vector<64xf32>
    %152 = vector.shape_cast %151 : vector<64xf32> to vector<1x64xf32>
    %153 = arith.mulf %150, %150 : vector<16x64xf32>
    %cst_55 = arith.constant dense<0.000000e+00> : vector<64xf32>
    %154 = vector.multi_reduction <add>, %153, %cst_55 [0] : vector<16x64xf32> to vector<64xf32>
    %155 = vector.shape_cast %154 : vector<64xf32> to vector<1x64xf32>
    %cst_56 = arith.constant 6.250000e-02 : f32
    %156 = vector.broadcast %cst_56 : f32 to vector<1x64xf32>
    %157 = arith.mulf %152, %156 : vector<1x64xf32>
    %cst_57 = arith.constant 6.250000e-02 : f32
    %158 = vector.broadcast %cst_57 : f32 to vector<1x64xf32>
    %159 = arith.mulf %155, %158 : vector<1x64xf32>
    %160 = arith.mulf %157, %157 : vector<1x64xf32>
    %161 = arith.subf %159, %160 : vector<1x64xf32>
    %cst_58 = arith.constant 0.000000e+00 : f32
    %162 = vector.broadcast %cst_58 : f32 to vector<1x64xf32>
    %163 = arith.maximumf %161, %162 : vector<1x64xf32>
    %164 = vector.extract_strided_slice %144 {offsets = [1, 0], sizes = [1, 64], strides = [1, 1]} : vector<3x64xf32> to vector<1x64xf32>
    %cst_59 = arith.constant 9.99999974E-6 : f32
    %165 = vector.broadcast %cst_59 : f32 to vector<1x64xf32>
    %166 = arith.addf %163, %165 : vector<1x64xf32>
    %167 = math.rsqrt %166 : vector<1x64xf32>
    %168 = arith.mulf %164, %167 : vector<1x64xf32>
    %169 = vector.extract_strided_slice %144 {offsets = [2, 0], sizes = [1, 64], strides = [1, 1]} : vector<3x64xf32> to vector<1x64xf32>
    %170 = arith.mulf %157, %168 : vector<1x64xf32>
    %171 = arith.subf %169, %170 : vector<1x64xf32>
    %172 = vector.broadcast %168 : vector<1x64xf32> to vector<16x64xf32>
    %173 = arith.mulf %150, %172 : vector<16x64xf32>
    %174 = vector.broadcast %171 : vector<1x64xf32> to vector<16x64xf32>
    %175 = arith.addf %173, %174 : vector<16x64xf32>
    %176 = arith.truncf %175 : vector<16x64xf32> to vector<16x64xbf16>
    %c0_60 = arith.constant 0 : index
    %c0_61 = arith.constant 0 : index
    %177 = vector.load %arg11[%c0_60, %c0_61] : memref<64x256xbf16, #tpu.memory_space<vmem>>, vector<64x256xbf16>
    %cst_62 = arith.constant dense<0.000000e+00> : vector<16x256xf32>
    %178 = tpu.matmul %176, %177, %cst_62 {dimension_numbers = #tpu.dot_dimension_numbers<[1], [0], [0], [1], [0, 0, 1, 1], [], []>} : vector<16x64xbf16>, vector<64x256xbf16>, vector<16x256xf32> -> vector<16x256xf32>
    %c0_63 = arith.constant 0 : index
    %c0_64 = arith.constant 0 : index
    %179 = vector.load %arg12[%c0_63, %c0_64] : memref<3x256xf32, #tpu.memory_space<vmem>>, vector<3x256xf32>
    %180 = vector.extract_strided_slice %179 {offsets = [0, 0], sizes = [1, 256], strides = [1, 1]} : vector<3x256xf32> to vector<1x256xf32>
    %181 = vector.broadcast %180 : vector<1x256xf32> to vector<16x256xf32>
    %182 = arith.addf %178, %181 : vector<16x256xf32>
    %cst_65 = arith.constant 0.00999999977 : f32
    %183 = vector.broadcast %cst_65 : f32 to vector<16x256xf32>
    %184 = arith.mulf %183, %182 : vector<16x256xf32>
    %185 = arith.maximumf %182, %184 : vector<16x256xf32>
    %cst_66 = arith.constant dense<0.000000e+00> : vector<256xf32>
    %186 = vector.multi_reduction <add>, %185, %cst_66 [0] : vector<16x256xf32> to vector<256xf32>
    %187 = vector.shape_cast %186 : vector<256xf32> to vector<1x256xf32>
    %188 = arith.mulf %185, %185 : vector<16x256xf32>
    %cst_67 = arith.constant dense<0.000000e+00> : vector<256xf32>
    %189 = vector.multi_reduction <add>, %188, %cst_67 [0] : vector<16x256xf32> to vector<256xf32>
    %190 = vector.shape_cast %189 : vector<256xf32> to vector<1x256xf32>
    %cst_68 = arith.constant 6.250000e-02 : f32
    %191 = vector.broadcast %cst_68 : f32 to vector<1x256xf32>
    %192 = arith.mulf %187, %191 : vector<1x256xf32>
    %cst_69 = arith.constant 6.250000e-02 : f32
    %193 = vector.broadcast %cst_69 : f32 to vector<1x256xf32>
    %194 = arith.mulf %190, %193 : vector<1x256xf32>
    %195 = arith.mulf %192, %192 : vector<1x256xf32>
    %196 = arith.subf %194, %195 : vector<1x256xf32>
    %cst_70 = arith.constant 0.000000e+00 : f32
    %197 = vector.broadcast %cst_70 : f32 to vector<1x256xf32>
    %198 = arith.maximumf %196, %197 : vector<1x256xf32>
    %199 = vector.extract_strided_slice %179 {offsets = [1, 0], sizes = [1, 256], strides = [1, 1]} : vector<3x256xf32> to vector<1x256xf32>
    %cst_71 = arith.constant 9.99999974E-6 : f32
    %200 = vector.broadcast %cst_71 : f32 to vector<1x256xf32>
    %201 = arith.addf %198, %200 : vector<1x256xf32>
    %202 = math.rsqrt %201 : vector<1x256xf32>
    %203 = arith.mulf %199, %202 : vector<1x256xf32>
    %204 = vector.extract_strided_slice %179 {offsets = [2, 0], sizes = [1, 256], strides = [1, 1]} : vector<3x256xf32> to vector<1x256xf32>
    %205 = arith.mulf %192, %203 : vector<1x256xf32>
    %206 = arith.subf %204, %205 : vector<1x256xf32>
    %207 = vector.broadcast %203 : vector<1x256xf32> to vector<16x256xf32>
    %208 = arith.mulf %185, %207 : vector<16x256xf32>
    %209 = vector.broadcast %206 : vector<1x256xf32> to vector<16x256xf32>
    %210 = arith.addf %208, %209 : vector<16x256xf32>
    %211 = arith.truncf %210 : vector<16x256xf32> to vector<16x256xbf16>
    %c0_72 = arith.constant 0 : index
    %c0_73 = arith.constant 0 : index
    %212 = vector.load %arg13[%c0_72, %c0_73] : memref<256x256xbf16, #tpu.memory_space<vmem>>, vector<256x256xbf16>
    %cst_74 = arith.constant dense<0.000000e+00> : vector<16x256xf32>
    %213 = tpu.matmul %211, %212, %cst_74 {dimension_numbers = #tpu.dot_dimension_numbers<[1], [0], [0], [1], [0, 0, 1, 1], [], []>} : vector<16x256xbf16>, vector<256x256xbf16>, vector<16x256xf32> -> vector<16x256xf32>
    %c0_75 = arith.constant 0 : index
    %c0_76 = arith.constant 0 : index
    %214 = vector.load %arg14[%c0_75, %c0_76] : memref<512x256xbf16, #tpu.memory_space<vmem>>, vector<512x256xbf16>
    %cst_77 = arith.constant dense<0.000000e+00> : vector<16x256xf32>
    %215 = tpu.matmul %141, %214, %cst_77 {dimension_numbers = #tpu.dot_dimension_numbers<[1], [0], [0], [1], [0, 0, 1, 1], [], []>} : vector<16x512xbf16>, vector<512x256xbf16>, vector<16x256xf32> -> vector<16x256xf32>
    %216 = arith.addf %213, %215 : vector<16x256xf32>
    %c0_78 = arith.constant 0 : index
    %c0_79 = arith.constant 0 : index
    %217 = vector.load %arg15[%c0_78, %c0_79] : memref<3x256xf32, #tpu.memory_space<vmem>>, vector<3x256xf32>
    %218 = vector.extract_strided_slice %217 {offsets = [0, 0], sizes = [1, 256], strides = [1, 1]} : vector<3x256xf32> to vector<1x256xf32>
    %219 = vector.broadcast %218 : vector<1x256xf32> to vector<16x256xf32>
    %220 = arith.addf %216, %219 : vector<16x256xf32>
    %cst_80 = arith.constant 0.00999999977 : f32
    %221 = vector.broadcast %cst_80 : f32 to vector<16x256xf32>
    %222 = arith.mulf %221, %220 : vector<16x256xf32>
    %223 = arith.maximumf %220, %222 : vector<16x256xf32>
    %cst_81 = arith.constant dense<0.000000e+00> : vector<256xf32>
    %224 = vector.multi_reduction <add>, %223, %cst_81 [0] : vector<16x256xf32> to vector<256xf32>
    %225 = vector.shape_cast %224 : vector<256xf32> to vector<1x256xf32>
    %226 = arith.mulf %223, %223 : vector<16x256xf32>
    %cst_82 = arith.constant dense<0.000000e+00> : vector<256xf32>
    %227 = vector.multi_reduction <add>, %226, %cst_82 [0] : vector<16x256xf32> to vector<256xf32>
    %228 = vector.shape_cast %227 : vector<256xf32> to vector<1x256xf32>
    %cst_83 = arith.constant 6.250000e-02 : f32
    %229 = vector.broadcast %cst_83 : f32 to vector<1x256xf32>
    %230 = arith.mulf %225, %229 : vector<1x256xf32>
    %cst_84 = arith.constant 6.250000e-02 : f32
    %231 = vector.broadcast %cst_84 : f32 to vector<1x256xf32>
    %232 = arith.mulf %228, %231 : vector<1x256xf32>
    %233 = arith.mulf %230, %230 : vector<1x256xf32>
    %234 = arith.subf %232, %233 : vector<1x256xf32>
    %cst_85 = arith.constant 0.000000e+00 : f32
    %235 = vector.broadcast %cst_85 : f32 to vector<1x256xf32>
    %236 = arith.maximumf %234, %235 : vector<1x256xf32>
    %237 = vector.extract_strided_slice %217 {offsets = [1, 0], sizes = [1, 256], strides = [1, 1]} : vector<3x256xf32> to vector<1x256xf32>
    %cst_86 = arith.constant 9.99999974E-6 : f32
    %238 = vector.broadcast %cst_86 : f32 to vector<1x256xf32>
    %239 = arith.addf %236, %238 : vector<1x256xf32>
    %240 = math.rsqrt %239 : vector<1x256xf32>
    %241 = arith.mulf %237, %240 : vector<1x256xf32>
    %242 = vector.extract_strided_slice %217 {offsets = [2, 0], sizes = [1, 256], strides = [1, 1]} : vector<3x256xf32> to vector<1x256xf32>
    %243 = arith.mulf %230, %241 : vector<1x256xf32>
    %244 = arith.subf %242, %243 : vector<1x256xf32>
    %245 = vector.broadcast %241 : vector<1x256xf32> to vector<16x256xf32>
    %246 = arith.mulf %223, %245 : vector<16x256xf32>
    %247 = vector.broadcast %244 : vector<1x256xf32> to vector<16x256xf32>
    %248 = arith.addf %246, %247 : vector<16x256xf32>
    %249 = arith.truncf %248 : vector<16x256xf32> to vector<16x256xbf16>
    %c0_87 = arith.constant 0 : index
    %c0_88 = arith.constant 0 : index
    %250 = vector.load %arg16[%c0_87, %c0_88] : memref<256x128xbf16, #tpu.memory_space<vmem>>, vector<256x128xbf16>
    %cst_89 = arith.constant dense<0.000000e+00> : vector<16x128xf32>
    %251 = tpu.matmul %249, %250, %cst_89 {dimension_numbers = #tpu.dot_dimension_numbers<[1], [0], [0], [1], [0, 0, 1, 1], [], []>} : vector<16x256xbf16>, vector<256x128xbf16>, vector<16x128xf32> -> vector<16x128xf32>
    %c0_90 = arith.constant 0 : index
    %c0_91 = arith.constant 0 : index
    %252 = vector.load %arg17[%c0_90, %c0_91] : memref<3x128xf32, #tpu.memory_space<vmem>>, vector<3x128xf32>
    %253 = vector.extract_strided_slice %252 {offsets = [0, 0], sizes = [1, 128], strides = [1, 1]} : vector<3x128xf32> to vector<1x128xf32>
    %254 = vector.broadcast %253 : vector<1x128xf32> to vector<16x128xf32>
    %255 = arith.addf %251, %254 : vector<16x128xf32>
    %cst_92 = arith.constant 0.00999999977 : f32
    %256 = vector.broadcast %cst_92 : f32 to vector<16x128xf32>
    %257 = arith.mulf %256, %255 : vector<16x128xf32>
    %258 = arith.maximumf %255, %257 : vector<16x128xf32>
    %cst_93 = arith.constant dense<0.000000e+00> : vector<128xf32>
    %259 = vector.multi_reduction <add>, %258, %cst_93 [0] : vector<16x128xf32> to vector<128xf32>
    %260 = vector.shape_cast %259 : vector<128xf32> to vector<1x128xf32>
    %261 = arith.mulf %258, %258 : vector<16x128xf32>
    %cst_94 = arith.constant dense<0.000000e+00> : vector<128xf32>
    %262 = vector.multi_reduction <add>, %261, %cst_94 [0] : vector<16x128xf32> to vector<128xf32>
    %263 = vector.shape_cast %262 : vector<128xf32> to vector<1x128xf32>
    %cst_95 = arith.constant 6.250000e-02 : f32
    %264 = vector.broadcast %cst_95 : f32 to vector<1x128xf32>
    %265 = arith.mulf %260, %264 : vector<1x128xf32>
    %cst_96 = arith.constant 6.250000e-02 : f32
    %266 = vector.broadcast %cst_96 : f32 to vector<1x128xf32>
    %267 = arith.mulf %263, %266 : vector<1x128xf32>
    %268 = arith.mulf %265, %265 : vector<1x128xf32>
    %269 = arith.subf %267, %268 : vector<1x128xf32>
    %cst_97 = arith.constant 0.000000e+00 : f32
    %270 = vector.broadcast %cst_97 : f32 to vector<1x128xf32>
    %271 = arith.maximumf %269, %270 : vector<1x128xf32>
    %272 = vector.extract_strided_slice %252 {offsets = [1, 0], sizes = [1, 128], strides = [1, 1]} : vector<3x128xf32> to vector<1x128xf32>
    %cst_98 = arith.constant 9.99999974E-6 : f32
    %273 = vector.broadcast %cst_98 : f32 to vector<1x128xf32>
    %274 = arith.addf %271, %273 : vector<1x128xf32>
    %275 = math.rsqrt %274 : vector<1x128xf32>
    %276 = arith.mulf %272, %275 : vector<1x128xf32>
    %277 = vector.extract_strided_slice %252 {offsets = [2, 0], sizes = [1, 128], strides = [1, 1]} : vector<3x128xf32> to vector<1x128xf32>
    %278 = arith.mulf %265, %276 : vector<1x128xf32>
    %279 = arith.subf %277, %278 : vector<1x128xf32>
    %280 = vector.broadcast %276 : vector<1x128xf32> to vector<16x128xf32>
    %281 = arith.mulf %258, %280 : vector<16x128xf32>
    %282 = vector.broadcast %279 : vector<1x128xf32> to vector<16x128xf32>
    %283 = arith.addf %281, %282 : vector<16x128xf32>
    %284 = arith.truncf %283 : vector<16x128xf32> to vector<16x128xbf16>
    %c0_99 = arith.constant 0 : index
    %c0_100 = arith.constant 0 : index
    %285 = vector.load %arg18[%c0_99, %c0_100] : memref<128x128xbf16, #tpu.memory_space<vmem>>, vector<128x128xbf16>
    %cst_101 = arith.constant dense<0.000000e+00> : vector<16x128xf32>
    %286 = tpu.matmul %284, %285, %cst_101 {dimension_numbers = #tpu.dot_dimension_numbers<[1], [0], [0], [1], [0, 0, 1, 1], [], []>} : vector<16x128xbf16>, vector<128x128xbf16>, vector<16x128xf32> -> vector<16x128xf32>
    %c0_102 = arith.constant 0 : index
    %c0_103 = arith.constant 0 : index
    %287 = vector.load %arg19[%c0_102, %c0_103] : memref<256x128xbf16, #tpu.memory_space<vmem>>, vector<256x128xbf16>
    %cst_104 = arith.constant dense<0.000000e+00> : vector<16x128xf32>
    %288 = tpu.matmul %106, %287, %cst_104 {dimension_numbers = #tpu.dot_dimension_numbers<[1], [0], [0], [1], [0, 0, 1, 1], [], []>} : vector<16x256xbf16>, vector<256x128xbf16>, vector<16x128xf32> -> vector<16x128xf32>
    %289 = arith.addf %286, %288 : vector<16x128xf32>
    %c0_105 = arith.constant 0 : index
    %c0_106 = arith.constant 0 : index
    %290 = vector.load %arg20[%c0_105, %c0_106] : memref<3x128xf32, #tpu.memory_space<vmem>>, vector<3x128xf32>
    %291 = vector.extract_strided_slice %290 {offsets = [0, 0], sizes = [1, 128], strides = [1, 1]} : vector<3x128xf32> to vector<1x128xf32>
    %292 = vector.broadcast %291 : vector<1x128xf32> to vector<16x128xf32>
    %293 = arith.addf %289, %292 : vector<16x128xf32>
    %cst_107 = arith.constant 0.00999999977 : f32
    %294 = vector.broadcast %cst_107 : f32 to vector<16x128xf32>
    %295 = arith.mulf %294, %293 : vector<16x128xf32>
    %296 = arith.maximumf %293, %295 : vector<16x128xf32>
    %cst_108 = arith.constant dense<0.000000e+00> : vector<128xf32>
    %297 = vector.multi_reduction <add>, %296, %cst_108 [0] : vector<16x128xf32> to vector<128xf32>
    %298 = vector.shape_cast %297 : vector<128xf32> to vector<1x128xf32>
    %299 = arith.mulf %296, %296 : vector<16x128xf32>
    %cst_109 = arith.constant dense<0.000000e+00> : vector<128xf32>
    %300 = vector.multi_reduction <add>, %299, %cst_109 [0] : vector<16x128xf32> to vector<128xf32>
    %301 = vector.shape_cast %300 : vector<128xf32> to vector<1x128xf32>
    %cst_110 = arith.constant 6.250000e-02 : f32
    %302 = vector.broadcast %cst_110 : f32 to vector<1x128xf32>
    %303 = arith.mulf %298, %302 : vector<1x128xf32>
    %cst_111 = arith.constant 6.250000e-02 : f32
    %304 = vector.broadcast %cst_111 : f32 to vector<1x128xf32>
    %305 = arith.mulf %301, %304 : vector<1x128xf32>
    %306 = arith.mulf %303, %303 : vector<1x128xf32>
    %307 = arith.subf %305, %306 : vector<1x128xf32>
    %cst_112 = arith.constant 0.000000e+00 : f32
    %308 = vector.broadcast %cst_112 : f32 to vector<1x128xf32>
    %309 = arith.maximumf %307, %308 : vector<1x128xf32>
    %310 = vector.extract_strided_slice %290 {offsets = [1, 0], sizes = [1, 128], strides = [1, 1]} : vector<3x128xf32> to vector<1x128xf32>
    %cst_113 = arith.constant 9.99999974E-6 : f32
    %311 = vector.broadcast %cst_113 : f32 to vector<1x128xf32>
    %312 = arith.addf %309, %311 : vector<1x128xf32>
    %313 = math.rsqrt %312 : vector<1x128xf32>
    %314 = arith.mulf %310, %313 : vector<1x128xf32>
    %315 = vector.extract_strided_slice %290 {offsets = [2, 0], sizes = [1, 128], strides = [1, 1]} : vector<3x128xf32> to vector<1x128xf32>
    %316 = arith.mulf %303, %314 : vector<1x128xf32>
    %317 = arith.subf %315, %316 : vector<1x128xf32>
    %318 = vector.broadcast %314 : vector<1x128xf32> to vector<16x128xf32>
    %319 = arith.mulf %296, %318 : vector<16x128xf32>
    %320 = vector.broadcast %317 : vector<1x128xf32> to vector<16x128xf32>
    %321 = arith.addf %319, %320 : vector<16x128xf32>
    %322 = arith.truncf %321 : vector<16x128xf32> to vector<16x128xbf16>
    %c0_114 = arith.constant 0 : index
    %c0_115 = arith.constant 0 : index
    %323 = vector.load %arg21[%c0_114, %c0_115] : memref<128x64xbf16, #tpu.memory_space<vmem>>, vector<128x64xbf16>
    %cst_116 = arith.constant dense<0.000000e+00> : vector<16x64xf32>
    %324 = tpu.matmul %322, %323, %cst_116 {dimension_numbers = #tpu.dot_dimension_numbers<[1], [0], [0], [1], [0, 0, 1, 1], [], []>} : vector<16x128xbf16>, vector<128x64xbf16>, vector<16x64xf32> -> vector<16x64xf32>
    %c0_117 = arith.constant 0 : index
    %c0_118 = arith.constant 0 : index
    %325 = vector.load %arg22[%c0_117, %c0_118] : memref<3x64xf32, #tpu.memory_space<vmem>>, vector<3x64xf32>
    %326 = vector.extract_strided_slice %325 {offsets = [0, 0], sizes = [1, 64], strides = [1, 1]} : vector<3x64xf32> to vector<1x64xf32>
    %327 = vector.broadcast %326 : vector<1x64xf32> to vector<16x64xf32>
    %328 = arith.addf %324, %327 : vector<16x64xf32>
    %cst_119 = arith.constant 0.00999999977 : f32
    %329 = vector.broadcast %cst_119 : f32 to vector<16x64xf32>
    %330 = arith.mulf %329, %328 : vector<16x64xf32>
    %331 = arith.maximumf %328, %330 : vector<16x64xf32>
    %cst_120 = arith.constant dense<0.000000e+00> : vector<64xf32>
    %332 = vector.multi_reduction <add>, %331, %cst_120 [0] : vector<16x64xf32> to vector<64xf32>
    %333 = vector.shape_cast %332 : vector<64xf32> to vector<1x64xf32>
    %334 = arith.mulf %331, %331 : vector<16x64xf32>
    %cst_121 = arith.constant dense<0.000000e+00> : vector<64xf32>
    %335 = vector.multi_reduction <add>, %334, %cst_121 [0] : vector<16x64xf32> to vector<64xf32>
    %336 = vector.shape_cast %335 : vector<64xf32> to vector<1x64xf32>
    %cst_122 = arith.constant 6.250000e-02 : f32
    %337 = vector.broadcast %cst_122 : f32 to vector<1x64xf32>
    %338 = arith.mulf %333, %337 : vector<1x64xf32>
    %cst_123 = arith.constant 6.250000e-02 : f32
    %339 = vector.broadcast %cst_123 : f32 to vector<1x64xf32>
    %340 = arith.mulf %336, %339 : vector<1x64xf32>
    %341 = arith.mulf %338, %338 : vector<1x64xf32>
    %342 = arith.subf %340, %341 : vector<1x64xf32>
    %cst_124 = arith.constant 0.000000e+00 : f32
    %343 = vector.broadcast %cst_124 : f32 to vector<1x64xf32>
    %344 = arith.maximumf %342, %343 : vector<1x64xf32>
    %345 = vector.extract_strided_slice %325 {offsets = [1, 0], sizes = [1, 64], strides = [1, 1]} : vector<3x64xf32> to vector<1x64xf32>
    %cst_125 = arith.constant 9.99999974E-6 : f32
    %346 = vector.broadcast %cst_125 : f32 to vector<1x64xf32>
    %347 = arith.addf %344, %346 : vector<1x64xf32>
    %348 = math.rsqrt %347 : vector<1x64xf32>
    %349 = arith.mulf %345, %348 : vector<1x64xf32>
    %350 = vector.extract_strided_slice %325 {offsets = [2, 0], sizes = [1, 64], strides = [1, 1]} : vector<3x64xf32> to vector<1x64xf32>
    %351 = arith.mulf %338, %349 : vector<1x64xf32>
    %352 = arith.subf %350, %351 : vector<1x64xf32>
    %353 = vector.broadcast %349 : vector<1x64xf32> to vector<16x64xf32>
    %354 = arith.mulf %331, %353 : vector<16x64xf32>
    %355 = vector.broadcast %352 : vector<1x64xf32> to vector<16x64xf32>
    %356 = arith.addf %354, %355 : vector<16x64xf32>
    %357 = arith.truncf %356 : vector<16x64xf32> to vector<16x64xbf16>
    %c0_126 = arith.constant 0 : index
    %c0_127 = arith.constant 0 : index
    %358 = vector.load %arg23[%c0_126, %c0_127] : memref<64x64xbf16, #tpu.memory_space<vmem>>, vector<64x64xbf16>
    %cst_128 = arith.constant dense<0.000000e+00> : vector<16x64xf32>
    %359 = tpu.matmul %357, %358, %cst_128 {dimension_numbers = #tpu.dot_dimension_numbers<[1], [0], [0], [1], [0, 0, 1, 1], [], []>} : vector<16x64xbf16>, vector<64x64xbf16>, vector<16x64xf32> -> vector<16x64xf32>
    %c0_129 = arith.constant 0 : index
    %c0_130 = arith.constant 0 : index
    %360 = vector.load %arg24[%c0_129, %c0_130] : memref<128x64xbf16, #tpu.memory_space<vmem>>, vector<128x64xbf16>
    %cst_131 = arith.constant dense<0.000000e+00> : vector<16x64xf32>
    %361 = tpu.matmul %71, %360, %cst_131 {dimension_numbers = #tpu.dot_dimension_numbers<[1], [0], [0], [1], [0, 0, 1, 1], [], []>} : vector<16x128xbf16>, vector<128x64xbf16>, vector<16x64xf32> -> vector<16x64xf32>
    %362 = arith.addf %359, %361 : vector<16x64xf32>
    %c0_132 = arith.constant 0 : index
    %c0_133 = arith.constant 0 : index
    %363 = vector.load %arg25[%c0_132, %c0_133] : memref<3x64xf32, #tpu.memory_space<vmem>>, vector<3x64xf32>
    %364 = vector.extract_strided_slice %363 {offsets = [0, 0], sizes = [1, 64], strides = [1, 1]} : vector<3x64xf32> to vector<1x64xf32>
    %365 = vector.broadcast %364 : vector<1x64xf32> to vector<16x64xf32>
    %366 = arith.addf %362, %365 : vector<16x64xf32>
    %cst_134 = arith.constant 0.00999999977 : f32
    %367 = vector.broadcast %cst_134 : f32 to vector<16x64xf32>
    %368 = arith.mulf %367, %366 : vector<16x64xf32>
    %369 = arith.maximumf %366, %368 : vector<16x64xf32>
    %cst_135 = arith.constant dense<0.000000e+00> : vector<64xf32>
    %370 = vector.multi_reduction <add>, %369, %cst_135 [0] : vector<16x64xf32> to vector<64xf32>
    %371 = vector.shape_cast %370 : vector<64xf32> to vector<1x64xf32>
    %372 = arith.mulf %369, %369 : vector<16x64xf32>
    %cst_136 = arith.constant dense<0.000000e+00> : vector<64xf32>
    %373 = vector.multi_reduction <add>, %372, %cst_136 [0] : vector<16x64xf32> to vector<64xf32>
    %374 = vector.shape_cast %373 : vector<64xf32> to vector<1x64xf32>
    %cst_137 = arith.constant 6.250000e-02 : f32
    %375 = vector.broadcast %cst_137 : f32 to vector<1x64xf32>
    %376 = arith.mulf %371, %375 : vector<1x64xf32>
    %cst_138 = arith.constant 6.250000e-02 : f32
    %377 = vector.broadcast %cst_138 : f32 to vector<1x64xf32>
    %378 = arith.mulf %374, %377 : vector<1x64xf32>
    %379 = arith.mulf %376, %376 : vector<1x64xf32>
    %380 = arith.subf %378, %379 : vector<1x64xf32>
    %cst_139 = arith.constant 0.000000e+00 : f32
    %381 = vector.broadcast %cst_139 : f32 to vector<1x64xf32>
    %382 = arith.maximumf %380, %381 : vector<1x64xf32>
    %383 = vector.extract_strided_slice %363 {offsets = [1, 0], sizes = [1, 64], strides = [1, 1]} : vector<3x64xf32> to vector<1x64xf32>
    %cst_140 = arith.constant 9.99999974E-6 : f32
    %384 = vector.broadcast %cst_140 : f32 to vector<1x64xf32>
    %385 = arith.addf %382, %384 : vector<1x64xf32>
    %386 = math.rsqrt %385 : vector<1x64xf32>
    %387 = arith.mulf %383, %386 : vector<1x64xf32>
    %388 = vector.extract_strided_slice %363 {offsets = [2, 0], sizes = [1, 64], strides = [1, 1]} : vector<3x64xf32> to vector<1x64xf32>
    %389 = arith.mulf %376, %387 : vector<1x64xf32>
    %390 = arith.subf %388, %389 : vector<1x64xf32>
    %391 = vector.broadcast %387 : vector<1x64xf32> to vector<16x64xf32>
    %392 = arith.mulf %369, %391 : vector<16x64xf32>
    %393 = vector.broadcast %390 : vector<1x64xf32> to vector<16x64xf32>
    %394 = arith.addf %392, %393 : vector<16x64xf32>
    %395 = arith.truncf %394 : vector<16x64xf32> to vector<16x64xbf16>
    %c0_141 = arith.constant 0 : index
    %c0_142 = arith.constant 0 : index
    %396 = vector.load %arg26[%c0_141, %c0_142] : memref<64x128xbf16, #tpu.memory_space<vmem>>, vector<64x128xbf16>
    %cst_143 = arith.constant dense<0.000000e+00> : vector<16x128xf32>
    %397 = tpu.matmul %395, %396, %cst_143 {dimension_numbers = #tpu.dot_dimension_numbers<[1], [0], [0], [1], [0, 0, 1, 1], [], []>} : vector<16x64xbf16>, vector<64x128xbf16>, vector<16x128xf32> -> vector<16x128xf32>
    %c0_144 = arith.constant 0 : index
    %c0_145 = arith.constant 0 : index
    %398 = vector.load %arg27[%c0_144, %c0_145] : memref<1x128xf32, #tpu.memory_space<vmem>>, vector<1x128xf32>
    %399 = vector.broadcast %398 : vector<1x128xf32> to vector<16x128xf32>
    %400 = arith.addf %397, %399 : vector<16x128xf32>
    %401 = math.tanh %400 : vector<16x128xf32>
    %c0_146 = arith.constant 0 : index
    %c0_147 = arith.constant 0 : index
    %402 = vector.load %arg28[%c0_146, %c0_147] : memref<16x128xf32, #tpu.memory_space<vmem>>, vector<16x128xf32>
    tpu.vector_store %arg28[%c0_146, %c0_147], %401 {strides = array<i32>} : memref<16x128xf32, #tpu.memory_space<vmem>>, vector<16x128xf32>,
    return
  }
}

</mosaic_0001>

<bundles_post_ra>
// kernel: unet_diffusion_forward.1
= control target key start
LH: loop header
LB: loop body
LE: loop exit
PB: predicated region body
PF: predicated region fallthrough
CT: control target
= control target key end

     0   :  { %s7329_s0 = inlined_call_operand.vmem [shape: f32[16,128], index: 0, kind: input, shape index: {}]   ;;  %s7330_s1 = inlined_call_operand.vmem [shape: bf16[128,64], index: 1, kind: input, shape index: {}]   ;;  %s7331_s2 = inlined_call_operand.hbm [shape: f32[3,64], index: 2, kind: input, shape index: {}]   ;;  %s7332_s3 = inlined_call_operand.vmem [shape: bf16[64,128], index: 3, kind: input, shape index: {}]   ;;  %s7333_s4 = inlined_call_operand.hbm [shape: f32[3,128], index: 4, kind: input, shape index: {}]   ;;  %s7334_s5 = inlined_call_operand.vmem [shape: bf16[128,256], index: 5, kind: input, shape index: {}]   ;;  %s7335_s6 = inlined_call_operand.vmem [shape: f32[3,256], index: 6, kind: input, shape index: {}]   ;;  %s7336_s7 = inlined_call_operand.vmem [shape: bf16[256,512], index: 7, kind: input, shape index: {}]   ;;  %s7337_s8 = inlined_call_operand.hbm [shape: f32[3,512], index: 8, kind: input, shape index: {}]   ;;  %s7338_s9 = inlined_call_operand.vmem [shape: bf16[512,64], index: 9, kind: input, shape index: {}]   ;;  %s7339_s10 = inlined_call_operand.hbm [shape: f32[3,64], index: 10, kind: input, shape index: {}]   ;;  %s7340_s11 = inlined_call_operand.vmem [shape: bf16[64,256], index: 11, kind: input, shape index: {}]   ;;  %s7341_s12 = inlined_call_operand.hbm [shape: f32[3,256], index: 12, kind: input, shape index: {}]   ;;  %s7342_s13 = inlined_call_operand.vmem [shape: bf16[256,256], index: 13, kind: input, shape index: {}]   ;;  %s7343_s14 = inlined_call_operand.hbm [shape: bf16[512,256], index: 14, kind: input, shape index: {}]   ;;  %s7344_s15 = inlined_call_operand.hbm [shape: f32[3,256], index: 15, kind: input, shape index: {}]   ;;  %s7345_s16 = inlined_call_operand.vmem [shape: bf16[256,128], index: 16, kind: input, shape index: {}]   ;;  %s7346_s17 = inlined_call_operand.hbm [shape: f32[3,128], index: 17, kind: input, shape index: {}]   ;;  %s7347_s18 = inlined_call_operand.vmem [shape: bf16[128,128], index: 18, kind: input, shape index: {}]   ;;  %s7348_s19 = inlined_call_operand.hbm [shape: bf16[256,128], index: 19, kind: input, shape index: {}]   ;;  %s7349_s20 = inlined_call_operand.hbm [shape: f32[3,128], index: 20, kind: input, shape index: {}]   ;;  %s7350_s21 = inlined_call_operand.vmem [shape: bf16[128,64], index: 21, kind: input, shape index: {}]   ;;  %s7351_s22 = inlined_call_operand.hbm [shape: f32[3,64], index: 22, kind: input, shape index: {}]   ;;  %s7352_s23 = inlined_call_operand.hbm [shape: bf16[64,64], index: 23, kind: input, shape index: {}]   ;;  %s7353_s24 = inlined_call_operand.vmem [shape: bf16[128,64], index: 24, kind: input, shape index: {}]   ;;  %s7354_s25 = inlined_call_operand.hbm [shape: f32[3,64], index: 25, kind: input, shape index: {}]   ;;  %s7355_s26 = inlined_call_operand.hbm [shape: bf16[64,128], index: 26, kind: input, shape index: {}]   ;;  %s7356_s27 = inlined_call_operand.hbm [shape: f32[1,128], index: 27, kind: input, shape index: {}]   ;;  %s7357_s28 = inlined_call_operand.vmem [shape: f32[16,128], index: 28, kind: output, shape index: {}]  }
   0x1   :  { %7366 = sst [smem:[#allocation33_spill]] %s7329_s0 }
   0x2   :  { %7367 = sst [smem:[#allocation34_spill]] %s7330_s1 }
   0x3   :  { %7368 = sst [smem:[#allocation35_spill]] %s7331_s2 }
   0x4   :  { %7369 = sst [smem:[#allocation36_spill]] %s7332_s3 }
   0x5   :  { %7370 = sst [smem:[#allocation37_spill]] %s7333_s4 }
   0x6   :  { %7371 = sst [smem:[#allocation38_spill]] %s7334_s5 }
   0x7   :  { %7372 = sst [smem:[#allocation39_spill]] %s7335_s6 }
   0x8   :  { %7373 = sst [smem:[#allocation40_spill]] %s7336_s7 }
   0x9   :  { %7374 = sst [smem:[#allocation41_spill]] %s7337_s8 }
   0xa   :  { %7375 = sst [smem:[#allocation42_spill]] %s7338_s9 }
   0xb   :  { %7376 = sst [smem:[#allocation43_spill]] %s7339_s10 }
   0xc   :  { %7377 = sst [smem:[#allocation44_spill]] %s7340_s11 }
   0xd   :  { %7378 = sst [smem:[#allocation45_spill]] %s7341_s12 }
   0xe   :  { %7379 = sst [smem:[#allocation46_spill]] %s7357_s28 }
   0xf   :  { %33 = vsyncpa [#allocation3], 0 }
  0x10   :  { %34 = vsyncpa [#allocation5], 0 }
  0x11   :  { %35 = vsyncpa [#allocation8], 0 }
  0x12   :  { %36 = vsyncpa [#allocation11], 0 }
  0x13   :  { %37 = vsyncpa [#allocation14], 0 }
  0x14   :  { %38 = vsyncpa [#allocation17], 0 }
  0x15   :  { %39 = vsyncpa [#allocation20], 0  ;;  %s7380_s9 = sld [smem:[#allocation37_spill]] }
  0x1b   :  { %s63_s30 = sshll.u32 %s7380_s9, 4  ;;  %s64_s30 = int_to_ptr.hbm [resolvable:$true] %s63_s30 }
  0x1c   :  { %40 = vsyncpa [#allocation23], 0  ;;  %s5732_s3 = smov [#allocation4]   ;;  %s7381_s11 = sld [smem:[#allocation43_spill]] }
  0x1d   :  { %s65_s6 = sshll.u32 %s5732_s3, 4  ;;  %s5733_s2 = smov [#allocation7]   ;;  %s66_s6 = int_to_ptr.vmem [resolvable:$true] %s65_s6 }
  0x1e   :  { %68 = dma.hbm_to_vmem [thread:$0]  %s64_s30, 64, %s66_s6, [#allocation5]  }
  0x1f   :  { %s95_s7 = sshll.u32 %s5733_s2, 4  ;;  %s118_s4 = sshll.u32 %s7343_s14, 4  ;;  %s96_s7 = int_to_ptr.vmem [resolvable:$true] %s95_s7  ;;  %s119_s4 = int_to_ptr.hbm [resolvable:$true] %s118_s4 }
  0x20   :  { %s5734_s8 = smov [#allocation10]   ;;  %s145_s28 = sshll.u32 %s7346_s17, 4  ;;  %s146_s28 = int_to_ptr.hbm [resolvable:$true] %s145_s28 }
  0x21   :  { %s120_s5 = sshll.u32 %s5734_s8, 4  ;;  %s5735_s10 = smov 128   ;;  %s121_s5 = int_to_ptr.vmem [resolvable:$true] %s120_s5 }
  0x22   :  { %s93_s29 = sshll.u32 %s7381_s11, 4  ;;  %s5736_s0 = smov 8   ;;  %s94_s29 = int_to_ptr.hbm [resolvable:$true] %s93_s29 }
  0x23   :  { %98 = dma.hbm_to_vmem [thread:$0]  %s94_s29, 64, %s96_s7, [#allocation8]  }
  0x24   :  { %126 = dma.hbm_to_vmem [thread:$0]  %s119_s4, 8192, %s121_s5, [#allocation11], %s5735_s10, %s5735_s10, %s5736_s0  }
  0x25   :  { %s5737_s30 = smov [#allocation13]   ;;  %s171_s14 = sshll.u32 %s7349_s20, 4  ;;  %s172_s14 = int_to_ptr.hbm [resolvable:$true] %s171_s14 }
  0x26   :  { %s147_s6 = sshll.u32 %s5737_s30, 4  ;;  %s5738_s29 = smov [#allocation16]   ;;  %s148_s6 = int_to_ptr.vmem [resolvable:$true] %s147_s6 }
  0x27   :  { %150 = dma.hbm_to_vmem [thread:$0]  %s146_s28, 64, %s148_s6, [#allocation14]  }
  0x28   :  { %s173_s7 = sshll.u32 %s5738_s29, 4  ;;  %s194_s17 = sshll.u32 %s7352_s23, 4  ;;  %s174_s7 = int_to_ptr.vmem [resolvable:$true] %s173_s7  ;;  %s195_s17 = int_to_ptr.hbm [resolvable:$true] %s194_s17 }
  0x29   :  { %176 = dma.hbm_to_vmem [thread:$0]  %s172_s14, 64, %s174_s7, [#allocation17]  }
  0x2a   :  { %s5739_s4 = smov [#allocation19]   ;;  %s220_s3 = sshll.u32 %s7355_s26, 4  ;;  %s221_s3 = int_to_ptr.hbm [resolvable:$true] %s220_s3 }
  0x2b   :  { %s196_s8 = sshll.u32 %s5739_s4, 4  ;;  %s5740_s20 = smov 64   ;;  %s197_s8 = int_to_ptr.vmem [resolvable:$true] %s196_s8 }
  0x2c   :  { %s5741_s10 = smov 4   ;;  %s7382_s30 = sld [smem:[#allocation35_spill]] }
  0x2d   :  { %202 = dma.hbm_to_vmem [thread:$0]  %s195_s17, 512, %s197_s8, [#allocation20], %s5740_s20, %s5740_s20, %s5741_s10  }
  0x2e   :  { %s5742_s6 = smov [#allocation22]   ;;  %s5743_s26 = smov [#allocation2]  }
  0x2f   :  { %s222_s11 = sshll.u32 %s5742_s6, 4  ;;  %s52_s2 = sshll.u32 %s5743_s26, 4  ;;  %s223_s11 = int_to_ptr.vmem [resolvable:$true] %s222_s11  ;;  %s53_s2 = int_to_ptr.vmem [resolvable:$true] %s52_s2 }
  0x30   :  { %228 = dma.hbm_to_vmem [thread:$0]  %s221_s3, 512, %s223_s11, [#allocation23], %s5740_s20, %s5740_s20, %s5741_s10  }
  0x31   :  { %s7383_s7 = sld [smem:[#allocation41_spill]]  ;;  %s5744_s5 = smov [#allocation6]  }
  0x32   :  { %s50_s23 = sshll.u32 %s7382_s30, 4  ;;  %s7384_s4 = sld [smem:[#allocation45_spill]]  ;;  %s51_s23 = int_to_ptr.hbm [resolvable:$true] %s50_s23 }
  0x33   :  { %55 = dma.hbm_to_vmem [thread:$0]  %s51_s23, 64, %s53_s2, [#allocation3]  }
  0x34   :  { %s82_s9 = sshll.u32 %s5744_s5, 4  ;;  %s5745_s28 = smov [#allocation9]   ;;  %s83_s9 = int_to_ptr.vmem [resolvable:$true] %s82_s9 }
  0x35   :  { %s108_s3 = sshll.u32 %s5745_s28, 4  ;;  %s132_s6 = sshll.u32 %s7344_s15, 4  ;;  %s109_s3 = int_to_ptr.vmem [resolvable:$true] %s108_s3  ;;  %s133_s6 = int_to_ptr.hbm [resolvable:$true] %s132_s6 }
  0x36   :  { %s157_s26 = sshll.u32 %s7348_s19, 4  ;;  %s5746_s2 = smov [#allocation12]   ;;  %s158_s26 = int_to_ptr.hbm [resolvable:$true] %s157_s26 }
  0x37   :  { %s80_s12 = sshll.u32 %s7383_s7, 4  ;;  %s134_s14 = sshll.u32 %s5746_s2, 4  ;;  %s81_s12 = int_to_ptr.hbm [resolvable:$true] %s80_s12  ;;  %s135_s14 = int_to_ptr.vmem [resolvable:$true] %s134_s14 }
  0x38   :  { %s106_s8 = sshll.u32 %s7384_s4, 4  ;;  %s5747_s29 = smov [#allocation15]   ;;  %s107_s8 = int_to_ptr.hbm [resolvable:$true] %s106_s8 }
  0x39   :  { %85 = dma.hbm_to_vmem [thread:$0]  %s81_s12, 256, %s83_s9, [#allocation5]  }
  0x3a   :  { %111 = dma.hbm_to_vmem [thread:$0]  %s107_s8, 128, %s109_s3, [#allocation8]  }
  0x3b   :  { %137 = dma.hbm_to_vmem [thread:$0]  %s133_s6, 128, %s135_s14, [#allocation11]  }
  0x3c   :  { %s159_s7 = sshll.u32 %s5747_s29, 4  ;;  %s184_s17 = sshll.u32 %s7351_s22, 4  ;;  %s160_s7 = int_to_ptr.vmem [resolvable:$true] %s159_s7  ;;  %s185_s17 = int_to_ptr.hbm [resolvable:$true] %s184_s17 }
  0x3d   :  { %165 = dma.hbm_to_vmem [thread:$0]  %s158_s26, 2048, %s160_s7, [#allocation14], %s5740_s20, %s5740_s20, %s5741_s10  }
  0x3e   :  { %s210_s19 = sshll.u32 %s7354_s25, 4  ;;  %s5748_s8 = smov [#allocation18]   ;;  %s211_s19 = int_to_ptr.hbm [resolvable:$true] %s210_s19 }
  0x3f   :  { %s186_s5 = sshll.u32 %s5748_s8, 4  ;;  %s5749_s9 = smov [#allocation21]   ;;  %s187_s5 = int_to_ptr.vmem [resolvable:$true] %s186_s5 }
  0x40   :  { %189 = dma.hbm_to_vmem [thread:$0]  %s185_s17, 64, %s187_s5, [#allocation17]  }
  0x41   :  { %s212_s28 = sshll.u32 %s5749_s9, 4  ;;  %s234_s22 = sshll.u32 %s7356_s27, 4  ;;  %s213_s28 = int_to_ptr.vmem [resolvable:$true] %s212_s28  ;;  %s235_s22 = int_to_ptr.hbm [resolvable:$true] %s234_s22 }
  0x42   :  { %215 = dma.hbm_to_vmem [thread:$0]  %s211_s19, 64, %s213_s28, [#allocation20]  }
  0x43   :  { %s5750_s30 = smov [#allocation24]  }
  0x44   :  { %s236_s20 = sshll.u32 %s5750_s30, 4  ;;  %s237_s20 = int_to_ptr.vmem [resolvable:$true] %s236_s20 }
  0x45   :  { %239 = dma.hbm_to_vmem [thread:$0]  %s235_s22, 16, %s237_s20, [#allocation23]  }
  0x46   :  { %5716 = dma.done.wait [#allocation3], 64  }
  0x47   :  { %5717 = vsyncadd [#allocation3], 4294967232 }
  0x48   :  { %5718 = dma.done.wait [#allocation5], 320  }
  0x49   :  { %5719 = vsyncadd [#allocation5], 4294966976 }
  0x4a   :  { %5720 = dma.done.wait [#allocation8], 192  }
  0x4b   :  { %5721 = vsyncadd [#allocation8], 4294967104 }
  0x4c   :  { %5722 = dma.done.wait [#allocation11], 8320  }
  0x4d   :  { %5723 = vsyncadd [#allocation11], 4294958976 }
  0x4e   :  { %5724 = dma.done.wait [#allocation14], 2112  }
  0x4f   :  { %5725 = vsyncadd [#allocation14], 4294965184 }
  0x50   :  { %5726 = dma.done.wait [#allocation17], 128  }
  0x51   :  { %5727 = vsyncadd [#allocation17], 4294967168 }
  0x52   :  { %5728 = dma.done.wait [#allocation20], 576  }
  0x53   :  { %5729 = vsyncadd [#allocation20], 4294966720 }
  0x54   :  { %5730 = dma.done.wait [#allocation23], 528  }
  0x55   :  { %5731 = vsyncadd [#allocation23], 4294966768  ;;  %s7385_s10 = sld [smem:[#allocation34_spill]]  ;;  %v320_v11 = vld [vmem:[#allocation2] sm:$0x7]  ;;  %vm388_vm0 = vcmask 523264  }
  0x56   :  { %s7386_s9 = sld [smem:[#allocation33_spill]]  ;;  %v321_v12 = vperm.slane %v320_v11, 0  ;;  %vm745_vm10 = vcmask 1043456  }
  0x57   :  { %s7387_s30 = sld [smem:[#allocation36_spill]] }
  0x58   :  { %s7388_s2 = sld [smem:[#allocation38_spill]] }
  0x59   :  { %s7389_s3 = sld [smem:[#allocation39_spill]] }
  0x5a   :  { %s7393_s11 = sld [smem:[#allocation42_spill]] }
  0x5b   :  { %v5013_v0 = vld [vmem:[%s7385_s10 + $0x38] sm:$0xff]  ;;  %v5012_v1 = vld [vmem:[%s7385_s10 + $0x30] sm:$0xff]  ;;  %v5011_v2 = vld [vmem:[%s7385_s10 + $0x28] sm:$0xff]  ;;  %s7395_s8 = sld [smem:[#allocation46_spill]] }
  0x5c   :  { %370 = vmatpush.bf16.msra.mxu0 %v5013_v0  ;;  %v5010_v3 = vld [vmem:[%s7385_s10 + $0x20] sm:$0xff]  ;;  %v5009_v4 = vld [vmem:[%s7385_s10 + $0x18] sm:$0xff]  ;;  %v5008_v5 = vld [vmem:[%s7385_s10 + $0x10] sm:$0xff] }
  0x5d   :  { %v5007_v6 = vld [vmem:[%s7385_s10 + $0x8] sm:$0xff]  ;;  %v5006_v7 = vld [vmem:[%s7385_s10] sm:$0xff]  ;;  %v5017_v34 = vld [vmem:[%s7387_s30 + $0x18] sm:$0xff] }
  0x5e   :  { %v301_v8 = vld [vmem:[%s7386_s9] sm:$0xff]  ;;  %v302_v9 = vld [vmem:[%s7386_s9 + $0x8] sm:$0xff]  ;;  %479 = vmatpush.bf16.msra.mxu1 %v5017_v34  ;;  %v5016_v39 = vld [vmem:[%s7387_s30 + $0x10] sm:$0xff]  ;;  %s7394_s9 = sld [smem:[#allocation44_spill]] }
  0x5f   :  { %v303_v10 = vpack.c.bf16 %v302_v9, %v301_v8  ;;  %v5015_v44 = vld [vmem:[%s7387_s30 + $0x8] sm:$0xff]  ;;  %v5014_v47 = vld [vmem:[%s7387_s30] sm:$0xff]  ;;  %v3940_v9 = vld [vmem:[%s7388_s2 + $0x70] sm:$0xf]  ;;  %s7390_s30 = sld [smem:[#allocation40_spill]] }
  0x60   :  { %371 = vmatpush.bf16.msra.mxu0 %v5012_v1 }
  0x62   :  { %480 = vmatpush.bf16.msra.mxu1 %v5016_v39  ;;  %v5027_v39 = vld [vmem:[%s7388_s2 + $0x44] sm:$0xf0] }
  0x64   :  { %372 = vmatpush.bf16.msra.mxu0 %v5011_v2 }
  0x66   :  { %481 = vmatpush.bf16.msra.mxu1 %v5015_v44 }
  0x68   :  { %373 = vmatpush.bf16.msra.mxu0 %v5010_v3 }
  0x6a   :  { %482 = vmatpush.bf16.msra.mxu1 %v5014_v47 }
  0x6c   :  { %374 = vmatpush.bf16.msra.mxu0 %v5009_v4 }
  0x70   :  { %375 = vmatpush.bf16.msra.mxu0 %v5008_v5  ;;  %v5997_v5 = vld [vmem:[#allocation4] sm:$0x7] }
  0x74   :  { %376 = vmatpush.bf16.msra.mxu0 %v5007_v6  ;;  %v447_v6 = vperm.slane %v5997_v5, 0 }
  0x78   :  { %377 = vmatpush.bf16.msra.mxu0 %v5006_v7 }
  0x7b   :  { %378 = vmatmul.bf16.vlgmr.msra.gmra.mxu0 %v303_v10  ;;  %v5033_v10 = vld [vmem:[%s7388_s2 + $0x74] sm:$0xf0] }
  0xf8   :  { %v379_v13 = vpop.f32.mrf.mxu0 }
  0xf9   :  { %v380_v14 = vadd.f32 %v379_v13, %v321_v12  ;;  %v3942_v13 = vld [vmem:[%s7388_s2 + $0x78] sm:$0xf0] }
  0xfb   :  { %v384_v15 = vmul.f32 0.01, %v380_v14 }
  0xfd   :  { %v386_v17 = vmax.f32 %v380_v14, %v384_v15 }
  0xff   :  { %v398_v20 = vmul.f32 %v386_v17, %v386_v17  ;;  %v389_v22 = vsel %vm388_vm0, %v386_v17, 0.0 }
 0x100   :  { %v381_v16 = vpop.f32.mrf.mxu0 }
 0x101   :  { %v382_v18 = vadd.f32 %v381_v16, %v321_v12  ;;  %v400_v26 = vsel %vm388_vm0, %v398_v20, 0.0  ;;  %v3941_v12 = vor.u32 %v5033_v10, %v3940_v9  ;;  %v5030_v20 = vld [vmem:[%s7388_s2 + $0x64] sm:$0xf]  ;;  %v3894_v9 = vld [vmem:[%s7388_s2 + $0x18] sm:$0xf0] }
 0x102   :  { %v3884_v10 = vld [vmem:[%s7388_s2] sm:$0xf] }
 0x103   :  { %v385_v19 = vmul.f32 0.01, %v382_v18  ;;  %642 = vmatpush.bf16.msra.mxu2 %v3941_v12 }
 0x105   :  { %v387_v21 = vmax.f32 %v382_v18, %v385_v19  ;;  %v3932_v18 = vld [vmem:[%s7388_s2 + $0x60] sm:$0xf]  ;;  %v5031_v19 = vld [vmem:[%s7388_s2 + $0x64] sm:$0xf0] }
 0x107   :  { %v390_v23 = vsel %vm388_vm0, %v387_v21, 0.0  ;;  %v399_v24 = vmul.f32 %v387_v21, %v387_v21 }
 0x108   :  { %v391_v25 = vadd.f32 %v390_v23, %v389_v22  ;;  %v3934_v22 = vld [vmem:[%s7388_s2 + $0x68] sm:$0xf0] }
 0x109   :  { %v401_v27 = vsel %vm388_vm0, %v399_v24, 0.0 }
 0x10a   :  { %v392_v28 = vrot.slane %v391_v25, 4  ;;  %v402_v29 = vadd.f32 %v401_v27, %v400_v26  ;;  %v3924_v27 = vld [vmem:[%s7388_s2 + $0x50] sm:$0xf] }
 0x10c   :  { %v393_v30 = vadd.f32 %v392_v28, %v391_v25  ;;  %v403_v31 = vrot.slane %v402_v29, 4  ;;  %v3937_v25 = vor.u32 %v5030_v20, %v3934_v22  ;;  %v5029_v28 = vld [vmem:[%s7388_s2 + $0x54] sm:$0xf0] }
 0x10e   :  { %v394_v32 = vrot.slane %v393_v30, 2  ;;  %v404_v33 = vadd.f32 %v403_v31, %v402_v29  ;;  %v5028_v29 = vld [vmem:[%s7388_s2 + $0x54] sm:$0xf]  ;;  %v3926_v31 = vld [vmem:[%s7388_s2 + $0x58] sm:$0xf0] }
 0x110   :  { %v395_v35 = vadd.f32 %v394_v32, %v393_v30  ;;  %v405_v36 = vrot.slane %v404_v33, 2  ;;  %v3925_v30 = vor.u32 %v5029_v28, %v3924_v27 }
 0x112   :  { %v396_v37 = vrot.slane %v395_v35, 1  ;;  %v406_v38 = vadd.f32 %v405_v36, %v404_v33 }
 0x114   :  { %v397_v40 = vadd.f32 %v396_v37, %v395_v35  ;;  %v407_v41 = vrot.slane %v406_v38, 1  ;;  %v3929_v35 = vor.u32 %v5028_v29, %v3926_v31 }
 0x116   :  { %v408_v42 = vadd.f32 %v407_v41, %v406_v38  ;;  %v409_v43 = vmul.f32 0.0625, %v397_v40  ;;  %v3916_v38 = vld [vmem:[%s7388_s2 + $0x40] sm:$0xf]  ;;  %v5026_v41 = vld [vmem:[%s7388_s2 + $0x44] sm:$0xf] }
 0x117   :  { %v3917_v40 = vor.u32 %v5027_v39, %v3916_v38 }
 0x118   :  { %v410_v45 = vmul.f32 0.0625, %v408_v42  ;;  %v411_v46 = vmul.f32 %v409_v43, %v409_v43  ;;  %v3918_v42 = vld [vmem:[%s7388_s2 + $0x48] sm:$0xf0] }
 0x11a   :  { %v412_v48 = vsub.f32 %v410_v45, %v411_v46  ;;  %v3921_v45 = vor.u32 %v5026_v41, %v3918_v42  ;;  %v6117_v42 = vld [vmem:[%s7389_s3] sm:$0x77] }
 0x11c   :  { %v413_v49 = vmax.f32 %v412_v48, 0.0  ;;  %v3908_v48 = vld [vmem:[%s7388_s2 + $0x30] sm:$0xf] }
 0x11e   :  { %v414_v50 = vadd.f32 1e-05, %v413_v49  ;;  %v5025_v49 = vld [vmem:[%s7388_s2 + $0x34] sm:$0xf0] }
 0x120   :  { %5318 = vrsqrt.f32 %v414_v50  ;;  %vm421_vm2 = vweird.f32 %v414_v50 }
 0x126   :  { %v5319_v51 = vpop.eup %5318 }
 0x127   :  { %v416_v52 = vmul.f32 %v5319_v51, %v414_v50  ;;  %vm422_vm1 = vweird.f32 %v5319_v51  ;;  %v3909_v50 = vor.u32 %v5025_v49, %v3908_v48 }
 0x128   :  { %vm423_vm3 = vmor %vm421_vm2, %vm422_vm1 }
 0x129   :  { %v417_v53 = vmul.f32 %v5319_v51, %v416_v52  ;;  %v3910_v52 = vld [vmem:[%s7388_s2 + $0x38] sm:$0xf0] }
 0x12b   :  { %v418_v54 = vmul.f32 0.5, %v417_v53 }
 0x12d   :  { %v419_v55 = vsub.f32 1.5, %v418_v54 }
 0x12f   :  { %v420_v56 = vmul.f32 %v5319_v51, %v419_v55 }
 0x131   :  { %v424_v57 = vsel %vm423_vm3, %v5319_v51, %v420_v56  ;;  %v5024_v51 = vld [vmem:[%s7388_s2 + $0x34] sm:$0xf] }
 0x132   :  { %v425_v58 = vmul.f32 %v424_v57, %v320_v11  ;;  %v3913_v55 = vor.u32 %v5024_v51, %v3910_v52  ;;  %v5064_v51 = vld [vmem:[%s7390_s30 + $0xec] sm:$0xf0]  ;;  %v4188_v52 = vld [vmem:[%s7390_s30 + $0x1e0] sm:$0xf] }
 0x134   :  { %v426_v59 = vmul.f32 %v425_v58, %v409_v43  ;;  %v431_v60 = vperm.slane %v425_v58, 1  ;;  %v3900_v58 = vld [vmem:[%s7388_s2 + $0x20] sm:$0xf] }
 0x136   :  { %v428_v61 = vrot.slane %v426_v59, 7  ;;  %v433_v63 = vmul.f32 %v431_v60, %v387_v21  ;;  %v432_v0 = vmul.f32 %v431_v60, %v386_v17  ;;  %v3933_v21 = vor.u32 %v5031_v19, %v3932_v18  ;;  %v5023_v59 = vld [vmem:[%s7388_s2 + $0x24] sm:$0xf0] }
 0x137   :  { %v3901_v60 = vor.u32 %v5023_v59, %v3900_v58  ;;  %v5094_v59 = vld [vmem:[%s7390_s30 + $0x1e4] sm:$0xf] }
 0x138   :  { %v430_v62 = vsub.f32 %v320_v11, %v428_v61  ;;  %v5032_v11 = vld [vmem:[%s7388_s2 + $0x74] sm:$0xf]  ;;  %643 = vmatpush.bf16.msra.mxu2 %v3933_v21  ;;  %v5022_v61 = vld [vmem:[%s7388_s2 + $0x24] sm:$0xf] }
 0x139   :  { %v3945_v15 = vor.u32 %v5032_v11, %v3942_v13 }
 0x13a   :  { %v434_v1 = vperm.slane %v430_v62, 2  ;;  %v3902_v62 = vld [vmem:[%s7388_s2 + $0x28] sm:$0xf0] }
 0x13b   :  { %656 = vmatpush.bf16.msra.mxu3 %v3945_v15  ;;  %v5018_v15 = vld [vmem:[%s7388_s2 + $0x4] sm:$0xf] }
 0x13c   :  { %v435_v2 = vadd.f32 %v434_v1, %v432_v0  ;;  %v436_v3 = vadd.f32 %v434_v1, %v433_v63  ;;  %644 = vmatpush.bf16.msra.mxu2 %v3925_v30  ;;  %v3905_v1 = vor.u32 %v5022_v61, %v3902_v62 }
 0x13e   :  { %v437_v4 = vpack.c.bf16 %v436_v3, %v435_v2 }
 0x13f   :  { %657 = vmatpush.bf16.msra.mxu3 %v3937_v25 }
 0x140   :  { %3881 = vmatmul.msk.bf16.vlgmr.msra.gmra.mxu1 %vm388_vm0, %v437_v4  ;;  %645 = vmatpush.bf16.msra.mxu2 %v3917_v40  ;;  %v3892_v4 = vld [vmem:[%s7388_s2 + $0x10] sm:$0xf] }
 0x143   :  { %658 = vmatpush.bf16.msra.mxu3 %v3929_v35 }
 0x144   :  { %646 = vmatpush.bf16.msra.mxu2 %v3909_v50  ;;  %v4060_v50 = vld [vmem:[%s7390_s30 + $0xe0] sm:$0xf] }
 0x147   :  { %659 = vmatpush.bf16.msra.mxu3 %v3921_v45 }
 0x148   :  { %647 = vmatpush.bf16.msra.mxu2 %v3901_v60  ;;  %v4190_v60 = vld [vmem:[%s7390_s30 + $0x1f0] sm:$0xf0] }
 0x14b   :  { %660 = vmatpush.bf16.msra.mxu3 %v3913_v55  ;;  %v5062_v55 = vld [vmem:[%s7390_s30 + $0xe4] sm:$0xf] }
 0x14f   :  { %661 = vmatpush.bf16.msra.mxu3 %v3905_v1 }
 0x1bd   :  { %v484_v7 = vpop.f32.mrf.mxu1 }
 0x1be   :  { %v485_v8 = vadd.f32 %v484_v7, %v447_v6 }
 0x1c0   :  { %v489_v14 = vmul.f32 0.01, %v485_v8 }
 0x1c2   :  { %v6024_v23 = vmax.f32 %v485_v8, %v489_v14  ;;  %v5020_v8 = vld [vmem:[%s7388_s2 + $0x14] sm:$0xf]  ;;  %v5019_v14 = vld [vmem:[%s7388_s2 + $0x4] sm:$0xf0] }
 0x1c3   :  { %v3897_v13 = vor.u32 %v5020_v8, %v3894_v9  ;;  %v5092_v9 = vld [vmem:[%s7390_s30 + $0x1cc] sm:$0xf0] }
 0x1c4   :  { %v500_v32 = vmul.f32 %v6024_v23, %v6024_v23 }
 0x1c5   :  { %v486_v16 = vpop.f32.mrf.mxu1  ;;  %662 = vmatpush.bf16.msra.mxu3 %v3897_v13 }
 0x1c6   :  { %v487_v17 = vadd.f32 %v486_v16, %v447_v6  ;;  %v5021_v6 = vld [vmem:[%s7388_s2 + $0x14] sm:$0xf0]  ;;  %v3885_v16 = vor.u32 %v5019_v14, %v3884_v10  ;;  %v5058_v10 = vld [vmem:[%s7390_s30 + $0xc4] sm:$0xf] }
 0x1c7   :  { %v3893_v7 = vor.u32 %v5021_v6, %v3892_v4  ;;  %v4172_v4 = vld [vmem:[%s7390_s30 + $0x1c0] sm:$0xf] }
 0x1c8   :  { %v490_v24 = vmul.f32 0.01, %v487_v17  ;;  %v4173_v14 = vor.u32 %v5092_v9, %v4172_v4  ;;  %v5080_v4 = vld [vmem:[%s7390_s30 + $0x16c] sm:$0xf0] }
 0x1c9   :  { %648 = vmatpush.bf16.msra.mxu2 %v3893_v7 }
 0x1ca   :  { %v6026_v26 = vmax.f32 %v487_v17, %v490_v24  ;;  %v3886_v17 = vld [vmem:[%s7388_s2 + $0x8] sm:$0xf0] }
 0x1cb   :  { %v3889_v19 = vor.u32 %v5018_v15, %v3886_v17  ;;  %v4174_v17 = vld [vmem:[%s7390_s30 + $0x1d0] sm:$0xf0] }
 0x1cc   :  { %v493_v33 = vadd.f32 %v6026_v26, %v6024_v23  ;;  %v501_v34 = vmul.f32 %v6026_v26, %v6026_v26 }
 0x1cd   :  { %649 = vmatpush.bf16.msra.mxu2 %v3885_v16  ;;  %663 = vmatpush.bf16.msra.mxu3 %v3889_v19  ;;  %v5090_v16 = vld [vmem:[%s7390_s30 + $0x1c4] sm:$0xf] }
 0x1ce   :  { %v494_v36 = vrot.slane %v493_v33, 4  ;;  %v502_v37 = vadd.f32 %v501_v34, %v500_v32 }
 0x1d0   :  { %v495_v43 = vadd.f32 %v494_v36, %v493_v33  ;;  %v503_v44 = vrot.slane %v502_v37, 4 }
 0x1d2   :  { %v496_v46 = vrot.slane %v495_v43, 2  ;;  %v504_v47 = vadd.f32 %v503_v44, %v502_v37 }
 0x1d4   :  { %v497_v53 = vadd.f32 %v496_v46, %v495_v43  ;;  %v505_v54 = vrot.slane %v504_v47, 2 }
 0x1d6   :  { %v498_v56 = vrot.slane %v497_v53, 1  ;;  %v506_v57 = vadd.f32 %v505_v54, %v504_v47  ;;  %v5096_v54 = vld [vmem:[%s7390_s30 + $0x1ec] sm:$0xf0] }
 0x1d8   :  { %v499_v63 = vadd.f32 %v498_v56, %v497_v53  ;;  %v507_v0 = vrot.slane %v506_v57, 1  ;;  %v4061_v53 = vor.u32 %v5064_v51, %v4060_v50  ;;  %v4062_v56 = vld [vmem:[%s7390_s30 + $0xf0] sm:$0xf0] }
 0x1d9   :  { %v4065_v58 = vor.u32 %v5062_v55, %v4062_v56  ;;  %v5082_v55 = vld [vmem:[%s7390_s30 + $0x184] sm:$0xf] }
 0x1da   :  { %v508_v2 = vadd.f32 %v507_v0, %v506_v57  ;;  %v509_v3 = vmul.f32 0.0625, %v499_v63  ;;  %v4189_v57 = vor.u32 %v5096_v54, %v4188_v52  ;;  %1183 = vmatpush.bf16.msrb.mxu1 %v4061_v53  ;;  %v4193_v63 = vor.u32 %v5094_v59, %v4190_v60  ;;  %v4014_v54 = vld [vmem:[%s7390_s30 + $0x90] sm:$0xf0] }
 0x1db   :  { %1211 = vmatpush.bf16.msrb.mxu2 %v4065_v58  ;;  %v4142_v58 = vld [vmem:[%s7390_s30 + $0x190] sm:$0xf0] }
 0x1dc   :  { %v510_v11 = vmul.f32 0.0625, %v508_v2  ;;  %v511_v12 = vmul.f32 %v509_v3, %v509_v3  ;;  %1197 = vmatpush.bf16.msrb.mxu0 %v4189_v57  ;;  %v4044_v2 = vld [vmem:[%s7390_s30 + $0xc0] sm:$0xf]  ;;  %1225 = vmatpush.bf16.msrb.mxu3 %v4193_v63 }
 0x1dd   :  { %v3996_v63 = vld [vmem:[%s7390_s30 + $0x60] sm:$0xf] }
 0x1de   :  { %v512_v18 = vsub.f32 %v510_v11, %v511_v12  ;;  %v4046_v11 = vld [vmem:[%s7390_s30 + $0xd0] sm:$0xf0] }
 0x1df   :  { %v4049_v15 = vor.u32 %v5058_v10, %v4046_v11 }
 0x1e0   :  { %v513_v20 = vmax.f32 %v512_v18, 0.0  ;;  %1198 = vmatpush.bf16.msrb.mxu0 %v4173_v14  ;;  %v5078_v14 = vld [vmem:[%s7390_s30 + $0x164] sm:$0xf] }
 0x1e1   :  { %1212 = vmatpush.bf16.msrb.mxu2 %v4049_v15 }
 0x1e2   :  { %v514_v21 = vadd.f32 1e-05, %v513_v20  ;;  %v4177_v20 = vor.u32 %v5090_v16, %v4174_v17  ;;  %v4126_v17 = vld [vmem:[%s7390_s30 + $0x170] sm:$0xf0] }
 0x1e4   :  { %5320 = vrsqrt.f32 %v514_v21  ;;  %vm521_vm5 = vweird.f32 %v514_v21  ;;  %1226 = vmatpush.bf16.msrb.mxu3 %v4177_v20 }
 0x1ea   :  { %v5321_v22 = vpop.eup %5320 }
 0x1eb   :  { %v516_v24 = vmul.f32 %v5321_v22, %v514_v21  ;;  %vm522_vm4 = vweird.f32 %v5321_v22  ;;  %v4028_v21 = vld [vmem:[%s7390_s30 + $0xa0] sm:$0xf] }
 0x1ec   :  { %vm523_vm6 = vmor %vm521_vm5, %vm522_vm4 }
 0x1ed   :  { %v517_v25 = vmul.f32 %v5321_v22, %v516_v24  ;;  %v4156_v24 = vld [vmem:[%s7390_s30 + $0x1a0] sm:$0xf] }
 0x1ef   :  { %v518_v27 = vmul.f32 0.5, %v517_v25 }
 0x1f1   :  { %v519_v28 = vsub.f32 1.5, %v518_v27 }
 0x1f3   :  { %v520_v29 = vmul.f32 %v5321_v22, %v519_v28 }
 0x1f5   :  { %v524_v30 = vsel %vm523_vm6, %v5321_v22, %v520_v29  ;;  %v5056_v22 = vld [vmem:[%s7390_s30 + $0xac] sm:$0xf0] }
 0x1f6   :  { %v525_v31 = vmul.f32 %v524_v30, %v5997_v5  ;;  %v4029_v28 = vor.u32 %v5056_v22, %v4028_v21  ;;  %v5088_v29 = vld [vmem:[%s7390_s30 + $0x1ac] sm:$0xf0]  ;;  %v5054_v30 = vld [vmem:[%s7390_s30 + $0xa4] sm:$0xf] }
 0x1f8   :  { %v526_v32 = vmul.f32 %v525_v31, %v509_v3  ;;  %v531_v33 = vperm.slane %v525_v31, 1  ;;  %v5060_v3 = vld [vmem:[%s7390_s30 + $0xcc] sm:$0xf0]  ;;  %v4030_v31 = vld [vmem:[%s7390_s30 + $0xb0] sm:$0xf0] }
 0x1f9   :  { %v4045_v8 = vor.u32 %v5060_v3, %v4044_v2  ;;  %v4124_v3 = vld [vmem:[%s7390_s30 + $0x160] sm:$0xf] }
 0x1fa   :  { %v528_v34 = vrot.slane %v526_v32, 7  ;;  %v533_v36 = vmul.f32 %v531_v33, %v6026_v26  ;;  %v532_v37 = vmul.f32 %v531_v33, %v6024_v23  ;;  %v557_v26 = vperm.slane %v6117_v42, 4 }
 0x1fb   :  { %1184 = vmatpush.bf16.msrb.mxu1 %v4045_v8  ;;  %v5046_v8 = vld [vmem:[%s7390_s30 + $0x64] sm:$0xf]  ;;  %v4125_v15 = vor.u32 %v5080_v4, %v4124_v3  ;;  %v5068_v4 = vld [vmem:[%s7390_s30 + $0x10c] sm:$0xf0] }
 0x1fc   :  { %v530_v35 = vsub.f32 %v5997_v5, %v528_v34  ;;  %v556_v5 = vperm.slane %v6117_v42, 0  ;;  %v561_v23 = vperm.slane %v557_v26, 0 }
 0x1fe   :  { %v534_v38 = vperm.slane %v530_v35, 2  ;;  %v560_v43 = vperm.slane %v556_v5, 0 }
 0x1ff   :  { %1185 = vmatpush.bf16.msrb.mxu1 %v4029_v28  ;;  %v4129_v28 = vor.u32 %v5078_v14, %v4126_v17  ;;  %v5066_v14 = vld [vmem:[%s7390_s30 + $0x104] sm:$0xf]  ;;  %v4068_v17 = vld [vmem:[%s7390_s30 + $0xe8] sm:$0xf] }
 0x200   :  { %v535_v39 = vadd.f32 %v534_v38, %v532_v37  ;;  %v536_v40 = vadd.f32 %v534_v38, %v533_v36  ;;  %v5086_v36 = vld [vmem:[%s7390_s30 + $0x1a4] sm:$0xf]  ;;  %v4158_v37 = vld [vmem:[%s7390_s30 + $0x1b0] sm:$0xf0]  ;;  %v4157_v38 = vor.u32 %v5088_v29, %v4156_v24 }
 0x202   :  { %v6110_v41 = vpack.c.bf16 %v536_v40, %v535_v39  ;;  %v4033_v39 = vor.u32 %v5054_v30, %v4030_v31  ;;  %v4161_v40 = vor.u32 %v5086_v36, %v4158_v37  ;;  %1199 = vmatpush.bf16.msrb.mxu0 %v4157_v38  ;;  %v4108_v30 = vld [vmem:[%s7390_s30 + $0x140] sm:$0xf]  ;;  %v5076_v31 = vld [vmem:[%s7390_s30 + $0x14c] sm:$0xf0]  ;;  %v5042_v36 = vld [vmem:[%s7390_s30 + $0x44] sm:$0xf] }
 0x203   :  { %v3982_v37 = vld [vmem:[%s7390_s30 + $0x50] sm:$0xf0]  ;;  %v4109_v38 = vor.u32 %v5076_v31, %v4108_v30  ;;  %v4070_v30 = vld [vmem:[%s7390_s30 + $0xf8] sm:$0xf0]  ;;  %v5095_v31 = vld [vmem:[%s7390_s30 + $0x1ec] sm:$0xf] }
 0x204   :  { %650 = vmatmul.bf16.vlgmr.msra.gmra.mxu2 %v6110_v41  ;;  %664 = vmatmul.bf16.vlgmr.msra.gmra.mxu3 %v6110_v41 }
 0x205   :  { %1213 = vmatpush.bf16.msrb.mxu2 %v4033_v39  ;;  %1227 = vmatpush.bf16.msrb.mxu3 %v4161_v40  ;;  %v3985_v39 = vor.u32 %v5042_v36, %v3982_v37  ;;  %v5074_v40 = vld [vmem:[%s7390_s30 + $0x144] sm:$0xf] }
 0x287   :  { %v651_v44 = vpop.f32.mrf.mxu2  ;;  %v665_v45 = vpop.f32.mrf.mxu3 }
 0x288   :  { %v652_v46 = vadd.f32 %v651_v44, %v560_v43  ;;  %v666_v47 = vadd.f32 %v665_v45, %v561_v23  ;;  %v4012_v44 = vld [vmem:[%s7390_s30 + $0x80] sm:$0xf]  ;;  %v5052_v45 = vld [vmem:[%s7390_s30 + $0x8c] sm:$0xf0] }
 0x28a   :  { %v670_v48 = vmul.f32 0.01, %v652_v46  ;;  %v671_v49 = vmul.f32 0.01, %v666_v47 }
 0x28c   :  { %v6154_v6 = vmax.f32 %v652_v46, %v670_v48  ;;  %v6156_v7 = vmax.f32 %v666_v47, %v671_v49  ;;  %v4013_v46 = vor.u32 %v5052_v45, %v4012_v44  ;;  %v4140_v47 = vld [vmem:[%s7390_s30 + $0x180] sm:$0xf]  ;;  %v5084_v48 = vld [vmem:[%s7390_s30 + $0x18c] sm:$0xf0]  ;;  %v5050_v49 = vld [vmem:[%s7390_s30 + $0x84] sm:$0xf] }
 0x28d   :  { %v4141_v56 = vor.u32 %v5084_v48, %v4140_v47  ;;  %v4017_v57 = vor.u32 %v5050_v49, %v4014_v54  ;;  %v3964_v45 = vld [vmem:[%s7390_s30 + $0x20] sm:$0xf] }
 0x28e   :  { %v692_v25 = vmul.f32 %v6154_v6, %v6154_v6  ;;  %v693_v27 = vmul.f32 %v6156_v7, %v6156_v7  ;;  %1186 = vmatpush.bf16.msrb.mxu1 %v4013_v46  ;;  %v5040_v46 = vld [vmem:[%s7390_s30 + $0x2c] sm:$0xf0]  ;;  %v4092_v49 = vld [vmem:[%s7390_s30 + $0x120] sm:$0xf] }
 0x28f   :  { %v653_v61 = vpop.f32.mrf.mxu2  ;;  %v667_v62 = vpop.f32.mrf.mxu3  ;;  %1200 = vmatpush.bf16.msrb.mxu0 %v4141_v56  ;;  %1214 = vmatpush.bf16.msrb.mxu2 %v4017_v57  ;;  %v3965_v48 = vor.u32 %v5040_v46, %v3964_v45  ;;  %v3966_v56 = vld [vmem:[%s7390_s30 + $0x30] sm:$0xf0]  ;;  %v5070_v57 = vld [vmem:[%s7390_s30 + $0x124] sm:$0xf]  ;;  %v4182_v45 = vld [vmem:[%s7390_s30 + $0x1d8] sm:$0xf0] }
 0x290   :  { %v654_v0 = vadd.f32 %v653_v61, %v560_v43  ;;  %v668_v1 = vadd.f32 %v667_v62, %v561_v23 }
 0x292   :  { %v672_v12 = vmul.f32 0.01, %v654_v0  ;;  %v673_v13 = vmul.f32 0.01, %v668_v1 }
 0x293   :  { %1201 = vmatpush.bf16.msrb.mxu0 %v4125_v15  ;;  %v4078_v15 = vld [vmem:[%s7390_s30 + $0x110] sm:$0xf0] }
 0x294   :  { %v6173_v18 = vmax.f32 %v654_v0, %v672_v12  ;;  %v6175_v19 = vmax.f32 %v668_v1, %v673_v13  ;;  %v5048_v0 = vld [vmem:[%s7390_s30 + $0x6c] sm:$0xf0]  ;;  %v4145_v1 = vor.u32 %v5082_v55, %v4142_v58  ;;  %v3998_v13 = vld [vmem:[%s7390_s30 + $0x70] sm:$0xf0] }
 0x295   :  { %v3997_v2 = vor.u32 %v5048_v0, %v3996_v63  ;;  %v4001_v16 = vor.u32 %v5046_v8, %v3998_v13  ;;  %v3948_v0 = vld [vmem:[%s7390_s30] sm:$0xf]  ;;  %v5034_v8 = vld [vmem:[%s7390_s30 + $0x4] sm:$0xf] }
 0x296   :  { %v678_v32 = vadd.f32 %v6173_v18, %v6154_v6  ;;  %v694_v33 = vmul.f32 %v6173_v18, %v6173_v18  ;;  %v685_v34 = vadd.f32 %v6175_v19, %v6156_v7  ;;  %v695_v35 = vmul.f32 %v6175_v19, %v6175_v19  ;;  %1228 = vmatpush.bf16.msrb.mxu3 %v4145_v1  ;;  %v5036_v1 = vld [vmem:[%s7390_s30 + $0xc] sm:$0xf0] }
 0x297   :  { %1187 = vmatpush.bf16.msrb.mxu1 %v3997_v2  ;;  %1215 = vmatpush.bf16.msrb.mxu2 %v4001_v16  ;;  %v4076_v2 = vld [vmem:[%s7390_s30 + $0x100] sm:$0xf]  ;;  %v3949_v3 = vor.u32 %v5036_v1, %v3948_v0  ;;  %v4081_v16 = vor.u32 %v5066_v14, %v4078_v15  ;;  %v5053_v0 = vld [vmem:[%s7390_s30 + $0x94] sm:$0xf0]  ;;  %v4148_v1 = vld [vmem:[%s7390_s30 + $0x188] sm:$0xf] }
 0x298   :  { %v679_v5 = vrot.slane %v678_v32, 4  ;;  %v696_v26 = vadd.f32 %v694_v33, %v692_v25  ;;  %v686_v43 = vrot.slane %v685_v34, 4  ;;  %v703_v23 = vadd.f32 %v695_v35, %v693_v27  ;;  %v3980_v25 = vld [vmem:[%s7390_s30 + $0x40] sm:$0xf]  ;;  %v5044_v27 = vld [vmem:[%s7390_s30 + $0x4c] sm:$0xf0]  ;;  %1202 = vmatpush.bf16.msrb.mxu0 %v4109_v38 }
 0x299   :  { %v3981_v29 = vor.u32 %v5044_v27, %v3980_v25  ;;  %v5097_v27 = vld [vmem:[%s7390_s30 + $0x1f4] sm:$0xf0]  ;;  %v4180_v38 = vld [vmem:[%s7390_s30 + $0x1c8] sm:$0xf]  ;;  %v4150_v15 = vld [vmem:[%s7390_s30 + $0x198] sm:$0xf0] }
 0x29a   :  { %v680_v50 = vadd.f32 %v679_v5, %v678_v32  ;;  %v697_v51 = vrot.slane %v696_v26, 4  ;;  %v687_v52 = vadd.f32 %v686_v43, %v685_v34  ;;  %v704_v53 = vrot.slane %v703_v23, 4  ;;  %1229 = vmatpush.bf16.msrb.mxu3 %v4129_v28  ;;  %v4110_v5 = vld [vmem:[%s7390_s30 + $0x150] sm:$0xf0] }
 0x29b   :  { %1188 = vmatpush.bf16.msrb.mxu1 %v3981_v29  ;;  %1216 = vmatpush.bf16.msrb.mxu2 %v3985_v39  ;;  %v4113_v47 = vor.u32 %v5074_v40, %v4110_v5  ;;  %v5063_v29 = vld [vmem:[%s7390_s30 + $0xec] sm:$0xf]  ;;  %v5093_v39 = vld [vmem:[%s7390_s30 + $0x1d4] sm:$0xf0] }
 0x29c   :  { %v681_v59 = vrot.slane %v680_v50, 2  ;;  %v698_v60 = vadd.f32 %v697_v51, %v696_v26  ;;  %v688_v61 = vrot.slane %v687_v52, 2  ;;  %v705_v62 = vadd.f32 %v704_v53, %v703_v23  ;;  %v5038_v51 = vld [vmem:[%s7390_s30 + $0x24] sm:$0xf]  ;;  %v5059_v40 = vld [vmem:[%s7390_s30 + $0xcc] sm:$0xf] }
 0x29d   :  { %v4181_v5 = vor.u32 %v5093_v39, %v4180_v38  ;;  %v3988_v38 = vld [vmem:[%s7390_s30 + $0x48] sm:$0xf] }
 0x29e   :  { %v682_v9 = vadd.f32 %v681_v59, %v680_v50  ;;  %v699_v10 = vrot.slane %v698_v60, 2  ;;  %v689_v11 = vadd.f32 %v688_v61, %v687_v52  ;;  %v706_v12 = vrot.slane %v705_v62, 2  ;;  %v5072_v50 = vld [vmem:[%s7390_s30 + $0x12c] sm:$0xf0]  ;;  %1230 = vmatpush.bf16.msrb.mxu3 %v4113_v47 }
 0x29f   :  { %1189 = vmatpush.bf16.msrb.mxu1 %v3965_v48  ;;  %v4093_v58 = vor.u32 %v5072_v50, %v4092_v49  ;;  %v3969_v59 = vor.u32 %v5038_v51, %v3966_v56  ;;  %v4036_v48 = vld [vmem:[%s7390_s30 + $0xa8] sm:$0xf]  ;;  %v5057_v49 = vld [vmem:[%s7390_s30 + $0xb4] sm:$0xf0]  ;;  %v5087_v56 = vld [vmem:[%s7390_s30 + $0x1ac] sm:$0xf] }
 0x2a0   :  { %v683_v20 = vrot.slane %v682_v9, 1  ;;  %v700_v21 = vadd.f32 %v699_v10, %v698_v60  ;;  %v690_v22 = vrot.slane %v689_v11, 1  ;;  %v707_v24 = vadd.f32 %v706_v12, %v705_v62  ;;  %v4094_v60 = vld [vmem:[%s7390_s30 + $0x130] sm:$0xf0]  ;;  %v4164_v50 = vld [vmem:[%s7390_s30 + $0x1a8] sm:$0xf] }
 0x2a1   :  { %v4097_v63 = vor.u32 %v5070_v57, %v4094_v60  ;;  %1203 = vmatpush.bf16.msrb.mxu0 %v4093_v58  ;;  %1217 = vmatpush.bf16.msrb.mxu2 %v3969_v59  ;;  %v4077_v12 = vor.u32 %v5068_v4, %v4076_v2  ;;  %v4037_v51 = vor.u32 %v5057_v49, %v4036_v48  ;;  %v4166_v57 = vld [vmem:[%s7390_s30 + $0x1b8] sm:$0xf0]  ;;  %v5085_v4 = vld [vmem:[%s7390_s30 + $0x194] sm:$0xf0]  ;;  %v5043_v48 = vld [vmem:[%s7390_s30 + $0x4c] sm:$0xf] }
 0x2a2   :  { %v684_v32 = vadd.f32 %v683_v20, %v682_v9  ;;  %v701_v33 = vrot.slane %v700_v21, 1  ;;  %v691_v34 = vadd.f32 %v690_v22, %v689_v11  ;;  %v708_v35 = vrot.slane %v707_v24, 1  ;;  %v3950_v9 = vld [vmem:[%s7390_s30 + $0x10] sm:$0xf0]  ;;  %v5065_v20 = vld [vmem:[%s7390_s30 + $0xf4] sm:$0xf0] }
 0x2a3   :  { %v3953_v13 = vor.u32 %v5034_v8, %v3950_v9  ;;  %1231 = vmatpush.bf16.msrb.mxu3 %v4097_v63  ;;  %1190 = vmatpush.bf16.msrb.mxu1 %v3949_v3  ;;  %v4069_v25 = vor.u32 %v5065_v20, %v4068_v17  ;;  %v4020_v63 = vld [vmem:[%s7390_s30 + $0x88] sm:$0xf]  ;;  %v5051_v8 = vld [vmem:[%s7390_s30 + $0x8c] sm:$0xf]  ;;  %v3990_v49 = vld [vmem:[%s7390_s30 + $0x58] sm:$0xf0] }
 0x2a4   :  { %v702_v26 = vadd.f32 %v701_v33, %v700_v21  ;;  %v6285_v43 = vmul.f32 0.0625, %v684_v32  ;;  %v709_v23 = vadd.f32 %v708_v35, %v707_v24  ;;  %v6287_v44 = vmul.f32 0.0625, %v691_v34  ;;  %v4196_v21 = vld [vmem:[%s7390_s30 + $0x1e8] sm:$0xf]  ;;  %v4198_v33 = vld [vmem:[%s7390_s30 + $0x1f8] sm:$0xf0] }
 0x2a5   :  { %1204 = vmatpush.bf16.msrb.mxu0 %v4077_v12  ;;  %1218 = vmatpush.bf16.msrb.mxu2 %v3953_v13  ;;  %v4197_v28 = vor.u32 %v5097_v27, %v4196_v21  ;;  %v4073_v32 = vor.u32 %v5063_v29, %v4070_v30  ;;  %v4052_v34 = vld [vmem:[%s7390_s30 + $0xc8] sm:$0xf]  ;;  %v5061_v35 = vld [vmem:[%s7390_s30 + $0xd4] sm:$0xf0]  ;;  %v4201_v36 = vor.u32 %v5095_v31, %v4198_v33  ;;  %v5083_v12 = vld [vmem:[%s7390_s30 + $0x18c] sm:$0xf] }
 0x2a6   :  { %v712_v52 = vmul.f32 0.0625, %v702_v26  ;;  %v714_v53 = vmul.f32 %v6285_v43, %v6285_v43  ;;  %v713_v54 = vmul.f32 0.0625, %v709_v23  ;;  %v715_v55 = vmul.f32 %v6287_v44, %v6287_v44  ;;  %v4054_v26 = vld [vmem:[%s7390_s30 + $0xd8] sm:$0xf0]  ;;  %v5091_v23 = vld [vmem:[%s7390_s30 + $0x1cc] sm:$0xf] }
 0x2a7   :  { %1239 = vmatpush.bf16.msra.mxu1 %v4069_v25  ;;  %1232 = vmatpush.bf16.msrb.mxu3 %v4081_v16  ;;  %v4053_v37 = vor.u32 %v5061_v35, %v4052_v34  ;;  %v4057_v46 = vor.u32 %v5059_v40, %v4054_v26  ;;  %v4185_v47 = vor.u32 %v5091_v23, %v4182_v45  ;;  %v4004_v21 = vld [vmem:[%s7390_s30 + $0x68] sm:$0xf]  ;;  %v5049_v25 = vld [vmem:[%s7390_s30 + $0x74] sm:$0xf0]  ;;  %v4006_v34 = vld [vmem:[%s7390_s30 + $0x78] sm:$0xf0] }
 0x2a8   :  { %v716_v61 = vsub.f32 %v712_v52, %v714_v53  ;;  %v717_v62 = vsub.f32 %v713_v54, %v715_v55  ;;  %v5089_v52 = vld [vmem:[%s7390_s30 + $0x1b4] sm:$0xf0]  ;;  %v5055_v53 = vld [vmem:[%s7390_s30 + $0xac] sm:$0xf]  ;;  %v4038_v54 = vld [vmem:[%s7390_s30 + $0xb8] sm:$0xf0]  ;;  %v4021_v3 = vor.u32 %v5053_v0, %v4020_v63  ;;  %v4153_v17 = vor.u32 %v5083_v12, %v4150_v15 }
 0x2a9   :  { %1253 = vmatpush.bf16.msra.mxu0 %v4197_v28  ;;  %1267 = vmatpush.bf16.msra.mxu2 %v4073_v32  ;;  %v4165_v55 = vor.u32 %v5089_v52, %v4164_v50  ;;  %v4041_v59 = vor.u32 %v5055_v53, %v4038_v54  ;;  %v4005_v28 = vor.u32 %v5049_v25, %v4004_v21  ;;  %v4132_v29 = vld [vmem:[%s7390_s30 + $0x168] sm:$0xf]  ;;  %v5081_v30 = vld [vmem:[%s7390_s30 + $0x174] sm:$0xf0]  ;;  %v5075_v50 = vld [vmem:[%s7390_s30 + $0x14c] sm:$0xf] }
 0x2aa   :  { %v718_v10 = vmax.f32 %v716_v61, 0.0  ;;  %v719_v11 = vmax.f32 %v717_v62, 0.0  ;;  %v4169_v62 = vor.u32 %v5087_v56, %v4166_v57  ;;  %v4133_v33 = vor.u32 %v5081_v30, %v4132_v29  ;;  %v5045_v26 = vld [vmem:[%s7390_s30 + $0x54] sm:$0xf0]  ;;  %v4116_v23 = vld [vmem:[%s7390_s30 + $0x148] sm:$0xf] }
 0x2ab   :  { %1281 = vmatpush.bf16.msra.mxu3 %v4201_v36  ;;  %1240 = vmatpush.bf16.msra.mxu1 %v4053_v37  ;;  %v5079_v36 = vld [vmem:[%s7390_s30 + $0x16c] sm:$0xf]  ;;  %v4134_v37 = vld [vmem:[%s7390_s30 + $0x178] sm:$0xf0]  ;;  %v5077_v45 = vld [vmem:[%s7390_s30 + $0x154] sm:$0xf0]  ;;  %v3993_v52 = vor.u32 %v5043_v48, %v3990_v49 }
 0x2ac   :  { %v6350_v22 = vadd.f32 1e-05, %v718_v10  ;;  %v6352_v24 = vadd.f32 1e-05, %v719_v11  ;;  %v4149_v10 = vor.u32 %v5085_v4, %v4148_v1  ;;  %v4022_v11 = vld [vmem:[%s7390_s30 + $0x98] sm:$0xf0] }
 0x2ad   :  { %1254 = vmatpush.bf16.msra.mxu0 %v4181_v5  ;;  %1268 = vmatpush.bf16.msra.mxu2 %v4057_v46  ;;  %v4025_v14 = vor.u32 %v5051_v8, %v4022_v11  ;;  %v4137_v5 = vor.u32 %v5079_v36, %v4134_v37  ;;  %v3989_v46 = vor.u32 %v5045_v26, %v3988_v38  ;;  %v4118_v53 = vld [vmem:[%s7390_s30 + $0x158] sm:$0xf0]  ;;  %v3972_v54 = vld [vmem:[%s7390_s30 + $0x28] sm:$0xf]  ;;  %v5071_v0 = vld [vmem:[%s7390_s30 + $0x12c] sm:$0xf] }
 0x2ae   :  { %5322 = vrsqrt.f32 %v6350_v22  ;;  %vm738_vm8 = vweird.f32 %v6352_v24  ;;  %vm728_vm12 = vweird.f32 %v6350_v22  ;;  %v4121_v56 = vor.u32 %v5075_v50, %v4118_v53  ;;  %v4100_v57 = vld [vmem:[%s7390_s30 + $0x128] sm:$0xf]  ;;  %v3974_v63 = vld [vmem:[%s7390_s30 + $0x38] sm:$0xf0]  ;;  %v5037_v4 = vld [vmem:[%s7390_s30 + $0x14] sm:$0xf0] }
 0x2af   :  { %5324 = vrsqrt.f32 %v6352_v24  ;;  %1282 = vmatpush.bf16.msra.mxu3 %v4185_v47  ;;  %1241 = vmatpush.bf16.msra.mxu1 %v4037_v51  ;;  %v4117_v47 = vor.u32 %v5077_v45, %v4116_v23  ;;  %v5069_v11 = vld [vmem:[%s7390_s30 + $0x114] sm:$0xf0] }
 0x2b1   :  { %1255 = vmatpush.bf16.msra.mxu0 %v4165_v55  ;;  %1269 = vmatpush.bf16.msra.mxu2 %v4041_v59  ;;  %v5041_v55 = vld [vmem:[%s7390_s30 + $0x34] sm:$0xf0] }
 0x2b2   :  { %v5073_v59 = vld [vmem:[%s7390_s30 + $0x134] sm:$0xf0] }
 0x2b3   :  { %1283 = vmatpush.bf16.msra.mxu3 %v4169_v62  ;;  %1242 = vmatpush.bf16.msra.mxu1 %v4021_v3  ;;  %v5039_v62 = vld [vmem:[%s7390_s30 + $0x2c] sm:$0xf]  ;;  %v3956_v3 = vld [vmem:[%s7390_s30 + $0x8] sm:$0xf] }
 0x2b4   :  { %v6419_v58 = vpop.eup %5322 }
 0x2b5   :  { %v6421_v60 = vpop.eup %5324  ;;  %v723_v61 = vmul.f32 %v6419_v58, %v6350_v22  ;;  %1256 = vmatpush.bf16.msra.mxu0 %v4149_v10  ;;  %1270 = vmatpush.bf16.msra.mxu2 %v4025_v14  ;;  %vm729_vm11 = vweird.f32 %v6419_v58  ;;  %v4084_v10 = vld [vmem:[%s7390_s30 + $0x108] sm:$0xf]  ;;  %v3958_v14 = vld [vmem:[%s7390_s30 + $0x18] sm:$0xf0] }
 0x2b6   :  { %v733_v2 = vmul.f32 %v6421_v60, %v6352_v24  ;;  %vm739_vm7 = vweird.f32 %v6421_v60  ;;  %v5047_v24 = vld [vmem:[%s7390_s30 + $0x6c] sm:$0xf]  ;;  %vm730_vm13 = vmor %vm728_vm12, %vm729_vm11  ;;  %v4085_v21 = vor.u32 %v5069_v11, %v4084_v10 }
 0x2b7   :  { %v724_v9 = vmul.f32 %v6419_v58, %v723_v61  ;;  %vm6467_vm9 = vmor %vm738_vm8, %vm739_vm7  ;;  %1284 = vmatpush.bf16.msra.mxu3 %v4153_v17  ;;  %v4009_v35 = vor.u32 %v5047_v24, %v4006_v34  ;;  %1243 = vmatpush.bf16.msra.mxu1 %v4005_v28  ;;  %v3973_v61 = vor.u32 %v5041_v55, %v3972_v54  ;;  %v5067_v17 = vld [vmem:[%s7390_s30 + $0x10c] sm:$0xf]  ;;  %v6591_v54 = vld [vmem:[#allocation6 + $0x8] sm:$0x77] }
 0x2b8   :  { %v734_v13 = vmul.f32 %v6421_v60, %v733_v2  ;;  %v4101_v2 = vor.u32 %v5073_v59, %v4100_v57 }
 0x2b9   :  { %v725_v16 = vmul.f32 0.5, %v724_v9  ;;  %1257 = vmatpush.bf16.msra.mxu0 %v4133_v33  ;;  %1271 = vmatpush.bf16.msra.mxu2 %v4009_v35  ;;  %v3977_v9 = vor.u32 %v5039_v62, %v3974_v63  ;;  %v853_v62 = vperm.slane %v6591_v54, 0 }
 0x2ba   :  { %v735_v20 = vmul.f32 0.5, %v734_v13  ;;  %v5035_v13 = vld [vmem:[%s7390_s30 + $0xc] sm:$0xf] }
 0x2bb   :  { %v726_v27 = vsub.f32 1.5, %v725_v16  ;;  %1285 = vmatpush.bf16.msra.mxu3 %v4137_v5  ;;  %1244 = vmatpush.bf16.msra.mxu1 %v3989_v46  ;;  %v3957_v16 = vor.u32 %v5037_v4, %v3956_v3  ;;  %v3961_v28 = vor.u32 %v5035_v13, %v3958_v14  ;;  %v854_v13 = vperm.slane %v6591_v54, 4 }
 0x2bc   :  { %v736_v31 = vsub.f32 1.5, %v735_v20  ;;  %v4086_v20 = vld [vmem:[%s7390_s30 + $0x118] sm:$0xf0] }
 0x2bd   :  { %v727_v39 = vmul.f32 %v6419_v58, %v726_v27  ;;  %1258 = vmatpush.bf16.msra.mxu0 %v4117_v47  ;;  %1272 = vmatpush.bf16.msra.mxu2 %v3993_v52  ;;  %v4089_v29 = vor.u32 %v5067_v17, %v4086_v20 }
 0x2be   :  { %v737_v40 = vmul.f32 %v6421_v60, %v736_v31 }
 0x2bf   :  { %1286 = vmatpush.bf16.msra.mxu3 %v4121_v56  ;;  %1245 = vmatpush.bf16.msra.mxu1 %v3973_v61 }
 0x2c0   :  { %v741_v51 = vsel %vm6467_vm9, %v6421_v60, %v737_v40  ;;  %v731_v60 = vsel %vm730_vm13, %v6419_v58, %v727_v39  ;;  %v4102_v58 = vld [vmem:[%s7390_s30 + $0x138] sm:$0xf0] }
 0x2c1   :  { %v744_v22 = vrot.slane %v741_v51, 4  ;;  %v4105_v12 = vor.u32 %v5071_v0, %v4102_v58  ;;  %1259 = vmatpush.bf16.msra.mxu0 %v4101_v2  ;;  %1273 = vmatpush.bf16.msra.mxu2 %v3977_v9  ;;  %v861_v58 = vperm.slane %v853_v62, 0 }
 0x2c3   :  { %v746_v1 = vsel %vm745_vm10, %v731_v60, %v744_v22  ;;  %1287 = vmatpush.bf16.msra.mxu3 %v4105_v12  ;;  %1246 = vmatpush.bf16.msra.mxu1 %v3957_v16 }
 0x2c4   :  { %v747_v8 = vrot.slane %v746_v1, 7 }
 0x2c5   :  { %1260 = vmatpush.bf16.msra.mxu0 %v4085_v21  ;;  %1274 = vmatpush.bf16.msra.mxu2 %v3961_v28  ;;  %v5121_v28 = vld [vmem:[%s7393_s11 + $0xb8] sm:$0xff] }
 0x2c6   :  { %v749_v15 = vmul.f32 %v747_v8, %v6117_v42 }
 0x2c7   :  { %1288 = vmatpush.bf16.msra.mxu3 %v4089_v29  ;;  %v5129_v29 = vld [vmem:[%s7393_s11 + $0xf8] sm:$0xff] }
 0x2c8   :  { %v751_v25 = vperm.slane %v749_v15, 1  ;;  %v752_v27 = vperm.slane %v749_v15, 5 }
 0x2ca   :  { %v756_v30 = vmul.f32 %v752_v27, %v6287_v44  ;;  %v755_v31 = vmul.f32 %v751_v25, %v6285_v43  ;;  %v765_v34 = vperm.slane %v752_v27, 1  ;;  %v764_v36 = vperm.slane %v751_v25, 1 }
 0x2cc   :  { %v759_v32 = vrot.slane %v756_v30, 4  ;;  %v767_v39 = vmul.f32 %v765_v34, %v6156_v7  ;;  %v769_v44 = vmul.f32 %v765_v34, %v6175_v19  ;;  %v766_v5 = vmul.f32 %v764_v36, %v6154_v6  ;;  %v6587_v6 = vld [vmem:[#allocation6] sm:$0x77] }
 0x2cd   :  { %v768_v43 = vmul.f32 %v764_v36, %v6173_v18  ;;  %v851_v7 = vperm.slane %v6587_v6, 0  ;;  %v852_v50 = vperm.slane %v6587_v6, 4 }
 0x2ce   :  { %v760_v33 = vsel %vm745_vm10, %v755_v31, %v759_v32  ;;  %v862_v32 = vperm.slane %v854_v13, 0  ;;  %v5126_v13 = vld [vmem:[%s7393_s11 + $0xe0] sm:$0xff] }
 0x2cf   :  { %v761_v24 = vrot.slane %v760_v33, 6  ;;  %v859_v18 = vperm.slane %v851_v7, 0  ;;  %v860_v52 = vperm.slane %v852_v50, 0 }
 0x2d1   :  { %v763_v35 = vsub.f32 %v6117_v42, %v761_v24 }
 0x2d3   :  { %v771_v37 = vperm.slane %v763_v35, 2  ;;  %v772_v38 = vperm.slane %v763_v35, 6 }
 0x2d5   :  { %v776_v40 = vperm.slane %v772_v38, 2  ;;  %v775_v26 = vperm.slane %v771_v37, 2 }
 0x2d7   :  { %v778_v23 = vadd.f32 %v776_v40, %v767_v39  ;;  %v780_v45 = vadd.f32 %v776_v40, %v769_v44  ;;  %v777_v46 = vadd.f32 %v775_v26, %v766_v5  ;;  %v779_v47 = vadd.f32 %v775_v26, %v768_v43  ;;  %v5120_v44 = vld [vmem:[%s7393_s11 + $0xb0] sm:$0xff] }
 0x2d8   :  { %v5128_v40 = vld [vmem:[%s7393_s11 + $0xf0] sm:$0xff] }
 0x2d9   :  { %v6575_v48 = vpack.c.bf16 %v780_v45, %v778_v23  ;;  %v6577_v42 = vpack.c.bf16 %v779_v47, %v777_v46 }
 0x2db   :  { %1191 = vmatmul.bf16.vlgmr.msrb.gmra.mxu1 %v6577_v42  ;;  %1205 = vmatmul.bf16.vlgmr.msrb.gmra.mxu0 %v6575_v48 }
 0x2dc   :  { %1219 = vmatmul.bf16.vlgmr.msrb.gmra.mxu2 %v6577_v42  ;;  %1233 = vmatmul.bf16.vlgmr.msrb.gmra.mxu3 %v6575_v48 }
 0x2dd   :  { %1805 = vmatpush.bf16.msrb.mxu2 %v5121_v28  ;;  %1819 = vmatpush.bf16.msrb.mxu3 %v5129_v29 }
 0x2e1   :  { %1806 = vmatpush.bf16.msrb.mxu2 %v5120_v44  ;;  %1820 = vmatpush.bf16.msrb.mxu3 %v5128_v40  ;;  %v5125_v44 = vld [vmem:[%s7393_s11 + $0xd8] sm:$0xff] }
 0x2eb   :  { %1247 = vmatmul.bf16.vlgmr.msra.gmra.mxu1 %v6577_v42  ;;  %1261 = vmatmul.bf16.vlgmr.msra.gmra.mxu0 %v6575_v48 }
 0x2ec   :  { %1275 = vmatmul.bf16.vlgmr.msra.gmra.mxu2 %v6577_v42  ;;  %1289 = vmatmul.bf16.vlgmr.msra.gmra.mxu3 %v6575_v48 }
 0x358   :  { %v1192_v19 = vpop.f32.mrf.mxu1  ;;  %v1206_v49 = vpop.f32.mrf.mxu0 }
 0x359   :  { %v1193_v51 = vadd.f32 %v1192_v19, %v859_v18 }
 0x35b   :  { %v1207_v53 = vadd.f32 %v1206_v49, %v1193_v51 }
 0x35d   :  { %v1295_v60 = vmul.f32 0.01, %v1207_v53 }
 0x35f   :  { %v1220_v55 = vpop.f32.mrf.mxu2  ;;  %v1234_v22 = vpop.f32.mrf.mxu3  ;;  %v6594_v1 = vmax.f32 %v1207_v53, %v1295_v60 }
 0x360   :  { %v1221_v56 = vadd.f32 %v1220_v55, %v860_v52  ;;  %v1194_v57 = vpop.f32.mrf.mxu1  ;;  %v1208_v59 = vpop.f32.mrf.mxu0  ;;  %v5119_v55 = vld [vmem:[%s7393_s11 + $0xa8] sm:$0xff] }
 0x361   :  { %v1195_v61 = vadd.f32 %v1194_v57, %v859_v18  ;;  %v1339_v14 = vmul.f32 %v6594_v1, %v6594_v1  ;;  %1807 = vmatpush.bf16.msrb.mxu2 %v5119_v55  ;;  %v5124_v55 = vld [vmem:[%s7393_s11 + $0xd0] sm:$0xff] }
 0x362   :  { %v1235_v63 = vadd.f32 %v1234_v22, %v1221_v56  ;;  %v5127_v22 = vld [vmem:[%s7393_s11 + $0xe8] sm:$0xff] }
 0x363   :  { %v1209_v0 = vadd.f32 %v1208_v59, %v1195_v61  ;;  %1821 = vmatpush.bf16.msrb.mxu3 %v5127_v22 }
 0x364   :  { %v1296_v3 = vmul.f32 0.01, %v1235_v63 }
 0x365   :  { %v1299_v2 = vmul.f32 0.01, %v1209_v0 }
 0x366   :  { %v6605_v21 = vmax.f32 %v1235_v63, %v1296_v3  ;;  %v5105_v63 = vld [vmem:[%s7393_s11 + $0x38] sm:$0xff] }
 0x367   :  { %v6596_v4 = vmax.f32 %v1209_v0, %v1299_v2  ;;  %v1222_v8 = vpop.f32.mrf.mxu2  ;;  %v1236_v9 = vpop.f32.mrf.mxu3  ;;  %v5113_v0 = vld [vmem:[%s7393_s11 + $0x78] sm:$0xff]  ;;  %1777 = vmatpush.bf16.msrb.mxu1 %v5105_v63  ;;  %1822 = vmatpush.bf16.msrb.mxu3 %v5126_v13  ;;  %v5102_v63 = vld [vmem:[%s7393_s11 + $0x20] sm:$0xff]  ;;  %v5123_v13 = vld [vmem:[%s7393_s11 + $0xc8] sm:$0xff] }
 0x368   :  { %v1223_v10 = vadd.f32 %v1222_v8, %v860_v52  ;;  %v1248_v11 = vpop.f32.mrf.mxu1  ;;  %v1262_v12 = vpop.f32.mrf.mxu0  ;;  %v1340_v35 = vmul.f32 %v6605_v21, %v6605_v21  ;;  %1791 = vmatpush.bf16.msrb.mxu0 %v5113_v0  ;;  %v5110_v0 = vld [vmem:[%s7393_s11 + $0x60] sm:$0xff] }
 0x369   :  { %v1311_v15 = vadd.f32 %v6596_v4, %v6594_v1  ;;  %v1343_v16 = vmul.f32 %v6596_v4, %v6596_v4  ;;  %v1249_v17 = vadd.f32 %v1248_v11, %v861_v58 }
 0x36a   :  { %v1237_v20 = vadd.f32 %v1236_v9, %v1223_v10 }
 0x36b   :  { %v1312_v25 = vrot.slane %v1311_v15, 4  ;;  %v1347_v27 = vadd.f32 %v1343_v16, %v1339_v14  ;;  %v1263_v31 = vadd.f32 %v1262_v12, %v1249_v17  ;;  %v5118_v12 = vld [vmem:[%s7393_s11 + $0xa0] sm:$0xff]  ;;  %1823 = vmatpush.bf16.msrb.mxu3 %v5125_v44  ;;  %v4550_v44 = vld [vmem:[#allocation10 + $0x170] sm:$0xf] }
 0x36c   :  { %v1300_v30 = vmul.f32 0.01, %v1237_v20  ;;  %1808 = vmatpush.bf16.msrb.mxu2 %v5118_v12  ;;  %v5115_v12 = vld [vmem:[%s7393_s11 + $0x88] sm:$0xff] }
 0x36d   :  { %v1313_v33 = vadd.f32 %v1312_v25, %v1311_v15  ;;  %v1348_v24 = vrot.slane %v1347_v27, 4  ;;  %v1297_v26 = vmul.f32 0.01, %v1263_v31 }
 0x36e   :  { %v6613_v34 = vmax.f32 %v1237_v20, %v1300_v30  ;;  %v5104_v30 = vld [vmem:[%s7393_s11 + $0x30] sm:$0xff] }
 0x36f   :  { %v1314_v36 = vrot.slane %v1313_v33, 2  ;;  %v1349_v37 = vadd.f32 %v1348_v24, %v1347_v27  ;;  %v1276_v38 = vpop.f32.mrf.mxu2  ;;  %v1290_v39 = vpop.f32.mrf.mxu3  ;;  %v6633_v59 = vmax.f32 %v1263_v31, %v1297_v26  ;;  %v5112_v31 = vld [vmem:[%s7393_s11 + $0x70] sm:$0xff]  ;;  %1778 = vmatpush.bf16.msrb.mxu1 %v5104_v30  ;;  %1824 = vmatpush.bf16.msrb.mxu3 %v5124_v55  ;;  %v4478_v55 = vld [vmem:[#allocation10 + $0xe0] sm:$0xf] }
 0x370   :  { %v1318_v5 = vadd.f32 %v6613_v34, %v6605_v21  ;;  %v1344_v43 = vmul.f32 %v6613_v34, %v6613_v34  ;;  %v1277_v23 = vadd.f32 %v1276_v38, %v862_v32  ;;  %v1250_v45 = vpop.f32.mrf.mxu1  ;;  %v1264_v49 = vpop.f32.mrf.mxu0  ;;  %1792 = vmatpush.bf16.msrb.mxu0 %v5112_v31 }
 0x371   :  { %v1315_v46 = vadd.f32 %v1314_v36, %v1313_v33  ;;  %v1350_v47 = vrot.slane %v1349_v37, 2  ;;  %v1251_v7 = vadd.f32 %v1250_v45, %v861_v58  ;;  %v1341_v16 = vmul.f32 %v6633_v59, %v6633_v59 }
 0x372   :  { %v1319_v18 = vrot.slane %v1318_v5, 4  ;;  %v1354_v19 = vadd.f32 %v1344_v43, %v1340_v35  ;;  %v1291_v52 = vadd.f32 %v1290_v39, %v1277_v23  ;;  %v5117_v39 = vld [vmem:[%s7393_s11 + $0x98] sm:$0xff] }
 0x373   :  { %v1316_v50 = vrot.slane %v1315_v46, 1  ;;  %v1351_v51 = vadd.f32 %v1350_v47, %v1349_v37  ;;  %v1265_v53 = vadd.f32 %v1264_v49, %v1251_v7  ;;  %1809 = vmatpush.bf16.msrb.mxu2 %v5117_v39  ;;  %v5111_v47 = vld [vmem:[%s7393_s11 + $0x68] sm:$0xff]  ;;  %1825 = vmatpush.bf16.msrb.mxu3 %v5123_v13  ;;  %v5201_v39 = vld [vmem:[#allocation10 + $0xf4] sm:$0xf0] }
 0x374   :  { %v1320_v56 = vadd.f32 %v1319_v18, %v1318_v5  ;;  %v1355_v57 = vrot.slane %v1354_v19, 4  ;;  %v1298_v9 = vmul.f32 0.01, %v1291_v52  ;;  %1793 = vmatpush.bf16.msrb.mxu0 %v5111_v47 }
 0x375   :  { %v1317_v60 = vadd.f32 %v1316_v50, %v1315_v46  ;;  %v1352_v61 = vrot.slane %v1351_v51, 1  ;;  %v1301_v62 = vmul.f32 0.01, %v1265_v53  ;;  %v5103_v46 = vld [vmem:[%s7393_s11 + $0x28] sm:$0xff] }
 0x376   :  { %v1321_v2 = vrot.slane %v1320_v56, 2  ;;  %v1356_v58 = vadd.f32 %v1355_v57, %v1354_v19  ;;  %v6665_v36 = vmax.f32 %v1291_v52, %v1298_v9  ;;  %1779 = vmatpush.bf16.msrb.mxu1 %v5103_v46  ;;  %v5108_v46 = vld [vmem:[%s7393_s11 + $0x50] sm:$0xff] }
 0x377   :  { %v1353_v3 = vadd.f32 %v1352_v61, %v1351_v51  ;;  %v6641_v8 = vmul.f32 0.0625, %v1317_v60  ;;  %v6643_v10 = vmax.f32 %v1265_v53, %v1301_v62  ;;  %v1278_v11 = vpop.f32.mrf.mxu2  ;;  %v1292_v29 = vpop.f32.mrf.mxu3  ;;  %v5116_v53 = vld [vmem:[%s7393_s11 + $0x90] sm:$0xff] }
 0x378   :  { %v1322_v14 = vadd.f32 %v1321_v2, %v1320_v56  ;;  %v1357_v15 = vrot.slane %v1356_v58, 2  ;;  %v1279_v17 = vadd.f32 %v1278_v11, %v862_v32  ;;  %v1342_v50 = vmul.f32 %v6665_v36, %v6665_v36  ;;  %1810 = vmatpush.bf16.msrb.mxu2 %v5116_v53  ;;  %1794 = vmatpush.bf16.msrb.mxu0 %v5110_v0 }
 0x379   :  { %v1379_v20 = vmul.f32 0.0625, %v1353_v3  ;;  %v1383_v25 = vmul.f32 %v6641_v8, %v6641_v8  ;;  %v1325_v27 = vadd.f32 %v6643_v10, %v6633_v59  ;;  %v1345_v28 = vmul.f32 %v6643_v10, %v6643_v10 }
 0x37a   :  { %v1323_v32 = vrot.slane %v1322_v14, 1  ;;  %v1358_v33 = vadd.f32 %v1357_v15, %v1356_v58  ;;  %v1293_v24 = vadd.f32 %v1292_v29, %v1279_v17  ;;  %1780 = vmatpush.bf16.msrb.mxu1 %v5102_v63 }
 0x37b   :  { %v1387_v35 = vsub.f32 %v1379_v20, %v1383_v25  ;;  %v1326_v37 = vrot.slane %v1325_v27, 4  ;;  %v1361_v38 = vadd.f32 %v1345_v28, %v1341_v16  ;;  %v5101_v25 = vld [vmem:[%s7393_s11 + $0x18] sm:$0xff] }
 0x37c   :  { %v1324_v40 = vadd.f32 %v1323_v32, %v1322_v14  ;;  %v1359_v5 = vrot.slane %v1358_v33, 1  ;;  %v1302_v43 = vmul.f32 0.01, %v1293_v24  ;;  %1811 = vmatpush.bf16.msrb.mxu2 %v5115_v12 }
 0x37d   :  { %v1391_v26 = vmax.f32 %v1387_v35, 0.0  ;;  %v1327_v23 = vadd.f32 %v1326_v37, %v1325_v27  ;;  %v1362_v45 = vrot.slane %v1361_v38, 4  ;;  %v5109_v27 = vld [vmem:[%s7393_s11 + $0x58] sm:$0xff]  ;;  %v5122_v35 = vld [vmem:[%s7393_s11 + $0xc0] sm:$0xff]  ;;  %v4486_v37 = vld [vmem:[#allocation10 + $0xf0] sm:$0xf] }
 0x37e   :  { %v1360_v7 = vadd.f32 %v1359_v5, %v1358_v33  ;;  %v6679_v18 = vmul.f32 0.0625, %v1324_v40  ;;  %v6681_v19 = vmax.f32 %v1293_v24, %v1302_v43  ;;  %1781 = vmatpush.bf16.msrb.mxu1 %v5101_v25  ;;  %1795 = vmatpush.bf16.msrb.mxu0 %v5109_v27  ;;  %v5114_v24 = vld [vmem:[%s7393_s11 + $0x80] sm:$0xff]  ;;  %v5217_v40 = vld [vmem:[#allocation10 + $0x174] sm:$0xf0] }
 0x37f   :  { %v6683_v49 = vadd.f32 1e-05, %v1391_v26  ;;  %v1328_v51 = vrot.slane %v1327_v23, 2  ;;  %v1363_v52 = vadd.f32 %v1362_v45, %v1361_v38  ;;  %1826 = vmatpush.bf16.msrb.mxu3 %v5122_v35  ;;  %v5100_v45 = vld [vmem:[%s7393_s11 + $0x10] sm:$0xff]  ;;  %v5213_v25 = vld [vmem:[#allocation10 + $0x154] sm:$0xf0] }
 0x380   :  { %v1380_v22 = vmul.f32 0.0625, %v1360_v7  ;;  %v1384_v56 = vmul.f32 %v6679_v18, %v6679_v18  ;;  %v1332_v57 = vadd.f32 %v6681_v19, %v6665_v36  ;;  %v1346_v60 = vmul.f32 %v6681_v19, %v6681_v19  ;;  %1812 = vmatpush.bf16.msrb.mxu2 %v5114_v24 }
 0x381   :  { %5326 = vrsqrt.f32 %v6683_v49  ;;  %v1329_v61 = vadd.f32 %v1328_v51, %v1327_v23  ;;  %v1364_v62 = vrot.slane %v1363_v52, 2  ;;  %v4487_v7 = vor.u32 %v5201_v39, %v4486_v37  ;;  %v4462_v39 = vld [vmem:[#allocation10 + $0xc0] sm:$0xf] }
 0x382   :  { %v1388_v2 = vsub.f32 %v1380_v22, %v1384_v56  ;;  %v1333_v58 = vrot.slane %v1332_v57, 4  ;;  %v1368_v3 = vadd.f32 %v1346_v60, %v1342_v50  ;;  %v4551_v50 = vor.u32 %v5217_v40, %v4550_v44  ;;  %1782 = vmatpush.bf16.msrb.mxu1 %v5100_v45  ;;  %1796 = vmatpush.bf16.msrb.mxu0 %v5108_v46  ;;  %v5199_v22 = vld [vmem:[#allocation10 + $0xe4] sm:$0xf0] }
 0x383   :  { %v1330_v9 = vrot.slane %v1329_v61, 1  ;;  %v1365_v11 = vadd.f32 %v1364_v62, %v1363_v52  ;;  %v4479_v56 = vor.u32 %v5199_v22, %v4478_v55  ;;  %v5215_v60 = vld [vmem:[#allocation10 + $0x164] sm:$0xf0]  ;;  %vm1405_vm3 = vweird.f32 %v6683_v49 }
 0x384   :  { %v1392_v14 = vmax.f32 %v1388_v2, 0.0  ;;  %v1334_v15 = vadd.f32 %v1333_v58, %v1332_v57  ;;  %v1369_v16 = vrot.slane %v1368_v3, 4  ;;  %2515 = vmatpush.bf16.msra.mxu2 %v4487_v7  ;;  %2529 = vmatpush.bf16.msra.mxu3 %v4551_v50  ;;  %v4542_v57 = vld [vmem:[#allocation10 + $0x160] sm:$0xf]  ;;  %v5099_v2 = vld [vmem:[%s7393_s11 + $0x8] sm:$0xff] }
 0x385   :  { %v1331_v17 = vadd.f32 %v1330_v9, %v1329_v61  ;;  %v1366_v20 = vrot.slane %v1365_v11, 1  ;;  %v4543_v0 = vor.u32 %v5215_v60, %v4542_v57  ;;  %v5107_v58 = vld [vmem:[%s7393_s11 + $0x48] sm:$0xff]  ;;  %v5209_v57 = vld [vmem:[#allocation10 + $0x134] sm:$0xf0] }
 0x386   :  { %v6718_v28 = vadd.f32 1e-05, %v1392_v14  ;;  %v1335_v29 = vrot.slane %v1334_v15, 2  ;;  %v1370_v30 = vadd.f32 %v1369_v16, %v1368_v3  ;;  %1783 = vmatpush.bf16.msrb.mxu1 %v5099_v2  ;;  %1797 = vmatpush.bf16.msrb.mxu0 %v5107_v58  ;;  %v4470_v14 = vld [vmem:[#allocation10 + $0xd0] sm:$0xf] }
 0x387   :  { %v6720_v31 = vpop.eup %5326  ;;  %v1367_v32 = vadd.f32 %v1366_v20, %v1365_v11  ;;  %v6722_v33 = vmul.f32 0.0625, %v1331_v17  ;;  %v4534_v20 = vld [vmem:[#allocation10 + $0x150] sm:$0xf]  ;;  %v5195_v44 = vld [vmem:[#allocation10 + $0xc4] sm:$0xf0] }
 0x388   :  { %v1400_v38 = vmul.f32 %v6720_v31, %v6683_v49  ;;  %5328 = vrsqrt.f32 %v6718_v28  ;;  %v1336_v26 = vadd.f32 %v1335_v29, %v1334_v15  ;;  %v1371_v23 = vrot.slane %v1370_v30, 2  ;;  %v5197_v15 = vld [vmem:[#allocation10 + $0xd4] sm:$0xf0]  ;;  %2516 = vmatpush.bf16.msra.mxu2 %v4479_v56  ;;  %2530 = vmatpush.bf16.msra.mxu3 %v4543_v0  ;;  %v5191_v0 = vld [vmem:[#allocation10 + $0xa4] sm:$0xf0] }
 0x389   :  { %v1381_v5 = vmul.f32 0.0625, %v1367_v32  ;;  %v1385_v43 = vmul.f32 %v6722_v33, %v6722_v33  ;;  %v4471_v17 = vor.u32 %v5197_v15, %v4470_v14  ;;  %v5106_v32 = vld [vmem:[%s7393_s11 + $0x40] sm:$0xff]  ;;  %v4535_v35 = vor.u32 %v5213_v25, %v4534_v20  ;;  %v4438_v15 = vld [vmem:[#allocation10 + $0x90] sm:$0xf] }
 0x38a   :  { %v1401_v47 = vmul.f32 %v6720_v31, %v1400_v38  ;;  %v1337_v52 = vrot.slane %v1336_v26, 1  ;;  %v1372_v53 = vadd.f32 %v1371_v23, %v1370_v30  ;;  %v5098_v30 = vld [vmem:[%s7393_s11] sm:$0xff]  ;;  %1798 = vmatpush.bf16.msrb.mxu0 %v5106_v32  ;;  %vm1406_vm15 = vweird.f32 %v6720_v31  ;;  %v4502_v20 = vld [vmem:[#allocation10 + $0x110] sm:$0xf] }
 0x38b   :  { %v1389_v51 = vsub.f32 %v1381_v5, %v1385_v43  ;;  %1784 = vmatpush.bf16.msrb.mxu1 %v5098_v30  ;;  %v4463_v5 = vor.u32 %v5195_v44, %v4462_v39  ;;  %v4526_v43 = vld [vmem:[#allocation10 + $0x140] sm:$0xf]  ;;  %vm1415_vm1 = vweird.f32 %v6718_v28  ;;  %vm1407_vm4 = vmor %vm1405_vm3, %vm1406_vm15 }
 0x38c   :  { %v1338_v62 = vadd.f32 %v1337_v52, %v1336_v26  ;;  %v1373_v63 = vrot.slane %v1372_v53, 1  ;;  %v1402_v9 = vmul.f32 0.5, %v1401_v47  ;;  %2517 = vmatpush.bf16.msra.mxu2 %v4471_v17  ;;  %2531 = vmatpush.bf16.msra.mxu3 %v4535_v35  ;;  %v5211_v26 = vld [vmem:[#allocation10 + $0x144] sm:$0xf0]  ;;  %v5193_v52 = vld [vmem:[#allocation10 + $0xb4] sm:$0xf0] }
 0x38d   :  { %v1393_v61 = vmax.f32 %v1389_v51, 0.0  ;;  %v4527_v45 = vor.u32 %v5211_v26, %v4526_v43  ;;  %v4454_v51 = vld [vmem:[#allocation10 + $0xb0] sm:$0xf]  ;;  %v4510_v2 = vld [vmem:[#allocation10 + $0x120] sm:$0xf] }
 0x38e   :  { %v5329_v3 = vpop.eup %5328  ;;  %v1374_v13 = vadd.f32 %v1373_v63, %v1372_v53  ;;  %v6751_v16 = vmul.f32 0.0625, %v1338_v62  ;;  %v1403_v37 = vsub.f32 1.5, %v1402_v9  ;;  %v4518_v53 = vld [vmem:[#allocation10 + $0x130] sm:$0xf]  ;;  %v4455_v56 = vor.u32 %v5193_v52, %v4454_v51  ;;  %v4446_v63 = vld [vmem:[#allocation10 + $0xa0] sm:$0xf] }
 0x38f   :  { %v1410_v11 = vmul.f32 %v5329_v3, %v6718_v28  ;;  %v6749_v12 = vadd.f32 1e-05, %v1393_v61  ;;  %vm1416_vm14 = vweird.f32 %v5329_v3  ;;  %v4519_v61 = vor.u32 %v5209_v57, %v4518_v53  ;;  %v5189_v17 = vld [vmem:[#allocation10 + $0x94] sm:$0xf0]  ;;  %v4430_v44 = vld [vmem:[#allocation10 + $0x80] sm:$0xf] }
 0x390   :  { %v1382_v29 = vmul.f32 0.0625, %v1374_v13  ;;  %v1386_v24 = vmul.f32 %v6751_v16, %v6751_v16  ;;  %v1404_v7 = vmul.f32 %v6720_v31, %v1403_v37  ;;  %vm1417_vm2 = vmor %vm1415_vm1, %vm1416_vm14  ;;  %2518 = vmatpush.bf16.msra.mxu2 %v4463_v5  ;;  %2532 = vmatpush.bf16.msra.mxu3 %v4527_v45  ;;  %v4447_v49 = vor.u32 %v5191_v0, %v4446_v63  ;;  %v5203_v45 = vld [vmem:[#allocation10 + $0x104] sm:$0xf0] }
 0x391   :  { %v1411_v27 = vmul.f32 %v5329_v3, %v1410_v11  ;;  %5330 = vrsqrt.f32 %v6749_v12  ;;  %vm1425_vm9 = vweird.f32 %v6749_v12 }
 0x392   :  { %v1390_v40 = vsub.f32 %v1382_v29, %v1386_v24  ;;  %v1408_v62 = vsel %vm1407_vm4, %v6720_v31, %v1404_v7  ;;  %v5205_v29 = vld [vmem:[#allocation10 + $0x114] sm:$0xf0] }
 0x393   :  { %v1412_v38 = vmul.f32 0.5, %v1411_v27  ;;  %v4439_v27 = vor.u32 %v5189_v17, %v4438_v15  ;;  %v4503_v35 = vor.u32 %v5205_v29, %v4502_v20 }
 0x394   :  { %v1394_v46 = vmax.f32 %v1390_v40, 0.0  ;;  %2519 = vmatpush.bf16.msra.mxu2 %v4455_v56  ;;  %2533 = vmatpush.bf16.msra.mxu3 %v4519_v61  ;;  %v5187_v40 = vld [vmem:[#allocation10 + $0x84] sm:$0xf0] }
 0x395   :  { %v1413_v23 = vsub.f32 1.5, %v1412_v38 }
 0x396   :  { %v6769_v22 = vadd.f32 1e-05, %v1394_v46  ;;  %v4431_v46 = vor.u32 %v5187_v40, %v4430_v44  ;;  %v5216_v40 = vld [vmem:[#allocation10 + $0x174] sm:$0xf] }
 0x397   :  { %v6762_v47 = vpop.eup %5330  ;;  %v1414_v50 = vmul.f32 %v5329_v3, %v1413_v23  ;;  %v4494_v23 = vld [vmem:[#allocation10 + $0x100] sm:$0xf] }
 0x398   :  { %v1420_v55 = vmul.f32 %v6762_v47, %v6749_v12  ;;  %5332 = vrsqrt.f32 %v6769_v22  ;;  %2520 = vmatpush.bf16.msra.mxu2 %v4447_v49  ;;  %v4495_v7 = vor.u32 %v5203_v45, %v4494_v23  ;;  %vm1426_vm6 = vweird.f32 %v6762_v47 }
 0x399   :  { %v1418_v60 = vsel %vm1417_vm2, %v5329_v3, %v1414_v50  ;;  %v5207_v3 = vld [vmem:[#allocation10 + $0x124] sm:$0xf0]  ;;  %vm1435_vm7 = vweird.f32 %v6769_v22  ;;  %vm1427_vm11 = vmor %vm1425_vm9, %vm1426_vm6 }
 0x39a   :  { %v1443_v28 = vrot.slane %v1418_v60, 4  ;;  %v1421_v9 = vmul.f32 %v6762_v47, %v1420_v55  ;;  %v4511_v13 = vor.u32 %v5207_v3, %v4510_v2 }
 0x39c   :  { %v1445_v58 = vsel %vm745_vm10, %v1408_v62, %v1443_v28  ;;  %v1422_v31 = vmul.f32 0.5, %v1421_v9  ;;  %2534 = vmatpush.bf16.msra.mxu3 %v4511_v13  ;;  %2521 = vmatpush.bf16.msra.mxu2 %v4439_v27 }
 0x39d   :  { %v1447_v11 = vrot.slane %v1445_v58, 7 }
 0x39e   :  { %v5333_v25 = vpop.eup %5332  ;;  %v1423_v39 = vsub.f32 1.5, %v1422_v31 }
 0x39f   :  { %v1451_v14 = vmul.f32 %v1447_v11, %v6587_v6  ;;  %v1430_v24 = vmul.f32 %v5333_v25, %v6769_v22  ;;  %vm1436_vm5 = vweird.f32 %v5333_v25 }
 0x3a0   :  { %2535 = vmatpush.bf16.msra.mxu3 %v4503_v35  ;;  %2522 = vmatpush.bf16.msra.mxu2 %v4431_v46  ;;  %vm1437_vm8 = vmor %vm1435_vm7, %vm1436_vm5 }
 0x3a1   :  { %v1455_v30 = vperm.slane %v1451_v14, 1  ;;  %v1456_v32 = vperm.slane %v1451_v14, 5  ;;  %v1431_v38 = vmul.f32 %v5333_v25, %v1430_v24 }
 0x3a3   :  { %v1464_v37 = vmul.f32 %v1456_v32, %v6679_v18  ;;  %v1463_v5 = vmul.f32 %v1455_v30, %v6641_v8  ;;  %v1432_v26 = vmul.f32 0.5, %v1431_v38  ;;  %v1482_v18 = vperm.slane %v1456_v32, 1  ;;  %v4488_v38 = vld [vmem:[#allocation10 + $0xf8] sm:$0xf0] }
 0x3a4   :  { %2536 = vmatpush.bf16.msra.mxu3 %v4495_v7  ;;  %v1424_v8 = vmul.f32 %v6762_v47, %v1423_v39  ;;  %v1481_v55 = vperm.slane %v1455_v30, 1  ;;  %v5198_v7 = vld [vmem:[#allocation10 + $0xe4] sm:$0xf] }
 0x3a5   :  { %v1471_v43 = vrot.slane %v1464_v37, 4  ;;  %v1433_v51 = vsub.f32 1.5, %v1432_v26  ;;  %v1486_v62 = vmul.f32 %v1482_v18, %v6605_v21  ;;  %v1490_v22 = vmul.f32 %v1482_v18, %v6613_v34  ;;  %v5200_v37 = vld [vmem:[#allocation10 + $0xf4] sm:$0xf] }
 0x3a6   :  { %v1428_v63 = vsel %vm1427_vm11, %v6762_v47, %v1424_v8  ;;  %v1485_v0 = vmul.f32 %v1481_v55, %v6594_v1  ;;  %v4491_v45 = vor.u32 %v5200_v37, %v4488_v38  ;;  %v5196_v18 = vld [vmem:[#allocation10 + $0xd4] sm:$0xf]  ;;  %v4472_v8 = vld [vmem:[#allocation10 + $0xd8] sm:$0xf0] }
 0x3a7   :  { %v1473_v50 = vsel %vm745_vm10, %v1463_v5, %v1471_v43  ;;  %v1434_v53 = vmul.f32 %v5333_v25, %v1433_v51  ;;  %v4552_v5 = vld [vmem:[#allocation10 + $0x178] sm:$0xf0]  ;;  %v5214_v51 = vld [vmem:[#allocation10 + $0x164] sm:$0xf] }
 0x3a8   :  { %v1475_v52 = vrot.slane %v1473_v50, 6  ;;  %v4555_v46 = vor.u32 %v5216_v40, %v4552_v5  ;;  %v4480_v50 = vld [vmem:[#allocation10 + $0xe8] sm:$0xf0]  ;;  %v5137_v5 = vld [vmem:[%s7394_s9 + $0x34] sm:$0xf0] }
 0x3a9   :  { %v1438_v57 = vsel %vm1437_vm8, %v5333_v25, %v1434_v53  ;;  %v5212_v53 = vld [vmem:[#allocation10 + $0x154] sm:$0xf]  ;;  %v4356_v40 = vld [vmem:[%s7394_s9 + $0x30] sm:$0xf] }
 0x3aa   :  { %v1479_v56 = vsub.f32 %v6587_v6, %v1475_v52  ;;  %v1444_v61 = vrot.slane %v1438_v57, 4  ;;  %v1489_v6 = vmul.f32 %v1481_v55, %v6596_v4  ;;  %v4544_v52 = vld [vmem:[#allocation10 + $0x168] sm:$0xf0]  ;;  %v4536_v55 = vld [vmem:[#allocation10 + $0x158] sm:$0xf0] }
 0x3ab   :  { %v4539_v57 = vor.u32 %v5212_v53, %v4536_v55 }
 0x3ac   :  { %v1496_v60 = vperm.slane %v1479_v56, 6  ;;  %v1495_v28 = vperm.slane %v1479_v56, 2  ;;  %v1446_v58 = vsel %vm745_vm10, %v1428_v63, %v1444_v61  ;;  %v4475_v56 = vor.u32 %v5196_v18, %v4472_v8  ;;  %v4464_v61 = vld [vmem:[#allocation10 + $0xc8] sm:$0xf0] }
 0x3ad   :  { %v1448_v12 = vrot.slane %v1446_v58, 7  ;;  %v5208_v58 = vld [vmem:[#allocation10 + $0x134] sm:$0xf] }
 0x3ae   :  { %v1504_v2 = vperm.slane %v1496_v60, 2  ;;  %v1503_v9 = vperm.slane %v1495_v28, 2  ;;  %v5194_v60 = vld [vmem:[#allocation10 + $0xc4] sm:$0xf] }
 0x3af   :  { %v1452_v14 = vmul.f32 %v1448_v12, %v6591_v54  ;;  %v5210_v28 = vld [vmem:[#allocation10 + $0x144] sm:$0xf] }
 0x3b0   :  { %v1512_v49 = vadd.f32 %v1504_v2, %v1490_v22  ;;  %v1507_v3 = vadd.f32 %v1503_v9, %v1485_v0  ;;  %v1511_v11 = vadd.f32 %v1503_v9, %v1489_v6  ;;  %v1508_v13 = vadd.f32 %v1504_v2, %v1486_v62  ;;  %v4528_v62 = vld [vmem:[#allocation10 + $0x148] sm:$0xf0]  ;;  %v5192_v0 = vld [vmem:[#allocation10 + $0xb4] sm:$0xf]  ;;  %v4456_v2 = vld [vmem:[#allocation10 + $0xb8] sm:$0xf0] }
 0x3b1   :  { %v1457_v47 = vperm.slane %v1452_v14, 1  ;;  %v1458_v15 = vperm.slane %v1452_v14, 5  ;;  %v4467_v22 = vor.u32 %v5194_v60, %v4464_v61  ;;  %v4531_v63 = vor.u32 %v5210_v28, %v4528_v62  ;;  %v4520_v6 = vld [vmem:[#allocation10 + $0x138] sm:$0xf0]  ;;  %v5132_v60 = vld [vmem:[%s7394_s9 + $0x14] sm:$0xf] }
 0x3b2   :  { %v6795_v21 = vpack.c.bf16 %v1511_v11, %v1507_v3  ;;  %v6797_v34 = vpack.c.bf16 %v1512_v49, %v1508_v13  ;;  %v4459_v9 = vor.u32 %v5192_v0, %v4456_v2  ;;  %v4523_v12 = vor.u32 %v5208_v58, %v4520_v6  ;;  %v5190_v49 = vld [vmem:[#allocation10 + $0xa4] sm:$0xf]  ;;  %v4448_v3 = vld [vmem:[#allocation10 + $0xa8] sm:$0xf0]  ;;  %v4342_v62 = vld [vmem:[%s7394_s9 + $0x18] sm:$0xf0] }
 0x3b3   :  { %v1466_v1 = vmul.f32 %v1458_v15, %v6751_v16  ;;  %v1465_v4 = vmul.f32 %v1457_v47, %v6722_v33  ;;  %v1484_v31 = vperm.slane %v1458_v15, 1  ;;  %v1483_v29 = vperm.slane %v1457_v47, 1  ;;  %v5206_v11 = vld [vmem:[#allocation10 + $0x124] sm:$0xf]  ;;  %v4512_v13 = vld [vmem:[#allocation10 + $0x128] sm:$0xf0] }
 0x3b4   :  { %1785 = vmatmul.bf16.vlgmr.msrb.gmra.mxu1 %v6795_v21  ;;  %1799 = vmatmul.bf16.vlgmr.msrb.gmra.mxu0 %v6797_v34  ;;  %v4451_v14 = vor.u32 %v5190_v49, %v4448_v3  ;;  %v4515_v47 = vor.u32 %v5206_v11, %v4512_v13  ;;  %v5188_v15 = vld [vmem:[#allocation10 + $0x94] sm:$0xf]  ;;  %v4332_v6 = vld [vmem:[%s7394_s9] sm:$0xf]  ;;  %v5130_v49 = vld [vmem:[%s7394_s9 + $0x4] sm:$0xf] }
 0x3b5   :  { %v1472_v17 = vrot.slane %v1466_v1, 4  ;;  %v1488_v24 = vmul.f32 %v1484_v31, %v6665_v36  ;;  %v1492_v35 = vmul.f32 %v1484_v31, %v6681_v19  ;;  %v1487_v16 = vmul.f32 %v1483_v29, %v6633_v59  ;;  %v4440_v1 = vld [vmem:[#allocation10 + $0x98] sm:$0xf0]  ;;  %v5186_v31 = vld [vmem:[#allocation10 + $0x84] sm:$0xf] }
 0x3b6   :  { %v1491_v33 = vmul.f32 %v1483_v29, %v6643_v10  ;;  %v4483_v59 = vor.u32 %v5198_v7, %v4480_v50  ;;  %v4547_v10 = vor.u32 %v5214_v51, %v4544_v52  ;;  %v5202_v29 = vld [vmem:[#allocation10 + $0x104] sm:$0xf]  ;;  %v4348_v50 = vld [vmem:[%s7394_s9 + $0x20] sm:$0xf]  ;;  %v5134_v52 = vld [vmem:[%s7394_s9 + $0x24] sm:$0xf] }
 0x3b7   :  { %v1474_v20 = vsel %vm745_vm10, %v1465_v4, %v1472_v17  ;;  %v5204_v4 = vld [vmem:[#allocation10 + $0x114] sm:$0xf]  ;;  %v4504_v17 = vld [vmem:[#allocation10 + $0x118] sm:$0xf0]  ;;  %v5135_v51 = vld [vmem:[%s7394_s9 + $0x24] sm:$0xf0] }
 0x3b8   :  { %v1476_v25 = vrot.slane %v1474_v20, 6  ;;  %v4443_v20 = vor.u32 %v5188_v15, %v4440_v1  ;;  %v4334_v3 = vld [vmem:[%s7394_s9 + $0x8] sm:$0xf0]  ;;  %v4422_v11 = vld [vmem:[#allocation10 + $0x70] sm:$0xf] }
 0x3b9   :  { %v4614_v15 = vld [vmem:[#allocation10 + $0x1f0] sm:$0xf] }
 0x3ba   :  { %v1480_v27 = vsub.f32 %v6591_v54, %v1476_v25  ;;  %v4507_v25 = vor.u32 %v5204_v4, %v4504_v17  ;;  %v5233_v4 = vld [vmem:[#allocation10 + $0x1f4] sm:$0xf0] }
 0x3bc   :  { %v1498_v30 = vperm.slane %v1480_v27, 6  ;;  %v1497_v32 = vperm.slane %v1480_v27, 2  ;;  %v4432_v27 = vld [vmem:[#allocation10 + $0x88] sm:$0xf0] }
 0x3be   :  { %v1506_v39 = vperm.slane %v1498_v30, 2  ;;  %v1505_v44 = vperm.slane %v1497_v32, 2  ;;  %v4496_v30 = vld [vmem:[#allocation10 + $0x108] sm:$0xf0]  ;;  %v4435_v32 = vor.u32 %v5186_v31, %v4432_v27  ;;  %v4414_v31 = vld [vmem:[#allocation10 + $0x60] sm:$0xf] }
 0x3bf   :  { %v5183_v27 = vld [vmem:[#allocation10 + $0x64] sm:$0xf0] }
 0x3c0   :  { %v1514_v43 = vadd.f32 %v1506_v39, %v1492_v35  ;;  %v1509_v26 = vadd.f32 %v1505_v44, %v1487_v16  ;;  %v1513_v54 = vadd.f32 %v1505_v44, %v1491_v33  ;;  %v1510_v23 = vadd.f32 %v1506_v39, %v1488_v24  ;;  %v6819_v35 = vld [vmem:[#allocation7] sm:$0x7] }
 0x3c1   :  { %v4499_v24 = vor.u32 %v5202_v29, %v4496_v30  ;;  %v1584_v38 = vperm.slane %v6819_v35, 0  ;;  %v4606_v29 = vld [vmem:[#allocation10 + $0x1e0] sm:$0xf] }
 0x3c2   :  { %v6809_v36 = vpack.c.bf16 %v1513_v54, %v1509_v26  ;;  %v6811_v19 = vpack.c.bf16 %v1514_v43, %v1510_v23  ;;  %v4357_v54 = vor.u32 %v5137_v5, %v4356_v40  ;;  %v4358_v23 = vld [vmem:[%s7394_s9 + $0x38] sm:$0xf0] }
 0x3c4   :  { %1813 = vmatmul.bf16.vlgmr.msrb.gmra.mxu2 %v6809_v36  ;;  %1827 = vmatmul.bf16.vlgmr.msrb.gmra.mxu3 %v6811_v19 }
 0x3c5   :  { %2571 = vmatpush.bf16.msrb.mxu2 %v4491_v45  ;;  %2585 = vmatpush.bf16.msrb.mxu3 %v4555_v46 }
 0x3c6   :  { %1949 = vmatpush.bf16.msra.mxu1 %v4357_v54  ;;  %v4598_v54 = vld [vmem:[#allocation10 + $0x1d0] sm:$0xf] }
 0x3c9   :  { %2572 = vmatpush.bf16.msrb.mxu2 %v4483_v59  ;;  %2586 = vmatpush.bf16.msrb.mxu3 %v4547_v10  ;;  %v4349_v59 = vor.u32 %v5135_v51, %v4348_v50  ;;  %v4350_v10 = vld [vmem:[%s7394_s9 + $0x28] sm:$0xf0]  ;;  %v4398_v51 = vld [vmem:[#allocation10 + $0x40] sm:$0xf] }
 0x3ca   :  { %v4353_v18 = vor.u32 %v5134_v52, %v4350_v10  ;;  %v5179_v52 = vld [vmem:[#allocation10 + $0x44] sm:$0xf0]  ;;  %v4590_v10 = vld [vmem:[#allocation10 + $0x1c0] sm:$0xf] }
 0x3cb   :  { %1950 = vmatpush.bf16.msra.mxu1 %v4349_v59  ;;  %v4399_v59 = vor.u32 %v5179_v52, %v4398_v51  ;;  %v4424_v51 = vld [vmem:[#allocation10 + $0x78] sm:$0xf0] }
 0x3cd   :  { %2573 = vmatpush.bf16.msrb.mxu2 %v4475_v56  ;;  %2587 = vmatpush.bf16.msrb.mxu3 %v4539_v57  ;;  %v4340_v56 = vld [vmem:[%s7394_s9 + $0x10] sm:$0xf]  ;;  %v5133_v57 = vld [vmem:[%s7394_s9 + $0x14] sm:$0xf0] }
 0x3ce   :  { %v4341_v28 = vor.u32 %v5133_v57, %v4340_v56 }
 0x3d0   :  { %1951 = vmatpush.bf16.msra.mxu1 %v4341_v28 }
 0x3d1   :  { %2574 = vmatpush.bf16.msrb.mxu2 %v4467_v22  ;;  %2588 = vmatpush.bf16.msrb.mxu3 %v4531_v63  ;;  %v4345_v63 = vor.u32 %v5132_v60, %v4342_v62  ;;  %v4390_v60 = vld [vmem:[#allocation10 + $0x30] sm:$0xf] }
 0x3d2   :  { %v4582_v62 = vld [vmem:[#allocation10 + $0x1b0] sm:$0xf] }
 0x3d4   :  { %2523 = vmatmul.bf16.vlgmr.msra.gmra.mxu2 %v6797_v34  ;;  %2537 = vmatmul.bf16.vlgmr.msra.gmra.mxu3 %v6809_v36 }
 0x3d5   :  { %2575 = vmatpush.bf16.msrb.mxu2 %v4459_v9  ;;  %2589 = vmatpush.bf16.msrb.mxu3 %v4523_v12  ;;  %v5131_v9 = vld [vmem:[%s7394_s9 + $0x4] sm:$0xf0] }
 0x3d6   :  { %v4333_v12 = vor.u32 %v5131_v9, %v4332_v6 }
 0x3d8   :  { %1952 = vmatpush.bf16.msra.mxu1 %v4333_v12  ;;  %v4382_v12 = vld [vmem:[#allocation10 + $0x20] sm:$0xf] }
 0x3d9   :  { %2576 = vmatpush.bf16.msrb.mxu2 %v4451_v14  ;;  %2590 = vmatpush.bf16.msrb.mxu3 %v4515_v47  ;;  %v4337_v14 = vor.u32 %v5130_v49, %v4334_v3  ;;  %v5185_v47 = vld [vmem:[#allocation10 + $0x74] sm:$0xf0]  ;;  %v5175_v49 = vld [vmem:[#allocation10 + $0x24] sm:$0xf0] }
 0x3da   :  { %v4423_v1 = vor.u32 %v5185_v47, %v4422_v11  ;;  %v4383_v3 = vor.u32 %v5175_v49, %v4382_v12  ;;  %v4574_v11 = vld [vmem:[#allocation10 + $0x1a0] sm:$0xf]  ;;  %v5178_v12 = vld [vmem:[#allocation10 + $0x44] sm:$0xf]  ;;  %v4400_v49 = vld [vmem:[#allocation10 + $0x48] sm:$0xf0] }
 0x3dc   :  { %2501 = vmatpush.bf16.msrb.mxu1 %v4423_v1 }
 0x3dd   :  { %2577 = vmatpush.bf16.msrb.mxu2 %v4443_v20  ;;  %2591 = vmatpush.bf16.msrb.mxu3 %v4507_v25  ;;  %v4615_v25 = vor.u32 %v5233_v4, %v4614_v15  ;;  %v4374_v4 = vld [vmem:[#allocation10 + $0x10] sm:$0xf] }
 0x3e1   :  { %2578 = vmatpush.bf16.msrb.mxu2 %v4435_v32  ;;  %2592 = vmatpush.bf16.msrb.mxu3 %v4499_v24 }
 0x3e4   :  { %2579 = vmatmul.bf16.vlgmr.msrb.gmra.mxu2 %v6797_v34  ;;  %2593 = vmatmul.bf16.vlgmr.msrb.gmra.mxu3 %v6809_v36  ;;  %v5136_v34 = vld [vmem:[%s7394_s9 + $0x34] sm:$0xf] }
 0x3e5   :  { %v4361_v46 = vor.u32 %v5136_v34, %v4358_v23  ;;  %v4406_v34 = vld [vmem:[#allocation10 + $0x50] sm:$0xf]  ;;  %v5229_v23 = vld [vmem:[#allocation10 + $0x1d4] sm:$0xf0] }
 0x3e7   :  { %1963 = vmatpush.bf16.msra.mxu0 %v4361_v46 }
 0x3eb   :  { %1964 = vmatpush.bf16.msra.mxu0 %v4353_v18  ;;  %v5227_v18 = vld [vmem:[#allocation10 + $0x1c4] sm:$0xf0] }
 0x3ef   :  { %1965 = vmatpush.bf16.msra.mxu0 %v4345_v63 }
 0x3f3   :  { %1966 = vmatpush.bf16.msra.mxu0 %v4337_v14 }
 0x3f7   :  { %2543 = vmatpush.bf16.msrb.mxu0 %v4615_v25  ;;  %v4566_v25 = vld [vmem:[#allocation10 + $0x190] sm:$0xf] }
 0x431   :  { %v1786_v37 = vpop.f32.mrf.mxu1  ;;  %v1800_v16 = vpop.f32.mrf.mxu0 }
 0x432   :  { %v1787_v39 = vadd.f32 %v1786_v37, %v1584_v38  ;;  %v4415_v37 = vor.u32 %v5183_v27, %v4414_v31  ;;  %v5221_v27 = vld [vmem:[#allocation10 + $0x194] sm:$0xf0] }
 0x434   :  { %v1801_v33 = vadd.f32 %v1800_v16, %v1787_v39  ;;  %2502 = vmatpush.bf16.msrb.mxu1 %v4415_v37  ;;  %v5171_v37 = vld [vmem:[#allocation10 + $0x4] sm:$0xf0] }
 0x439   :  { %v1788_v44 = vpop.f32.mrf.mxu1  ;;  %v1802_v8 = vpop.f32.mrf.mxu0 }
 0x43a   :  { %v1789_v7 = vadd.f32 %v1788_v44, %v1584_v38  ;;  %v5231_v38 = vld [vmem:[#allocation10 + $0x1e4] sm:$0xf0] }
 0x43b   :  { %v4607_v16 = vor.u32 %v5231_v38, %v4606_v29 }
 0x43c   :  { %v1803_v55 = vadd.f32 %v1802_v8, %v1789_v7  ;;  %v4599_v7 = vor.u32 %v5229_v23, %v4598_v54 }
 0x43d   :  { %2544 = vmatpush.bf16.msrb.mxu0 %v4607_v16  ;;  %v5219_v16 = vld [vmem:[#allocation10 + $0x184] sm:$0xf0] }
 0x441   :  { %2545 = vmatpush.bf16.msrb.mxu0 %v4599_v7 }
 0x447   :  { %v1814_v43 = vpop.f32.mrf.mxu2  ;;  %v1828_v26 = vpop.f32.mrf.mxu3 }
 0x448   :  { %v1815_v45 = vadd.f32 %v1814_v43, %v1801_v33  ;;  %v5181_v43 = vld [vmem:[#allocation10 + $0x54] sm:$0xf0] }
 0x44a   :  { %v1829_v36 = vadd.f32 %v1828_v26, %v1815_v45  ;;  %v4407_v26 = vor.u32 %v5181_v43, %v4406_v34 }
 0x44c   :  { %v1833_v53 = vmul.f32 0.01, %v1829_v36  ;;  %2503 = vmatpush.bf16.msrb.mxu1 %v4407_v26 }
 0x44e   :  { %v6858_v2 = vmax.f32 %v1829_v36, %v1833_v53 }
 0x44f   :  { %v1816_v61 = vpop.f32.mrf.mxu2  ;;  %v1830_v0 = vpop.f32.mrf.mxu3 }
 0x450   :  { %v1817_v22 = vadd.f32 %v1816_v61, %v1803_v55  ;;  %v1846_v17 = vmul.f32 %v6858_v2, %v6858_v2  ;;  %v1837_v30 = vsel %vm388_vm0, %v6858_v2, 0.0  ;;  %v4591_v55 = vor.u32 %v5227_v18, %v4590_v10  ;;  %2504 = vmatpush.bf16.msrb.mxu1 %v4399_v59  ;;  %v5177_v61 = vld [vmem:[#allocation10 + $0x34] sm:$0xf0]  ;;  %v5232_v18 = vld [vmem:[#allocation10 + $0x1f4] sm:$0xf] }
 0x451   :  { %v4391_v28 = vor.u32 %v5177_v61, %v4390_v60  ;;  %v5182_v60 = vld [vmem:[#allocation10 + $0x64] sm:$0xf] }
 0x452   :  { %v1831_v58 = vadd.f32 %v1830_v0, %v1817_v22  ;;  %v1848_v33 = vsel %vm388_vm0, %v1846_v17, 0.0  ;;  %2546 = vmatpush.bf16.msrb.mxu0 %v4591_v55  ;;  %v5225_v22 = vld [vmem:[#allocation10 + $0x1b4] sm:$0xf0] }
 0x453   :  { %v5173_v17 = vld [vmem:[#allocation10 + $0x14] sm:$0xf0] }
 0x454   :  { %v1834_v13 = vmul.f32 0.01, %v1831_v58  ;;  %2505 = vmatpush.bf16.msrb.mxu1 %v4391_v28  ;;  %v4375_v31 = vor.u32 %v5173_v17, %v4374_v4  ;;  %v4416_v28 = vld [vmem:[#allocation10 + $0x68] sm:$0xf0]  ;;  %v4584_v4 = vld [vmem:[#allocation10 + $0x1b8] sm:$0xf0] }
 0x456   :  { %v6874_v20 = vmax.f32 %v1831_v58, %v1834_v13  ;;  %v4583_v58 = vor.u32 %v5225_v22, %v4582_v62  ;;  %v5223_v13 = vld [vmem:[#allocation10 + $0x1a4] sm:$0xf0]  ;;  %v5230_v62 = vld [vmem:[#allocation10 + $0x1e4] sm:$0xf]  ;;  %v4608_v22 = vld [vmem:[#allocation10 + $0x1e8] sm:$0xf0] }
 0x457   :  { %v4575_v15 = vor.u32 %v5223_v13, %v4574_v11  ;;  %v4592_v11 = vld [vmem:[#allocation10 + $0x1c8] sm:$0xf0]  ;;  %v4403_v13 = vor.u32 %v5178_v12, %v4400_v49 }
 0x458   :  { %v1838_v32 = vsel %vm388_vm0, %v6874_v20, 0.0  ;;  %v1847_v24 = vmul.f32 %v6874_v20, %v6874_v20  ;;  %2547 = vmatpush.bf16.msrb.mxu0 %v4583_v58  ;;  %2506 = vmatpush.bf16.msrb.mxu1 %v4383_v3  ;;  %v4600_v58 = vld [vmem:[#allocation10 + $0x1d8] sm:$0xf0]  ;;  %v5226_v3 = vld [vmem:[#allocation10 + $0x1c4] sm:$0xf] }
 0x459   :  { %v1839_v39 = vadd.f32 %v1838_v32, %v1837_v30  ;;  %v4567_v30 = vor.u32 %v5221_v27, %v4566_v25  ;;  %v4384_v27 = vld [vmem:[#allocation10 + $0x28] sm:$0xf0] }
 0x45a   :  { %v1849_v44 = vsel %vm388_vm0, %v1847_v24, 0.0  ;;  %v4366_v24 = vld [vmem:[#allocation10] sm:$0xf] }
 0x45b   :  { %v1840_v40 = vrot.slane %v1839_v39, 4  ;;  %v1850_v5 = vadd.f32 %v1849_v44, %v1848_v33  ;;  %v4367_v38 = vor.u32 %v5171_v37, %v4366_v24  ;;  %v5172_v37 = vld [vmem:[#allocation10 + $0x14] sm:$0xf] }
 0x45c   :  { %2548 = vmatpush.bf16.msrb.mxu0 %v4575_v15  ;;  %2507 = vmatpush.bf16.msrb.mxu1 %v4375_v31  ;;  %v4392_v15 = vld [vmem:[#allocation10 + $0x38] sm:$0xf0]  ;;  %v5174_v31 = vld [vmem:[#allocation10 + $0x24] sm:$0xf] }
 0x45d   :  { %v1841_v45 = vadd.f32 %v1840_v40, %v1839_v39  ;;  %v1851_v46 = vrot.slane %v1850_v5, 4  ;;  %v4558_v39 = vld [vmem:[#allocation10 + $0x180] sm:$0xf] }
 0x45e   :  { %v4559_v33 = vor.u32 %v5219_v16, %v4558_v39  ;;  %v5220_v39 = vld [vmem:[#allocation10 + $0x194] sm:$0xf]  ;;  %v4568_v16 = vld [vmem:[#allocation10 + $0x198] sm:$0xf0] }
 0x45f   :  { %v1842_v36 = vrot.slane %v1841_v45, 2  ;;  %v1852_v50 = vadd.f32 %v1851_v46, %v1850_v5 }
 0x460   :  { %2549 = vmatpush.bf16.msrb.mxu0 %v4567_v30  ;;  %2508 = vmatpush.bf16.msrb.mxu1 %v4367_v38  ;;  %v4576_v30 = vld [vmem:[#allocation10 + $0x1a8] sm:$0xf0]  ;;  %v4376_v38 = vld [vmem:[#allocation10 + $0x18] sm:$0xf0] }
 0x461   :  { %v1843_v8 = vadd.f32 %v1842_v36, %v1841_v45  ;;  %v1853_v53 = vrot.slane %v1852_v50, 2 }
 0x463   :  { %v1844_v56 = vrot.slane %v1843_v8, 1  ;;  %v1854_v57 = vadd.f32 %v1853_v53, %v1852_v50  ;;  %v5184_v50 = vld [vmem:[#allocation10 + $0x74] sm:$0xf] }
 0x464   :  { %2550 = vmatpush.bf16.msrb.mxu0 %v4559_v33  ;;  %v4379_v33 = vor.u32 %v5172_v37, %v4376_v38 }
 0x465   :  { %v1845_v63 = vadd.f32 %v1844_v56, %v1843_v8  ;;  %v1855_v0 = vrot.slane %v1854_v57, 1  ;;  %v4616_v8 = vld [vmem:[#allocation10 + $0x1f8] sm:$0xf0]  ;;  %v4427_v56 = vor.u32 %v5184_v50, %v4424_v51 }
 0x467   :  { %v1856_v6 = vadd.f32 %v1855_v0, %v1854_v57  ;;  %v1857_v9 = vmul.f32 0.0625, %v1845_v63  ;;  %v4619_v57 = vor.u32 %v5232_v18, %v4616_v8  ;;  %v4408_v63 = vld [vmem:[#allocation10 + $0x58] sm:$0xf0]  ;;  %v5228_v0 = vld [vmem:[#allocation10 + $0x1d4] sm:$0xf] }
 0x468   :  { %v5148_v8 = vld [vmem:[%s7342_s13 + $0x54] sm:$0xf] }
 0x469   :  { %v1858_v14 = vmul.f32 0.0625, %v1856_v6  ;;  %v1859_v47 = vmul.f32 %v1857_v9, %v1857_v9 }
 0x46b   :  { %v1860_v1 = vsub.f32 %v1858_v14, %v1859_v47  ;;  %v4595_v14 = vor.u32 %v5226_v3, %v4592_v11  ;;  %v5176_v47 = vld [vmem:[#allocation10 + $0x34] sm:$0xf]  ;;  %v5166_v3 = vld [vmem:[%s7342_s13 + $0xe4] sm:$0xf]  ;;  %v4736_v11 = vld [vmem:[%s7342_s13 + $0xe8] sm:$0xf0] }
 0x46c   :  { %v4395_v17 = vor.u32 %v5176_v47, %v4392_v15  ;;  %v4739_v47 = vor.u32 %v5166_v3, %v4736_v11 }
 0x46d   :  { %v1861_v29 = vmax.f32 %v1860_v1, 0.0  ;;  %v5224_v1 = vld [vmem:[#allocation10 + $0x1b4] sm:$0xf] }
 0x46e   :  { %v4587_v25 = vor.u32 %v5224_v1, %v4584_v4  ;;  %v5142_v4 = vld [vmem:[%s7342_s13 + $0x24] sm:$0xf] }
 0x46f   :  { %v1862_v32 = vadd.f32 1e-05, %v1861_v29  ;;  %v5222_v29 = vld [vmem:[#allocation10 + $0x1a4] sm:$0xf] }
 0x470   :  { %v4579_v24 = vor.u32 %v5222_v29, %v4576_v30  ;;  %v5164_v29 = vld [vmem:[%s7342_s13 + $0xd4] sm:$0xf]  ;;  %v4728_v30 = vld [vmem:[%s7342_s13 + $0xd8] sm:$0xf0] }
 0x471   :  { %5334 = vrsqrt.f32 %v1862_v32  ;;  %vm1869_vm13 = vweird.f32 %v1862_v32  ;;  %v4731_v37 = vor.u32 %v5164_v29, %v4728_v30  ;;  %v5264_v30 = vld [vmem:[#allocation15 + $0x30] sm:$0xff] }
 0x477   :  { %v5335_v44 = vpop.eup %5334 }
 0x478   :  { %v1864_v40 = vmul.f32 %v5335_v44, %v1862_v32  ;;  %vm1870_vm12 = vweird.f32 %v5335_v44  ;;  %v4387_v32 = vor.u32 %v5174_v31, %v4384_v27 }
 0x479   :  { %vm1871_vm14 = vmor %vm1869_vm13, %vm1870_vm12 }
 0x47a   :  { %v1865_v5 = vmul.f32 %v5335_v44, %v1864_v40  ;;  %v5170_v40 = vld [vmem:[#allocation10 + $0x4] sm:$0xf] }
 0x47c   :  { %v1866_v34 = vmul.f32 0.5, %v1865_v5  ;;  %v4368_v5 = vld [vmem:[#allocation10 + $0x8] sm:$0xf0] }
 0x47e   :  { %v1867_v43 = vsub.f32 1.5, %v1866_v34  ;;  %v5218_v34 = vld [vmem:[#allocation10 + $0x184] sm:$0xf] }
 0x480   :  { %v1868_v26 = vmul.f32 %v5335_v44, %v1867_v43  ;;  %v4560_v43 = vld [vmem:[#allocation10 + $0x188] sm:$0xf0] }
 0x482   :  { %v1872_v54 = vsel %vm1871_vm14, %v5335_v44, %v1868_v26  ;;  %v4571_v44 = vor.u32 %v5220_v39, %v4568_v16  ;;  %v4371_v26 = vor.u32 %v5170_v40, %v4368_v5  ;;  %v4632_v40 = vld [vmem:[%s7342_s13 + $0x18] sm:$0xf0] }
 0x483   :  { %v1873_v23 = vmul.f32 %v1872_v54, %v6819_v35  ;;  %v4563_v54 = vor.u32 %v5218_v34, %v4560_v43 }
 0x485   :  { %v1874_v45 = vmul.f32 %v1873_v23, %v1857_v9  ;;  %v1879_v7 = vperm.slane %v1873_v23, 1  ;;  %v4603_v9 = vor.u32 %v5228_v0, %v4600_v58  ;;  %v6894_v23 = vld [vmem:[#allocation9] sm:$0x77]  ;;  %v5144_v58 = vld [vmem:[%s7342_s13 + $0x34] sm:$0xf] }
 0x486   :  { %v1897_v50 = vperm.slane %v6894_v23, 4 }
 0x487   :  { %v1876_v46 = vrot.slane %v1874_v45, 7  ;;  %v1880_v52 = vmul.f32 %v1879_v7, %v6858_v2  ;;  %v1881_v59 = vmul.f32 %v1879_v7, %v6874_v20  ;;  %v4611_v2 = vor.u32 %v5230_v62, %v4608_v22  ;;  %v5180_v20 = vld [vmem:[#allocation10 + $0x54] sm:$0xf]  ;;  %v5152_v45 = vld [vmem:[%s7342_s13 + $0x74] sm:$0xf] }
 0x488   :  { %v4411_v6 = vor.u32 %v5180_v20, %v4408_v63  ;;  %v5168_v62 = vld [vmem:[%s7342_s13 + $0xf4] sm:$0xf]  ;;  %v4744_v22 = vld [vmem:[%s7342_s13 + $0xf8] sm:$0xf0] }
 0x489   :  { %v1878_v36 = vsub.f32 %v6819_v35, %v1876_v46  ;;  %v4419_v35 = vor.u32 %v5182_v60, %v4416_v28  ;;  %v4680_v46 = vld [vmem:[%s7342_s13 + $0x78] sm:$0xf0]  ;;  %v5146_v60 = vld [vmem:[%s7342_s13 + $0x44] sm:$0xf]  ;;  %v4747_v20 = vor.u32 %v5168_v62, %v4744_v22 }
 0x48a   :  { %v4683_v7 = vor.u32 %v5152_v45, %v4680_v46  ;;  %v4720_v45 = vld [vmem:[%s7342_s13 + $0xc8] sm:$0xf0]  ;;  %v4712_v62 = vld [vmem:[%s7342_s13 + $0xb8] sm:$0xf0] }
 0x48b   :  { %v1882_v10 = vperm.slane %v1878_v36, 2  ;;  %v1896_v36 = vperm.slane %v6894_v23, 0 }
 0x48c   :  { %2801 = vmatpush.bf16.msra.mxu3 %v4683_v7 }
 0x48d   :  { %v1883_v53 = vadd.f32 %v1882_v10, %v1880_v52  ;;  %v1884_v55 = vadd.f32 %v1882_v10, %v1881_v59  ;;  %v1900_v52 = vperm.slane %v1896_v36, 0  ;;  %v1901_v59 = vperm.slane %v1897_v50, 0  ;;  %v4678_v36 = vld [vmem:[%s7342_s13 + $0x70] sm:$0xf]  ;;  %v5153_v50 = vld [vmem:[%s7342_s13 + $0x74] sm:$0xf0] }
 0x48f   :  { %v1885_v61 = vpack.c.bf16 %v1884_v55, %v1883_v53  ;;  %v4664_v53 = vld [vmem:[%s7342_s13 + $0x58] sm:$0xf0] }
 0x490   :  { %v4667_v55 = vor.u32 %v5148_v8, %v4664_v53  ;;  %v5138_v53 = vld [vmem:[%s7342_s13 + $0x4] sm:$0xf] }
 0x491   :  { %4362 = vmatmul.msk.bf16.vlgmr.msra.gmra.mxu1 %vm388_vm0, %v1885_v61  ;;  %4363 = vmatmul.msk.bf16.vlgmr.msra.gmra.mxu0 %vm388_vm0, %v1885_v61  ;;  %v4656_v61 = vld [vmem:[%s7342_s13 + $0x48] sm:$0xf0] }
 0x492   :  { %2557 = vmatpush.bf16.msra.mxu1 %v4427_v56  ;;  %2599 = vmatpush.bf16.msra.mxu0 %v4619_v57  ;;  %v4659_v28 = vor.u32 %v5146_v60, %v4656_v61 }
 0x496   :  { %2558 = vmatpush.bf16.msra.mxu1 %v4419_v35  ;;  %2600 = vmatpush.bf16.msra.mxu0 %v4611_v2 }
 0x49a   :  { %2559 = vmatpush.bf16.msra.mxu1 %v4411_v6  ;;  %2601 = vmatpush.bf16.msra.mxu0 %v4603_v9  ;;  %v4648_v6 = vld [vmem:[%s7342_s13 + $0x38] sm:$0xf0] }
 0x49b   :  { %v4651_v49 = vor.u32 %v5144_v58, %v4648_v6 }
 0x49e   :  { %2560 = vmatpush.bf16.msra.mxu1 %v4403_v13  ;;  %2602 = vmatpush.bf16.msra.mxu0 %v4595_v14 }
 0x4a1   :  { %2509 = vmatmul.bf16.vlgmr.msrb.gmra.mxu1 %v6795_v21  ;;  %2551 = vmatmul.bf16.vlgmr.msrb.gmra.mxu0 %v6811_v19 }
 0x4a2   :  { %2561 = vmatpush.bf16.msra.mxu1 %v4395_v17  ;;  %2603 = vmatpush.bf16.msra.mxu0 %v4587_v25  ;;  %v4640_v17 = vld [vmem:[%s7342_s13 + $0x28] sm:$0xf0] }
 0x4a3   :  { %v4643_v27 = vor.u32 %v5142_v4, %v4640_v17  ;;  %v5158_v17 = vld [vmem:[%s7342_s13 + $0xa4] sm:$0xf] }
 0x4a6   :  { %2562 = vmatpush.bf16.msra.mxu1 %v4387_v32  ;;  %2604 = vmatpush.bf16.msra.mxu0 %v4579_v24 }
 0x4aa   :  { %2563 = vmatpush.bf16.msra.mxu1 %v4379_v33  ;;  %2605 = vmatpush.bf16.msra.mxu0 %v4571_v44  ;;  %v5140_v44 = vld [vmem:[%s7342_s13 + $0x14] sm:$0xf] }
 0x4ab   :  { %v4635_v46 = vor.u32 %v5140_v44, %v4632_v40  ;;  %v5165_v44 = vld [vmem:[%s7342_s13 + $0xd4] sm:$0xf0] }
 0x4ae   :  { %2564 = vmatpush.bf16.msra.mxu1 %v4371_v26  ;;  %2606 = vmatpush.bf16.msra.mxu0 %v4563_v54  ;;  %v5162_v54 = vld [vmem:[%s7342_s13 + $0xc4] sm:$0xf] }
 0x4af   :  { %v4723_v7 = vor.u32 %v5162_v54, %v4720_v45  ;;  %v5156_v45 = vld [vmem:[%s7342_s13 + $0x94] sm:$0xf] }
 0x4b1   :  { %2565 = vmatmul.bf16.vlgmr.msra.gmra.mxu1 %v6795_v21  ;;  %2607 = vmatmul.bf16.vlgmr.msra.gmra.mxu0 %v6811_v19  ;;  %v5150_v21 = vld [vmem:[%s7342_s13 + $0x64] sm:$0xf]  ;;  %v4672_v19 = vld [vmem:[%s7342_s13 + $0x68] sm:$0xf0] }
 0x4b2   :  { %v4675_v51 = vor.u32 %v5150_v21, %v4672_v19  ;;  %2815 = vmatpush.bf16.msrb.mxu0 %v4747_v20  ;;  %v4742_v21 = vld [vmem:[%s7342_s13 + $0xf0] sm:$0xf]  ;;  %v4670_v20 = vld [vmem:[%s7342_s13 + $0x60] sm:$0xf] }
 0x4b4   :  { %2802 = vmatpush.bf16.msra.mxu3 %v4675_v51 }
 0x4b6   :  { %2816 = vmatpush.bf16.msrb.mxu0 %v4739_v47 }
 0x4b8   :  { %2803 = vmatpush.bf16.msra.mxu3 %v4667_v55  ;;  %v4624_v55 = vld [vmem:[%s7342_s13 + $0x8] sm:$0xf0] }
 0x4b9   :  { %v4627_v22 = vor.u32 %v5138_v53, %v4624_v55 }
 0x4ba   :  { %2817 = vmatpush.bf16.msrb.mxu0 %v4731_v37 }
 0x4bc   :  { %2804 = vmatpush.bf16.msra.mxu3 %v4659_v28  ;;  %v5160_v28 = vld [vmem:[%s7342_s13 + $0xb4] sm:$0xf] }
 0x4be   :  { %2818 = vmatpush.bf16.msrb.mxu0 %v4723_v7 }
 0x4c0   :  { %2805 = vmatpush.bf16.msra.mxu3 %v4651_v49  ;;  %v5167_v49 = vld [vmem:[%s7342_s13 + $0xe4] sm:$0xf0] }
 0x4c4   :  { %2806 = vmatpush.bf16.msra.mxu3 %v4643_v27  ;;  %v4704_v27 = vld [vmem:[%s7342_s13 + $0xa8] sm:$0xf0] }
 0x4c5   :  { %v4707_v29 = vor.u32 %v5158_v17, %v4704_v27  ;;  %v5260_v27 = vld [vmem:[#allocation15 + $0x10] sm:$0xff] }
 0x4c8   :  { %2807 = vmatpush.bf16.msra.mxu3 %v4635_v46  ;;  %v4696_v46 = vld [vmem:[%s7342_s13 + $0x98] sm:$0xf0] }
 0x4c9   :  { %v4699_v7 = vor.u32 %v5156_v45, %v4696_v46  ;;  %v4686_v46 = vld [vmem:[%s7342_s13 + $0x80] sm:$0xf] }
 0x4cc   :  { %2808 = vmatpush.bf16.msra.mxu3 %v4627_v22  ;;  %v5145_v22 = vld [vmem:[%s7342_s13 + $0x34] sm:$0xf0] }
 0x50e   :  { %v1954_v10 = vpop.f32.mrf.mxu1  ;;  %v1968_v18 = vpop.f32.mrf.mxu0 }
 0x50f   :  { %v1955_v56 = vadd.f32 %v1954_v10, %v1900_v52  ;;  %v1969_v57 = vadd.f32 %v1968_v18, %v1901_v59  ;;  %v5169_v10 = vld [vmem:[%s7342_s13 + $0xf4] sm:$0xf0]  ;;  %v4679_v18 = vor.u32 %v5153_v50, %v4678_v36  ;;  %v4654_v50 = vld [vmem:[%s7342_s13 + $0x40] sm:$0xf] }
 0x510   :  { %v4743_v8 = vor.u32 %v5169_v10, %v4742_v21  ;;  %v5263_v36 = vld [vmem:[#allocation15 + $0x28] sm:$0xff]  ;;  %v5147_v21 = vld [vmem:[%s7342_s13 + $0x44] sm:$0xf0]  ;;  %v4718_v10 = vld [vmem:[%s7342_s13 + $0xc0] sm:$0xf] }
 0x511   :  { %v1973_v35 = vmul.f32 0.01, %v1955_v56  ;;  %v1974_v2 = vmul.f32 0.01, %v1969_v57  ;;  %2773 = vmatpush.bf16.msrb.mxu1 %v4679_v18  ;;  %v5163_v18 = vld [vmem:[%s7342_s13 + $0xc4] sm:$0xf0] }
 0x512   :  { %2787 = vmatpush.bf16.msra.mxu2 %v4743_v8  ;;  %v4655_v8 = vor.u32 %v5147_v21, %v4654_v50  ;;  %v4719_v53 = vor.u32 %v5163_v18, %v4718_v10  ;;  %v5270_v21 = vld [vmem:[#allocation15 + $0x60] sm:$0xff]  ;;  %v5269_v18 = vld [vmem:[#allocation15 + $0x58] sm:$0xff] }
 0x513   :  { %v6940_v13 = vmax.f32 %v1955_v56, %v1973_v35  ;;  %v6942_v14 = vmax.f32 %v1969_v57, %v1974_v2  ;;  %v4715_v35 = vor.u32 %v5160_v28, %v4712_v62  ;;  %v5265_v2 = vld [vmem:[#allocation15 + $0x38] sm:$0xff]  ;;  %v5262_v28 = vld [vmem:[#allocation15 + $0x20] sm:$0xff] }
 0x514   :  { %3304 = vmatpush.bf16.msrb.mxu3 %v5265_v2  ;;  %v4646_v62 = vld [vmem:[%s7342_s13 + $0x30] sm:$0xf] }
 0x515   :  { %v1995_v32 = vmul.f32 %v6940_v13, %v6940_v13  ;;  %v1996_v24 = vmul.f32 %v6942_v14, %v6942_v14  ;;  %2819 = vmatpush.bf16.msrb.mxu0 %v4715_v35 }
 0x516   :  { %v1956_v63 = vpop.f32.mrf.mxu1  ;;  %v1970_v0 = vpop.f32.mrf.mxu0 }
 0x517   :  { %v1957_v9 = vadd.f32 %v1956_v63, %v1900_v52  ;;  %v1971_v12 = vadd.f32 %v1970_v0, %v1901_v59  ;;  %v5151_v63 = vld [vmem:[%s7342_s13 + $0x64] sm:$0xf0] }
 0x518   :  { %v4671_v3 = vor.u32 %v5151_v63, %v4670_v20  ;;  %3305 = vmatpush.bf16.msrb.mxu3 %v5264_v30  ;;  %v4647_v20 = vor.u32 %v5145_v22, %v4646_v62  ;;  %v4710_v63 = vld [vmem:[%s7342_s13 + $0xb0] sm:$0xf]  ;;  %v5141_v30 = vld [vmem:[%s7342_s13 + $0x14] sm:$0xf0] }
 0x519   :  { %v1975_v15 = vmul.f32 0.01, %v1957_v9  ;;  %v1976_v1 = vmul.f32 0.01, %v1971_v12  ;;  %2820 = vmatpush.bf16.msrb.mxu0 %v4707_v29  ;;  %v4630_v29 = vld [vmem:[%s7342_s13 + $0x10] sm:$0xf] }
 0x51a   :  { %2774 = vmatpush.bf16.msrb.mxu1 %v4671_v3  ;;  %v4638_v3 = vld [vmem:[%s7342_s13 + $0x20] sm:$0xf] }
 0x51b   :  { %v6950_v25 = vmax.f32 %v1957_v9, %v1975_v15  ;;  %v6952_v31 = vmax.f32 %v1971_v12, %v1976_v1  ;;  %v4734_v12 = vld [vmem:[%s7342_s13 + $0xe0] sm:$0xf] }
 0x51c   :  { %v4735_v11 = vor.u32 %v5167_v49, %v4734_v12  ;;  %3306 = vmatpush.bf16.msrb.mxu3 %v5263_v36  ;;  %v5261_v49 = vld [vmem:[#allocation15 + $0x18] sm:$0xff] }
 0x51d   :  { %v1981_v38 = vadd.f32 %v6950_v25, %v6940_v13  ;;  %v1997_v39 = vmul.f32 %v6950_v25, %v6950_v25  ;;  %v1988_v16 = vadd.f32 %v6952_v31, %v6942_v14  ;;  %v1998_v33 = vmul.f32 %v6952_v31, %v6952_v31  ;;  %2821 = vmatpush.bf16.msrb.mxu0 %v4699_v7  ;;  %v5155_v7 = vld [vmem:[%s7342_s13 + $0x84] sm:$0xf0] }
 0x51e   :  { %2788 = vmatpush.bf16.msra.mxu2 %v4735_v11  ;;  %v5143_v11 = vld [vmem:[%s7342_s13 + $0x24] sm:$0xf0]  ;;  %v4687_v50 = vor.u32 %v5155_v7, %v4686_v46 }
 0x51f   :  { %v1982_v5 = vrot.slane %v1981_v38, 4  ;;  %v1999_v34 = vadd.f32 %v1997_v39, %v1995_v32  ;;  %v1989_v43 = vrot.slane %v1988_v16, 4  ;;  %v2006_v26 = vadd.f32 %v1998_v33, %v1996_v24  ;;  %v4662_v32 = vld [vmem:[%s7342_s13 + $0x50] sm:$0xf]  ;;  %v5149_v24 = vld [vmem:[%s7342_s13 + $0x54] sm:$0xf0] }
 0x520   :  { %v4726_v33 = vld [vmem:[%s7342_s13 + $0xd0] sm:$0xf]  ;;  %v4663_v40 = vor.u32 %v5149_v24, %v4662_v32  ;;  %3307 = vmatpush.bf16.msrb.mxu3 %v5262_v28  ;;  %v4631_v32 = vor.u32 %v5141_v30, %v4630_v29  ;;  %v5267_v28 = vld [vmem:[#allocation15 + $0x48] sm:$0xff] }
 0x521   :  { %v1983_v19 = vadd.f32 %v1982_v5, %v1981_v38  ;;  %v2000_v51 = vrot.slane %v1999_v34, 4  ;;  %v1990_v52 = vadd.f32 %v1989_v43, %v1988_v16  ;;  %v2007_v59 = vrot.slane %v2006_v26, 4  ;;  %v4694_v24 = vld [vmem:[%s7342_s13 + $0x90] sm:$0xf] }
 0x522   :  { %v4727_v5 = vor.u32 %v5165_v44, %v4726_v33  ;;  %2775 = vmatpush.bf16.msrb.mxu1 %v4663_v40  ;;  %v5259_v40 = vld [vmem:[#allocation15 + $0x8] sm:$0xff] }
 0x523   :  { %v1984_v56 = vrot.slane %v1983_v19, 2  ;;  %v2001_v57 = vadd.f32 %v2000_v51, %v1999_v34  ;;  %v1991_v60 = vrot.slane %v1990_v52, 2  ;;  %v2008_v61 = vadd.f32 %v2007_v59, %v2006_v26 }
 0x524   :  { %2789 = vmatpush.bf16.msra.mxu2 %v4727_v5  ;;  %3308 = vmatpush.bf16.msrb.mxu3 %v5261_v49  ;;  %v4622_v5 = vld [vmem:[%s7342_s13] sm:$0xf] }
 0x525   :  { %v1985_v0 = vadd.f32 %v1984_v56, %v1983_v19  ;;  %v2002_v58 = vrot.slane %v2001_v57, 2  ;;  %v1992_v6 = vadd.f32 %v1991_v60, %v1990_v52  ;;  %v2009_v9 = vrot.slane %v2008_v61, 2  ;;  %v4688_v60 = vld [vmem:[%s7342_s13 + $0x88] sm:$0xf0] }
 0x526   :  { %2776 = vmatpush.bf16.msrb.mxu1 %v4655_v8 }
 0x527   :  { %v1986_v47 = vrot.slane %v1985_v0, 1  ;;  %v2003_v15 = vadd.f32 %v2002_v58, %v2001_v57  ;;  %v1993_v1 = vrot.slane %v1992_v6, 1  ;;  %v2010_v4 = vadd.f32 %v2009_v9, %v2008_v61  ;;  %v5154_v57 = vld [vmem:[%s7342_s13 + $0x84] sm:$0xf] }
 0x528   :  { %2790 = vmatpush.bf16.msra.mxu2 %v4719_v53  ;;  %v4691_v61 = vor.u32 %v5154_v57, %v4688_v60  ;;  %3309 = vmatpush.bf16.msrb.mxu3 %v5260_v27 }
 0x529   :  { %v1987_v37 = vadd.f32 %v1986_v47, %v1985_v0  ;;  %v2004_v38 = vrot.slane %v2003_v15, 1  ;;  %v1994_v39 = vadd.f32 %v1993_v1, %v1992_v6  ;;  %v2011_v16 = vrot.slane %v2010_v4, 1  ;;  %v5161_v0 = vld [vmem:[%s7342_s13 + $0xb4] sm:$0xf0]  ;;  %v5273_v6 = vld [vmem:[#allocation15 + $0x78] sm:$0xff] }
 0x52a   :  { %2822 = vmatpush.bf16.msrb.mxu0 %v4691_v61  ;;  %v4711_v58 = vor.u32 %v5161_v0, %v4710_v63  ;;  %2777 = vmatpush.bf16.msrb.mxu1 %v4647_v20  ;;  %v4639_v47 = vor.u32 %v5143_v11, %v4638_v3  ;;  %v5159_v1 = vld [vmem:[%s7342_s13 + $0xa4] sm:$0xf0] }
 0x52b   :  { %v2005_v34 = vadd.f32 %v2004_v38, %v2003_v15  ;;  %v7038_v43 = vmul.f32 0.0625, %v1987_v37  ;;  %v2012_v26 = vadd.f32 %v2011_v16, %v2010_v4  ;;  %v7040_v54 = vmul.f32 0.0625, %v1994_v39  ;;  %v4702_v15 = vld [vmem:[%s7342_s13 + $0xa0] sm:$0xf]  ;;  %v5157_v37 = vld [vmem:[%s7342_s13 + $0x94] sm:$0xf0] }
 0x52c   :  { %2791 = vmatpush.bf16.msra.mxu2 %v4711_v58  ;;  %v5272_v4 = vld [vmem:[#allocation15 + $0x70] sm:$0xff]  ;;  %v4703_v17 = vor.u32 %v5159_v1, %v4702_v15  ;;  %v5271_v38 = vld [vmem:[#allocation15 + $0x68] sm:$0xff]  ;;  %v4695_v39 = vor.u32 %v5157_v37, %v4694_v24  ;;  %3310 = vmatpush.bf16.msrb.mxu3 %v5259_v40  ;;  %v2552_v40 = vpop.f32.mrf.mxu0 }
 0x52d   :  { %v2015_v19 = vmul.f32 0.0625, %v2005_v34  ;;  %v2017_v51 = vmul.f32 %v7038_v43, %v7038_v43  ;;  %v2016_v52 = vmul.f32 0.0625, %v2012_v26  ;;  %v2018_v59 = vmul.f32 %v7040_v54, %v7040_v54  ;;  %v5139_v34 = vld [vmem:[%s7342_s13 + $0x4] sm:$0xf0] }
 0x52e   :  { %3318 = vmatpush.bf16.msra.mxu0 %v5273_v6  ;;  %2778 = vmatpush.bf16.msrb.mxu1 %v4639_v47  ;;  %v4623_v45 = vor.u32 %v5139_v34, %v4622_v5 }
 0x52f   :  { %v2019_v55 = vsub.f32 %v2015_v19, %v2017_v51  ;;  %v2020_v56 = vsub.f32 %v2016_v52, %v2018_v59  ;;  %v5258_v59 = vld [vmem:[#allocation15] sm:$0xff] }
 0x530   :  { %2792 = vmatpush.bf16.msra.mxu2 %v4703_v17  ;;  %3311 = vmatpush.bf16.msrb.mxu3 %v5258_v59 }
 0x531   :  { %v2021_v35 = vmax.f32 %v2019_v55, 0.0  ;;  %v2022_v2 = vmax.f32 %v2020_v56, 0.0  ;;  %v5268_v56 = vld [vmem:[#allocation15 + $0x50] sm:$0xff] }
 0x532   :  { %3319 = vmatpush.bf16.msra.mxu0 %v5272_v4  ;;  %2779 = vmatpush.bf16.msrb.mxu1 %v4631_v32 }
 0x533   :  { %v7082_v9 = vadd.f32 1e-05, %v2021_v35  ;;  %v7084_v12 = vadd.f32 1e-05, %v2022_v2  ;;  %v5266_v2 = vld [vmem:[#allocation15 + $0x40] sm:$0xff] }
 0x534   :  { %2793 = vmatpush.bf16.msra.mxu2 %v4695_v39  ;;  %v5288_v39 = vld [vmem:[%s7353_s24 + $0x10] sm:$0xff] }
 0x535   :  { %5336 = vrsqrt.f32 %v7082_v9  ;;  %vm2041_vm2 = vweird.f32 %v7084_v12  ;;  %vm2031_vm4 = vweird.f32 %v7082_v9 }
 0x536   :  { %5338 = vrsqrt.f32 %v7084_v12  ;;  %3320 = vmatpush.bf16.msra.mxu0 %v5271_v38  ;;  %2780 = vmatpush.bf16.msrb.mxu1 %v4623_v45  ;;  %v2554_v45 = vpop.f32.mrf.mxu0 }
 0x538   :  { %2794 = vmatpush.bf16.msra.mxu2 %v4687_v50 }
 0x53a   :  { %3321 = vmatpush.bf16.msra.mxu0 %v5270_v21 }
 0x53b   :  { %v5337_v16 = vpop.eup %5336 }
 0x53c   :  { %v5339_v33 = vpop.eup %5338  ;;  %v2026_v44 = vmul.f32 %v5337_v16, %v7082_v9  ;;  %vm2032_vm1 = vweird.f32 %v5337_v16 }
 0x53d   :  { %v2036_v26 = vmul.f32 %v5339_v33, %v7084_v12  ;;  %vm2042_vm15 = vweird.f32 %v5339_v33  ;;  %vm2033_vm5 = vmor %vm2031_vm4, %vm2032_vm1 }
 0x53e   :  { %v2027_v36 = vmul.f32 %v5337_v16, %v2026_v44  ;;  %3322 = vmatpush.bf16.msra.mxu0 %v5269_v18  ;;  %vm2043_vm3 = vmor %vm2041_vm2, %vm2042_vm15  ;;  %v2538_v44 = vpop.f32.mrf.mxu3  ;;  %v2608_v50 = vpop.f32.mrf.mxu0 }
 0x53f   :  { %v2037_v19 = vmul.f32 %v5339_v33, %v2036_v26 }
 0x540   :  { %v2028_v51 = vmul.f32 0.5, %v2027_v36 }
 0x541   :  { %v2038_v52 = vmul.f32 0.5, %v2037_v19 }
 0x542   :  { %v2029_v10 = vsub.f32 1.5, %v2028_v51  ;;  %3323 = vmatpush.bf16.msra.mxu0 %v5268_v56 }
 0x543   :  { %v2039_v8 = vsub.f32 1.5, %v2038_v52 }
 0x544   :  { %v2030_v53 = vmul.f32 %v5337_v16, %v2029_v10 }
 0x545   :  { %v2040_v55 = vmul.f32 %v5339_v33, %v2039_v8  ;;  %v7165_v8 = vld [vmem:[#allocation12] sm:$0x77] }
 0x546   :  { %v2034_v61 = vsel %vm2033_vm5, %v5337_v16, %v2030_v53  ;;  %3324 = vmatpush.bf16.msra.mxu0 %v5267_v28  ;;  %v5287_v16 = vld [vmem:[%s7353_s24 + $0x8] sm:$0xff]  ;;  %v2540_v26 = vpop.f32.mrf.mxu3  ;;  %v2610_v18 = vpop.f32.mrf.mxu0 }
 0x547   :  { %v2044_v57 = vsel %vm2043_vm3, %v5339_v33, %v2040_v55  ;;  %v5286_v33 = vld [vmem:[%s7353_s24] sm:$0xff] }
 0x548   :  { %v2047_v60 = vrot.slane %v2044_v57, 4  ;;  %v2831_v57 = vperm.slane %v7165_v8, 0 }
 0x54a   :  { %v2048_v62 = vsel %vm745_vm10, %v2034_v61, %v2047_v60  ;;  %3325 = vmatpush.bf16.msra.mxu0 %v5266_v2 }
 0x54b   :  { %v2049_v22 = vrot.slane %v2048_v62, 7 }
 0x54d   :  { %v2051_v35 = vmul.f32 %v2049_v22, %v6894_v23  ;;  %v2832_v22 = vperm.slane %v7165_v8, 4 }
 0x54e   :  { %v2594_v36 = vpop.f32.mrf.mxu3 }
 0x54f   :  { %v2053_v20 = vperm.slane %v2051_v35, 1  ;;  %v2054_v63 = vperm.slane %v2051_v35, 5 }
 0x551   :  { %v2058_v0 = vmul.f32 %v2054_v63, %v7040_v54  ;;  %v2057_v58 = vmul.f32 %v2053_v20, %v7038_v43  ;;  %v2067_v49 = vperm.slane %v2054_v63, 1  ;;  %v2066_v11 = vperm.slane %v2053_v20, 1 }
 0x552   :  { %v2835_v63 = vperm.slane %v2831_v57, 0 }
 0x553   :  { %v2061_v6 = vrot.slane %v2058_v0, 4  ;;  %v2069_v1 = vmul.f32 %v2067_v49, %v6942_v14  ;;  %v2071_v4 = vmul.f32 %v2067_v49, %v6952_v31  ;;  %v2068_v54 = vmul.f32 %v2066_v11, %v6940_v13  ;;  %v5292_v13 = vld [vmem:[%s7353_s24 + $0x30] sm:$0xff]  ;;  %v5291_v14 = vld [vmem:[%s7353_s24 + $0x28] sm:$0xff]  ;;  %v5289_v31 = vld [vmem:[%s7353_s24 + $0x18] sm:$0xff] }
 0x554   :  { %v2070_v27 = vmul.f32 %v2066_v11, %v6950_v25  ;;  %v5290_v25 = vld [vmem:[%s7353_s24 + $0x20] sm:$0xff] }
 0x555   :  { %v2062_v9 = vsel %vm745_vm10, %v2057_v58, %v2061_v6 }
 0x556   :  { %v2063_v12 = vrot.slane %v2062_v9, 6  ;;  %v2596_v59 = vpop.f32.mrf.mxu3 }
 0x558   :  { %v2065_v3 = vsub.f32 %v6894_v23, %v2063_v12  ;;  %v5293_v23 = vld [vmem:[%s7353_s24 + $0x38] sm:$0xff]  ;;  %v2836_v12 = vperm.slane %v2832_v22, 0 }
 0x55a   :  { %v2074_v47 = vperm.slane %v2065_v3, 6  ;;  %v2073_v15 = vperm.slane %v2065_v3, 2 }
 0x55c   :  { %v2078_v17 = vperm.slane %v2074_v47, 2  ;;  %v2077_v43 = vperm.slane %v2073_v15, 2 }
 0x55e   :  { %v2082_v29 = vadd.f32 %v2078_v17, %v2071_v4  ;;  %v2079_v30 = vadd.f32 %v2077_v43, %v2068_v54  ;;  %v2081_v32 = vadd.f32 %v2077_v43, %v2070_v27  ;;  %v2080_v24 = vadd.f32 %v2078_v17, %v2069_v1 }
 0x560   :  { %v2083_v37 = vpack.c.bf16 %v2081_v32, %v2079_v30  ;;  %v2084_v38 = vpack.c.bf16 %v2082_v29, %v2080_v24 }
 0x562   :  { %2781 = vmatmul.bf16.vlgmr.msrb.gmra.mxu1 %v2083_v37  ;;  %2795 = vmatmul.bf16.vlgmr.msra.gmra.mxu2 %v2084_v38 }
 0x563   :  { %2809 = vmatmul.bf16.vlgmr.msra.gmra.mxu3 %v2083_v37  ;;  %2823 = vmatmul.bf16.vlgmr.msrb.gmra.mxu0 %v2084_v38 }
 0x564   :  { %3652 = vmatpush.bf16.msra.mxu3 %v5293_v23 }
 0x568   :  { %3653 = vmatpush.bf16.msra.mxu3 %v5292_v13 }
 0x56c   :  { %3654 = vmatpush.bf16.msra.mxu3 %v5291_v14 }
 0x570   :  { %3655 = vmatpush.bf16.msra.mxu3 %v5290_v25 }
 0x573   :  { %3312 = vmatmul.bf16.vlgmr.msrb.gmra.mxu3 %v6577_v42  ;;  %3326 = vmatmul.bf16.vlgmr.msra.gmra.mxu0 %v6575_v48  ;;  %v2510_v42 = vpop.f32.mrf.mxu1  ;;  %v2524_v48 = vpop.f32.mrf.mxu2 }
 0x574   :  { %3656 = vmatpush.bf16.msra.mxu3 %v5289_v31  ;;  %v2525_v19 = vadd.f32 %v2524_v48, %v2510_v42 }
 0x576   :  { %v2539_v10 = vadd.f32 %v2538_v44, %v2525_v19 }
 0x578   :  { %3657 = vmatpush.bf16.msra.mxu3 %v5288_v39  ;;  %v2553_v55 = vadd.f32 %v2552_v40, %v2539_v10 }
 0x57b   :  { %v2512_v5 = vpop.f32.mrf.mxu1  ;;  %v2526_v34 = vpop.f32.mrf.mxu2 }
 0x57c   :  { %3658 = vmatpush.bf16.msra.mxu3 %v5287_v16  ;;  %v2527_v56 = vadd.f32 %v2526_v34, %v2512_v5 }
 0x57e   :  { %v2541_v35 = vadd.f32 %v2540_v26, %v2527_v56  ;;  %v5248_v56 = vld [vmem:[%s7345_s16 + $0x70] sm:$0xff] }
 0x580   :  { %3659 = vmatpush.bf16.msra.mxu3 %v5286_v33  ;;  %v2555_v3 = vadd.f32 %v2554_v45, %v2541_v35 }
 0x583   :  { %3660 = vmatmul.bf16.vlgmr.msra.gmra.mxu3 %v6110_v41  ;;  %v2566_v46 = vpop.f32.mrf.mxu1  ;;  %v2580_v7 = vpop.f32.mrf.mxu2 }
 0x584   :  { %v2581_v52 = vadd.f32 %v2580_v7, %v2566_v46 }
 0x586   :  { %v2595_v53 = vadd.f32 %v2594_v36, %v2581_v52 }
 0x588   :  { %v2609_v61 = vadd.f32 %v2608_v50, %v2595_v53  ;;  %v5241_v50 = vld [vmem:[%s7345_s16 + $0x38] sm:$0xff] }
 0x589   :  { %3083 = vmatpush.bf16.msra.mxu1 %v5241_v50 }
 0x58b   :  { %v2568_v21 = vpop.f32.mrf.mxu1  ;;  %v2582_v51 = vpop.f32.mrf.mxu2 }
 0x58c   :  { %v2583_v28 = vadd.f32 %v2582_v51, %v2568_v21  ;;  %v5249_v21 = vld [vmem:[%s7345_s16 + $0x78] sm:$0xff] }
 0x58d   :  { %3097 = vmatpush.bf16.msrb.mxu2 %v5249_v21 }
 0x58e   :  { %v2597_v6 = vadd.f32 %v2596_v59, %v2583_v28 }
 0x590   :  { %v2611_v15 = vadd.f32 %v2610_v18, %v2597_v6 }
 0x591   :  { %3098 = vmatpush.bf16.msrb.mxu2 %v5248_v56 }
 0x5df   :  { %v2782_v41 = vpop.f32.mrf.mxu1 }
 0x5e0   :  { %v2783_v60 = vadd.f32 %v2782_v41, %v2553_v55  ;;  %v2824_v2 = vpop.f32.mrf.mxu0  ;;  %v5240_v55 = vld [vmem:[%s7345_s16 + $0x30] sm:$0xff] }
 0x5e1   :  { %3084 = vmatpush.bf16.msra.mxu1 %v5240_v55 }
 0x5e5   :  { %v2796_v62 = vpop.f32.mrf.mxu2 }
 0x5e6   :  { %v2797_v20 = vadd.f32 %v2796_v62, %v2783_v60  ;;  %v2810_v0 = vpop.f32.mrf.mxu3 }
 0x5e7   :  { %v2811_v58 = vadd.f32 %v2810_v0, %v2609_v61  ;;  %v2784_v49 = vpop.f32.mrf.mxu1 }
 0x5e8   :  { %v2837_v11 = vadd.f32 %v2835_v63, %v2797_v20  ;;  %v2785_v47 = vadd.f32 %v2784_v49, %v2555_v3  ;;  %v2826_v29 = vpop.f32.mrf.mxu0  ;;  %v5239_v20 = vld [vmem:[%s7345_s16 + $0x28] sm:$0xff] }
 0x5e9   :  { %v2825_v9 = vadd.f32 %v2824_v2, %v2811_v58  ;;  %3085 = vmatpush.bf16.msra.mxu1 %v5239_v20 }
 0x5ea   :  { %v2841_v17 = vmul.f32 0.01, %v2837_v11 }
 0x5eb   :  { %v2838_v1 = vadd.f32 %v2836_v12, %v2825_v9 }
 0x5ec   :  { %v7169_v37 = vmax.f32 %v2837_v11, %v2841_v17  ;;  %v5238_v11 = vld [vmem:[%s7345_s16 + $0x20] sm:$0xff] }
 0x5ed   :  { %v2798_v4 = vpop.f32.mrf.mxu2  ;;  %v2842_v32 = vmul.f32 0.01, %v2838_v1  ;;  %3086 = vmatpush.bf16.msra.mxu1 %v5238_v11 }
 0x5ee   :  { %v2799_v54 = vadd.f32 %v2798_v4, %v2785_v47  ;;  %v2812_v27 = vpop.f32.mrf.mxu3  ;;  %v2863_v31 = vmul.f32 %v7169_v37, %v7169_v37  ;;  %v5246_v47 = vld [vmem:[%s7345_s16 + $0x60] sm:$0xff] }
 0x5ef   :  { %v2813_v43 = vadd.f32 %v2812_v27, %v2611_v15  ;;  %v7173_v14 = vmax.f32 %v2838_v1, %v2842_v32  ;;  %v5237_v27 = vld [vmem:[%s7345_s16 + $0x18] sm:$0xff]  ;;  %v5244_v32 = vld [vmem:[%s7345_s16 + $0x50] sm:$0xff] }
 0x5f0   :  { %v2839_v30 = vadd.f32 %v2835_v63, %v2799_v54  ;;  %v5247_v63 = vld [vmem:[%s7345_s16 + $0x68] sm:$0xff] }
 0x5f1   :  { %v2827_v24 = vadd.f32 %v2826_v29, %v2813_v43  ;;  %v2864_v44 = vmul.f32 %v7173_v14, %v7173_v14  ;;  %3099 = vmatpush.bf16.msrb.mxu2 %v5247_v63  ;;  %v5245_v43 = vld [vmem:[%s7345_s16 + $0x58] sm:$0xff]  ;;  %3087 = vmatpush.bf16.msra.mxu1 %v5237_v27 }
 0x5f2   :  { %v2843_v38 = vmul.f32 0.01, %v2839_v30 }
 0x5f3   :  { %v2840_v23 = vadd.f32 %v2836_v12, %v2827_v24 }
 0x5f4   :  { %v7171_v13 = vmax.f32 %v2839_v30, %v2843_v38  ;;  %v5236_v30 = vld [vmem:[%s7345_s16 + $0x10] sm:$0xff]  ;;  %v5235_v38 = vld [vmem:[%s7345_s16 + $0x8] sm:$0xff] }
 0x5f5   :  { %v2844_v25 = vmul.f32 0.01, %v2840_v23  ;;  %3100 = vmatpush.bf16.msrb.mxu2 %v5246_v47  ;;  %3088 = vmatpush.bf16.msra.mxu1 %v5236_v30 }
 0x5f6   :  { %v2849_v39 = vadd.f32 %v7171_v13, %v7169_v37  ;;  %v2865_v16 = vmul.f32 %v7171_v13, %v7171_v13 }
 0x5f7   :  { %v7181_v33 = vmax.f32 %v2840_v23, %v2844_v25  ;;  %v5243_v23 = vld [vmem:[%s7345_s16 + $0x48] sm:$0xff] }
 0x5f8   :  { %v2850_v42 = vrot.slane %v2849_v39, 4  ;;  %v2867_v48 = vadd.f32 %v2865_v16, %v2863_v31  ;;  %v5242_v16 = vld [vmem:[%s7345_s16 + $0x40] sm:$0xff] }
 0x5f9   :  { %v2856_v40 = vadd.f32 %v7181_v33, %v7173_v14  ;;  %v2866_v5 = vmul.f32 %v7181_v33, %v7181_v33  ;;  %3101 = vmatpush.bf16.msrb.mxu2 %v5245_v43  ;;  %3089 = vmatpush.bf16.msra.mxu1 %v5235_v38 }
 0x5fa   :  { %v2851_v34 = vadd.f32 %v2850_v42, %v2849_v39  ;;  %v2868_v26 = vrot.slane %v2867_v48, 4  ;;  %v5234_v39 = vld [vmem:[%s7345_s16] sm:$0xff] }
 0x5fb   :  { %v2857_v45 = vrot.slane %v2856_v40, 4  ;;  %v2874_v46 = vadd.f32 %v2866_v5, %v2864_v44 }
 0x5fc   :  { %v2852_v7 = vrot.slane %v2851_v34, 2  ;;  %v2869_v36 = vadd.f32 %v2868_v26, %v2867_v48 }
 0x5fd   :  { %v2858_v19 = vadd.f32 %v2857_v45, %v2856_v40  ;;  %v2875_v51 = vrot.slane %v2874_v46, 4  ;;  %3102 = vmatpush.bf16.msrb.mxu2 %v5244_v32  ;;  %3090 = vmatpush.bf16.msra.mxu1 %v5234_v39 }
 0x5fe   :  { %v2853_v52 = vadd.f32 %v2852_v7, %v2851_v34  ;;  %v2870_v59 = vrot.slane %v2869_v36, 2 }
 0x5ff   :  { %v2859_v10 = vrot.slane %v2858_v19, 2  ;;  %v2876_v18 = vadd.f32 %v2875_v51, %v2874_v46 }
 0x600   :  { %v2854_v41 = vrot.slane %v2853_v52, 1  ;;  %v2871_v53 = vadd.f32 %v2870_v59, %v2869_v36 }
 0x601   :  { %v2860_v57 = vadd.f32 %v2859_v10, %v2858_v19  ;;  %v2877_v60 = vrot.slane %v2876_v18, 2  ;;  %3103 = vmatpush.bf16.msrb.mxu2 %v5243_v23  ;;  %v5255_v23 = vld [vmem:[%s7347_s18 + $0x28] sm:$0xff] }
 0x602   :  { %v2855_v61 = vadd.f32 %v2854_v41, %v2853_v52  ;;  %v2872_v28 = vrot.slane %v2871_v53, 1 }
 0x603   :  { %v2861_v62 = vrot.slane %v2860_v57, 1  ;;  %v2878_v22 = vadd.f32 %v2877_v60, %v2876_v18 }
 0x604   :  { %v2873_v35 = vadd.f32 %v2872_v28, %v2871_v53  ;;  %v7201_v2 = vmul.f32 0.0625, %v2855_v61 }
 0x605   :  { %v2862_v0 = vadd.f32 %v2861_v62, %v2860_v57  ;;  %v2879_v58 = vrot.slane %v2878_v22, 1  ;;  %3104 = vmatpush.bf16.msrb.mxu2 %v5242_v16 }
 0x606   :  { %v2883_v6 = vmul.f32 0.0625, %v2873_v35  ;;  %v2885_v9 = vmul.f32 %v7201_v2, %v7201_v2 }
 0x607   :  { %v2880_v12 = vadd.f32 %v2879_v58, %v2878_v22  ;;  %v2882_v49 = vmul.f32 0.0625, %v2862_v0 }
 0x608   :  { %v2887_v3 = vsub.f32 %v2883_v6, %v2885_v9 }
 0x609   :  { %v2884_v15 = vmul.f32 0.0625, %v2880_v12  ;;  %v2886_v1 = vmul.f32 %v2882_v49, %v2882_v49 }
 0x60a   :  { %v2889_v4 = vmax.f32 %v2887_v3, 0.0 }
 0x60b   :  { %v2888_v17 = vsub.f32 %v2884_v15, %v2886_v1 }
 0x60c   :  { %v2891_v54 = vadd.f32 1e-05, %v2889_v4  ;;  %v5257_v4 = vld [vmem:[%s7347_s18 + $0x38] sm:$0xff] }
 0x60d   :  { %v2890_v29 = vmax.f32 %v2888_v17, 0.0  ;;  %3380 = vmatpush.bf16.msrb.mxu1 %v5257_v4 }
 0x60e   :  { %5340 = vrsqrt.f32 %v2891_v54  ;;  %vm2899_vm11 = vweird.f32 %v2891_v54 }
 0x60f   :  { %v2892_v24 = vadd.f32 1e-05, %v2890_v29  ;;  %v5256_v29 = vld [vmem:[%s7347_s18 + $0x30] sm:$0xff] }
 0x611   :  { %5342 = vrsqrt.f32 %v2892_v24  ;;  %vm2909_vm8 = vweird.f32 %v2892_v24  ;;  %3381 = vmatpush.bf16.msrb.mxu1 %v5256_v29 }
 0x614   :  { %v5341_v25 = vpop.eup %5340 }
 0x615   :  { %v2894_v31 = vmul.f32 %v5341_v25, %v2891_v54  ;;  %vm2900_vm7 = vweird.f32 %v5341_v25  ;;  %3382 = vmatpush.bf16.msrb.mxu1 %v5255_v23 }
 0x616   :  { %vm2901_vm12 = vmor %vm2899_vm11, %vm2900_vm7 }
 0x617   :  { %v5343_v42 = vpop.eup %5342  ;;  %v2895_v48 = vmul.f32 %v5341_v25, %v2894_v31 }
 0x618   :  { %v2904_v44 = vmul.f32 %v5343_v42, %v2892_v24  ;;  %vm2910_vm6 = vweird.f32 %v5343_v42 }
 0x619   :  { %v2896_v40 = vmul.f32 0.5, %v2895_v48  ;;  %vm2911_vm9 = vmor %vm2909_vm8, %vm2910_vm6 }
 0x61a   :  { %v2905_v5 = vmul.f32 %v5343_v42, %v2904_v44 }
 0x61b   :  { %v2897_v34 = vsub.f32 1.5, %v2896_v40 }
 0x61c   :  { %v2906_v26 = vmul.f32 0.5, %v2905_v5 }
 0x61d   :  { %v2898_v46 = vmul.f32 %v5341_v25, %v2897_v34  ;;  %v5253_v34 = vld [vmem:[%s7347_s18 + $0x18] sm:$0xff] }
 0x61e   :  { %v2907_v45 = vsub.f32 1.5, %v2906_v26 }
 0x61f   :  { %v2902_v21 = vsel %vm2901_vm12, %v5341_v25, %v2898_v46 }
 0x620   :  { %v2908_v7 = vmul.f32 %v5343_v42, %v2907_v45 }
 0x622   :  { %v2912_v36 = vsel %vm2911_vm9, %v5343_v42, %v2908_v7  ;;  %v5254_v42 = vld [vmem:[%s7347_s18 + $0x20] sm:$0xff] }
 0x623   :  { %v2915_v50 = vrot.slane %v2912_v36, 4  ;;  %3383 = vmatpush.bf16.msrb.mxu1 %v5254_v42  ;;  %v5252_v36 = vld [vmem:[%s7347_s18 + $0x10] sm:$0xff] }
 0x625   :  { %v2916_v19 = vsel %vm745_vm10, %v2902_v21, %v2915_v50 }
 0x626   :  { %v2917_v51 = vrot.slane %v2916_v19, 7 }
 0x627   :  { %3384 = vmatpush.bf16.msrb.mxu1 %v5253_v34 }
 0x628   :  { %v2919_v52 = vmul.f32 %v2917_v51, %v7165_v8 }
 0x62a   :  { %v2922_v59 = vperm.slane %v2919_v52, 5  ;;  %v2921_v10 = vperm.slane %v2919_v52, 1  ;;  %v5251_v52 = vld [vmem:[%s7347_s18 + $0x8] sm:$0xff] }
 0x62b   :  { %3385 = vmatpush.bf16.msrb.mxu1 %v5252_v36 }
 0x62c   :  { %v2926_v18 = vmul.f32 %v2922_v59, %v2882_v49  ;;  %v2925_v53 = vmul.f32 %v2921_v10, %v7201_v2  ;;  %v2935_v57 = vperm.slane %v2922_v59, 1  ;;  %v2934_v60 = vperm.slane %v2921_v10, 1 }
 0x62e   :  { %v2929_v41 = vrot.slane %v2926_v18, 4  ;;  %v2939_v22 = vmul.f32 %v2935_v57, %v7181_v33  ;;  %v2936_v35 = vmul.f32 %v2934_v60, %v7169_v37  ;;  %v2938_v20 = vmul.f32 %v2934_v60, %v7171_v13  ;;  %v5250_v18 = vld [vmem:[%s7347_s18] sm:$0xff] }
 0x62f   :  { %v2937_v0 = vmul.f32 %v2935_v57, %v7173_v14  ;;  %3386 = vmatpush.bf16.msrb.mxu1 %v5251_v52  ;;  %v5275_v52 = vld [vmem:[%s7350_s21 + $0x8] sm:$0xff] }
 0x630   :  { %v2930_v55 = vsel %vm745_vm10, %v2925_v53, %v2929_v41 }
 0x631   :  { %v2931_v56 = vrot.slane %v2930_v55, 6 }
 0x633   :  { %v2933_v61 = vsub.f32 %v7165_v8, %v2931_v56  ;;  %v7250_v8 = vld [vmem:[#allocation13] sm:$0x7]  ;;  %3387 = vmatpush.bf16.msrb.mxu1 %v5250_v18 }
 0x634   :  { %v2986_v33 = vperm.slane %v7250_v8, 0 }
 0x635   :  { %v2941_v28 = vperm.slane %v2933_v61, 2  ;;  %v2942_v62 = vperm.slane %v2933_v61, 6 }
 0x637   :  { %v2945_v63 = vperm.slane %v2941_v28, 2  ;;  %v2946_v58 = vperm.slane %v2942_v62, 2 }
 0x639   :  { %v2947_v2 = vadd.f32 %v2945_v63, %v2936_v35  ;;  %v2949_v6 = vadd.f32 %v2945_v63, %v2938_v20  ;;  %v2948_v9 = vadd.f32 %v2946_v58, %v2937_v0  ;;  %v2950_v12 = vadd.f32 %v2946_v58, %v2939_v22 }
 0x63b   :  { %v2951_v49 = vpack.c.bf16 %v2949_v6, %v2947_v2  ;;  %v2952_v3 = vpack.c.bf16 %v2950_v12, %v2948_v9 }
 0x63d   :  { %3091 = vmatmul.bf16.vlgmr.msra.gmra.mxu1 %v2951_v49  ;;  %3105 = vmatmul.bf16.vlgmr.msrb.gmra.mxu2 %v2952_v3  ;;  %v3313_v49 = vpop.f32.mrf.mxu3  ;;  %v3327_v3 = vpop.f32.mrf.mxu0 }
 0x6ba   :  { %v3092_v11 = vpop.f32.mrf.mxu1 }
 0x6bb   :  { %v3093_v47 = vadd.f32 %v3092_v11, %v2986_v33  ;;  %v7279_v11 = vld [vmem:[#allocation16] sm:$0x7] }
 0x6c0   :  { %v3106_v37 = vpop.f32.mrf.mxu2 }
 0x6c1   :  { %v3107_v13 = vadd.f32 %v3106_v37, %v3093_v47 }
 0x6c2   :  { %v3094_v15 = vpop.f32.mrf.mxu1 }
 0x6c3   :  { %v3111_v1 = vmul.f32 0.01, %v3107_v13  ;;  %v3095_v14 = vadd.f32 %v3094_v15, %v2986_v33  ;;  %v3328_v33 = vadd.f32 %v3327_v3, %v3313_v49  ;;  %v3315_v15 = vpop.f32.mrf.mxu3 }
 0x6c5   :  { %v3113_v27 = vmax.f32 %v3107_v13, %v3111_v1  ;;  %v3395_v13 = vperm.slane %v7279_v11, 0 }
 0x6c7   :  { %v3122_v32 = vmul.f32 %v3113_v27, %v3113_v27 }
 0x6c8   :  { %v3108_v17 = vpop.f32.mrf.mxu2 }
 0x6c9   :  { %v3109_v54 = vadd.f32 %v3108_v17, %v3095_v14  ;;  %v3329_v14 = vpop.f32.mrf.mxu0 }
 0x6cb   :  { %v3112_v43 = vmul.f32 0.01, %v3109_v54 }
 0x6cd   :  { %v3114_v30 = vmax.f32 %v3109_v54, %v3112_v43 }
 0x6cf   :  { %v3115_v24 = vadd.f32 %v3114_v30, %v3113_v27  ;;  %v3123_v38 = vmul.f32 %v3114_v30, %v3114_v30 }
 0x6d1   :  { %v3116_v25 = vrot.slane %v3115_v24, 4  ;;  %v3124_v31 = vadd.f32 %v3123_v38, %v3122_v32  ;;  %v5280_v32 = vld [vmem:[%s7350_s21 + $0x30] sm:$0xff] }
 0x6d3   :  { %v3117_v39 = vadd.f32 %v3116_v25, %v3115_v24  ;;  %v3125_v16 = vrot.slane %v3124_v31, 4 }
 0x6d5   :  { %v3118_v48 = vrot.slane %v3117_v39, 2  ;;  %v3126_v44 = vadd.f32 %v3125_v16, %v3124_v31  ;;  %v5279_v31 = vld [vmem:[%s7350_s21 + $0x28] sm:$0xff] }
 0x6d7   :  { %v3119_v40 = vadd.f32 %v3118_v48, %v3117_v39  ;;  %v3127_v5 = vrot.slane %v3126_v44, 2 }
 0x6d9   :  { %v3120_v26 = vrot.slane %v3119_v40, 1  ;;  %v3128_v45 = vadd.f32 %v3127_v5, %v3126_v44  ;;  %v5278_v44 = vld [vmem:[%s7350_s21 + $0x20] sm:$0xff] }
 0x6db   :  { %v3121_v46 = vadd.f32 %v3120_v26, %v3119_v40  ;;  %v3129_v7 = vrot.slane %v3128_v45, 1 }
 0x6dd   :  { %v3130_v50 = vadd.f32 %v3129_v7, %v3128_v45  ;;  %v3131_v21 = vmul.f32 0.0625, %v3121_v46  ;;  %v5277_v45 = vld [vmem:[%s7350_s21 + $0x18] sm:$0xff] }
 0x6df   :  { %v3132_v19 = vmul.f32 0.0625, %v3130_v50  ;;  %v3133_v51 = vmul.f32 %v3131_v21, %v3131_v21 }
 0x6e1   :  { %v3134_v59 = vsub.f32 %v3132_v19, %v3133_v51 }
 0x6e3   :  { %v3135_v10 = vmax.f32 %v3134_v59, 0.0 }
 0x6e5   :  { %v3136_v41 = vadd.f32 1e-05, %v3135_v10 }
 0x6e7   :  { %5344 = vrsqrt.f32 %v3136_v41  ;;  %vm3143_vm13 = vweird.f32 %v3136_v41 }
 0x6ed   :  { %v5345_v53 = vpop.eup %5344 }
 0x6ee   :  { %v3138_v55 = vmul.f32 %v5345_v53, %v3136_v41  ;;  %vm3144_vm10 = vweird.f32 %v5345_v53  ;;  %v5274_v41 = vld [vmem:[%s7350_s21] sm:$0xff] }
 0x6ef   :  { %vm3145_vm14 = vmor %vm3143_vm13, %vm3144_vm10 }
 0x6f0   :  { %v3139_v56 = vmul.f32 %v5345_v53, %v3138_v55 }
 0x6f2   :  { %v3140_v57 = vmul.f32 0.5, %v3139_v56 }
 0x6f4   :  { %v3141_v60 = vsub.f32 1.5, %v3140_v57 }
 0x6f6   :  { %v3142_v61 = vmul.f32 %v5345_v53, %v3141_v60 }
 0x6f8   :  { %v3146_v28 = vsel %vm3145_vm14, %v5345_v53, %v3142_v61 }
 0x6f9   :  { %v3147_v62 = vmul.f32 %v3146_v28, %v7250_v8 }
 0x6fb   :  { %v3148_v22 = vmul.f32 %v3147_v62, %v3131_v21  ;;  %v3153_v20 = vperm.slane %v3147_v62, 1  ;;  %v5276_v21 = vld [vmem:[%s7350_s21 + $0x10] sm:$0xff] }
 0x6fd   :  { %v3150_v35 = vrot.slane %v3148_v22, 7  ;;  %v3154_v0 = vmul.f32 %v3153_v20, %v3113_v27  ;;  %v3155_v58 = vmul.f32 %v3153_v20, %v3114_v30  ;;  %v5281_v27 = vld [vmem:[%s7350_s21 + $0x38] sm:$0xff] }
 0x6fe   :  { %3513 = vmatpush.bf16.msra.mxu2 %v5281_v27 }
 0x6ff   :  { %v3152_v63 = vsub.f32 %v7250_v8, %v3150_v35  ;;  %v3330_v8 = vadd.f32 %v3329_v14, %v3315_v15 }
 0x701   :  { %v3156_v2 = vperm.slane %v3152_v63, 2 }
 0x702   :  { %3514 = vmatpush.bf16.msra.mxu2 %v5280_v32 }
 0x703   :  { %v3158_v6 = vadd.f32 %v3156_v2, %v3155_v58  ;;  %v3157_v9 = vadd.f32 %v3156_v2, %v3154_v0 }
 0x705   :  { %v3159_v12 = vpack.c.bf16 %v3158_v6, %v3157_v9 }
 0x706   :  { %3515 = vmatpush.bf16.msra.mxu2 %v5279_v31 }
 0x707   :  { %3388 = vmatmul.bf16.vlgmr.msrb.gmra.mxu1 %v3159_v12 }
 0x70a   :  { %3516 = vmatpush.bf16.msra.mxu2 %v5278_v44 }
 0x70e   :  { %3517 = vmatpush.bf16.msra.mxu2 %v5277_v45 }
 0x712   :  { %3518 = vmatpush.bf16.msra.mxu2 %v5276_v21 }
 0x716   :  { %3519 = vmatpush.bf16.msra.mxu2 %v5275_v52 }
 0x71a   :  { %3520 = vmatpush.bf16.msra.mxu2 %v5274_v41 }
 0x784   :  { %v3389_v37 = vpop.f32.mrf.mxu1 }
 0x785   :  { %v3390_v47 = vadd.f32 %v3389_v37, %v3328_v33  ;;  %v3463_v33 = vld [vmem:[#allocation18] sm:$0x7] }
 0x786   :  { %v3464_v37 = vperm.slane %v3463_v33, 0 }
 0x787   :  { %v3396_v1 = vadd.f32 %v3395_v13, %v3390_v47 }
 0x789   :  { %v3398_v17 = vmul.f32 0.01, %v3396_v1 }
 0x78b   :  { %v3400_v29 = vmax.f32 %v3396_v1, %v3398_v17 }
 0x78c   :  { %v3391_v4 = vpop.f32.mrf.mxu1 }
 0x78d   :  { %v3392_v54 = vadd.f32 %v3391_v4, %v3330_v8  ;;  %v3409_v38 = vmul.f32 %v3400_v29, %v3400_v29 }
 0x78f   :  { %v3397_v43 = vadd.f32 %v3395_v13, %v3392_v54 }
 0x791   :  { %v3399_v30 = vmul.f32 0.01, %v3397_v43 }
 0x793   :  { %v3401_v24 = vmax.f32 %v3397_v43, %v3399_v30 }
 0x795   :  { %v3402_v23 = vadd.f32 %v3401_v24, %v3400_v29  ;;  %v3410_v25 = vmul.f32 %v3401_v24, %v3401_v24 }
 0x797   :  { %v3403_v39 = vrot.slane %v3402_v23, 4  ;;  %v3411_v16 = vadd.f32 %v3410_v25, %v3409_v38 }
 0x799   :  { %v3404_v42 = vadd.f32 %v3403_v39, %v3402_v23  ;;  %v3412_v48 = vrot.slane %v3411_v16, 4 }
 0x79b   :  { %v3405_v40 = vrot.slane %v3404_v42, 2  ;;  %v3413_v5 = vadd.f32 %v3412_v48, %v3411_v16  ;;  %v5285_v48 = vld [vmem:[#allocation19 + $0x18] sm:$0xff] }
 0x79c   :  { %3697 = vmatpush.bf16.msrb.mxu0 %v5285_v48 }
 0x79d   :  { %v3406_v34 = vadd.f32 %v3405_v40, %v3404_v42  ;;  %v3414_v26 = vrot.slane %v3413_v5, 2 }
 0x79f   :  { %v3407_v46 = vrot.slane %v3406_v34, 1  ;;  %v3415_v7 = vadd.f32 %v3414_v26, %v3413_v5  ;;  %v5284_v26 = vld [vmem:[#allocation19 + $0x10] sm:$0xff] }
 0x7a0   :  { %3698 = vmatpush.bf16.msrb.mxu0 %v5284_v26 }
 0x7a1   :  { %v3408_v36 = vadd.f32 %v3407_v46, %v3406_v34  ;;  %v3416_v50 = vrot.slane %v3415_v7, 1 }
 0x7a3   :  { %v3417_v19 = vadd.f32 %v3416_v50, %v3415_v7  ;;  %v3418_v51 = vmul.f32 0.0625, %v3408_v36  ;;  %v5283_v50 = vld [vmem:[#allocation19 + $0x8] sm:$0xff] }
 0x7a4   :  { %3699 = vmatpush.bf16.msrb.mxu0 %v5283_v50 }
 0x7a5   :  { %v3419_v59 = vmul.f32 0.0625, %v3417_v19  ;;  %v3420_v10 = vmul.f32 %v3418_v51, %v3418_v51 }
 0x7a7   :  { %v3421_v18 = vsub.f32 %v3419_v59, %v3420_v10 }
 0x7a9   :  { %v3422_v53 = vmax.f32 %v3421_v18, 0.0 }
 0x7ab   :  { %v3423_v55 = vadd.f32 1e-05, %v3422_v53 }
 0x7ad   :  { %5346 = vrsqrt.f32 %v3423_v55  ;;  %vm3430_vm1 = vweird.f32 %v3423_v55 }
 0x7b3   :  { %v5347_v56 = vpop.eup %5346 }
 0x7b4   :  { %v3425_v57 = vmul.f32 %v5347_v56, %v3423_v55  ;;  %vm3431_vm15 = vweird.f32 %v5347_v56 }
 0x7b5   :  { %vm3432_vm2 = vmor %vm3430_vm1, %vm3431_vm15 }
 0x7b6   :  { %v3426_v60 = vmul.f32 %v5347_v56, %v3425_v57 }
 0x7b8   :  { %v3427_v61 = vmul.f32 0.5, %v3426_v60 }
 0x7ba   :  { %v3428_v28 = vsub.f32 1.5, %v3427_v61 }
 0x7bc   :  { %v3429_v62 = vmul.f32 %v5347_v56, %v3428_v28 }
 0x7be   :  { %v3433_v22 = vsel %vm3432_vm2, %v5347_v56, %v3429_v62 }
 0x7bf   :  { %v3434_v35 = vmul.f32 %v3433_v22, %v7279_v11 }
 0x7c1   :  { %v3435_v20 = vmul.f32 %v3434_v35, %v3418_v51  ;;  %v3440_v63 = vperm.slane %v3434_v35, 1  ;;  %v5282_v51 = vld [vmem:[#allocation19] sm:$0xff] }
 0x7c2   :  { %3700 = vmatpush.bf16.msrb.mxu0 %v5282_v51 }
 0x7c3   :  { %v3437_v0 = vrot.slane %v3435_v20, 7  ;;  %v3442_v2 = vmul.f32 %v3440_v63, %v3401_v24  ;;  %v3441_v6 = vmul.f32 %v3440_v63, %v3400_v29 }
 0x7c5   :  { %v3439_v58 = vsub.f32 %v7279_v11, %v3437_v0 }
 0x7c7   :  { %v3443_v9 = vperm.slane %v3439_v58, 2 }
 0x7c9   :  { %v3444_v12 = vadd.f32 %v3443_v9, %v3441_v6  ;;  %v3445_v49 = vadd.f32 %v3443_v9, %v3442_v2  ;;  %v7313_v2 = vld [vmem:[#allocation21] sm:$0x7]  ;;  %v3661_v6 = vpop.f32.mrf.mxu3 }
 0x7ca   :  { %v3708_v9 = vperm.slane %v7313_v2, 0 }
 0x7cb   :  { %v3446_v3 = vpack.c.bf16 %v3445_v49, %v3444_v12 }
 0x7cd   :  { %3521 = vmatmul.bf16.vlgmr.msra.gmra.mxu2 %v3446_v3 }
 0x850   :  { %v3522_v47 = vpop.f32.mrf.mxu2 }
 0x851   :  { %v3523_v13 = vadd.f32 %v3522_v47, %v3464_v37  ;;  %v3663_v47 = vpop.f32.mrf.mxu3 }
 0x853   :  { %v3527_v15 = vmul.f32 0.01, %v3523_v13 }
 0x855   :  { %v3529_v14 = vmax.f32 %v3523_v13, %v3527_v15 }
 0x857   :  { %v3540_v17 = vmul.f32 %v3529_v14, %v3529_v14  ;;  %v3531_v11 = vsel %vm388_vm0, %v3529_v14, 0.0 }
 0x858   :  { %v3524_v1 = vpop.f32.mrf.mxu2 }
 0x859   :  { %v3525_v8 = vadd.f32 %v3524_v1, %v3464_v37  ;;  %v3542_v30 = vsel %vm388_vm0, %v3540_v17, 0.0 }
 0x85b   :  { %v3528_v4 = vmul.f32 0.01, %v3525_v8 }
 0x85d   :  { %v3530_v54 = vmax.f32 %v3525_v8, %v3528_v4 }
 0x85f   :  { %v3532_v27 = vsel %vm388_vm0, %v3530_v54, 0.0  ;;  %v3541_v43 = vmul.f32 %v3530_v54, %v3530_v54 }
 0x860   :  { %v3533_v29 = vadd.f32 %v3532_v27, %v3531_v11 }
 0x861   :  { %v3543_v32 = vsel %vm388_vm0, %v3541_v43, 0.0 }
 0x862   :  { %v3534_v24 = vrot.slane %v3533_v29, 4  ;;  %v3544_v38 = vadd.f32 %v3543_v32, %v3542_v30 }
 0x864   :  { %v3535_v23 = vadd.f32 %v3534_v24, %v3533_v29  ;;  %v3545_v25 = vrot.slane %v3544_v38, 4 }
 0x866   :  { %v3536_v31 = vrot.slane %v3535_v23, 2  ;;  %v3546_v39 = vadd.f32 %v3545_v25, %v3544_v38 }
 0x868   :  { %v3537_v16 = vadd.f32 %v3536_v31, %v3535_v23  ;;  %v3547_v42 = vrot.slane %v3546_v39, 2 }
 0x86a   :  { %v3538_v44 = vrot.slane %v3537_v16, 1  ;;  %v3548_v40 = vadd.f32 %v3547_v42, %v3546_v39 }
 0x86c   :  { %v3539_v5 = vadd.f32 %v3538_v44, %v3537_v16  ;;  %v3549_v34 = vrot.slane %v3548_v40, 1  ;;  %v5297_v16 = vld [vmem:[#allocation22 + $0x18] sm:$0xff] }
 0x86d   :  { %3807 = vmatpush.bf16.msra.mxu0 %v5297_v16 }
 0x86e   :  { %v3550_v45 = vadd.f32 %v3549_v34, %v3548_v40  ;;  %v3551_v46 = vmul.f32 0.0625, %v3539_v5  ;;  %v5296_v5 = vld [vmem:[#allocation22 + $0x10] sm:$0xff] }
 0x870   :  { %v3552_v7 = vmul.f32 0.0625, %v3550_v45  ;;  %v3553_v36 = vmul.f32 %v3551_v46, %v3551_v46 }
 0x871   :  { %3808 = vmatpush.bf16.msra.mxu0 %v5296_v5 }
 0x872   :  { %v3554_v21 = vsub.f32 %v3552_v7, %v3553_v36  ;;  %v5295_v7 = vld [vmem:[#allocation22 + $0x8] sm:$0xff] }
 0x874   :  { %v3555_v19 = vmax.f32 %v3554_v21, 0.0  ;;  %v5294_v21 = vld [vmem:[#allocation22] sm:$0xff] }
 0x875   :  { %3809 = vmatpush.bf16.msra.mxu0 %v5295_v7 }
 0x876   :  { %v3556_v52 = vadd.f32 1e-05, %v3555_v19 }
 0x878   :  { %5348 = vrsqrt.f32 %v3556_v52  ;;  %vm3563_vm4 = vweird.f32 %v3556_v52 }
 0x879   :  { %3810 = vmatpush.bf16.msra.mxu0 %v5294_v21 }
 0x87e   :  { %v5349_v59 = vpop.eup %5348 }
 0x87f   :  { %v3558_v10 = vmul.f32 %v5349_v59, %v3556_v52  ;;  %vm3564_vm3 = vweird.f32 %v5349_v59 }
 0x880   :  { %vm3565_vm5 = vmor %vm3563_vm4, %vm3564_vm3 }
 0x881   :  { %v3559_v18 = vmul.f32 %v5349_v59, %v3558_v10 }
 0x883   :  { %v3560_v41 = vmul.f32 0.5, %v3559_v18 }
 0x885   :  { %v3561_v53 = vsub.f32 1.5, %v3560_v41 }
 0x887   :  { %v3562_v55 = vmul.f32 %v5349_v59, %v3561_v53 }
 0x889   :  { %v3566_v56 = vsel %vm3565_vm5, %v5349_v59, %v3562_v55 }
 0x88a   :  { %v3567_v57 = vmul.f32 %v3566_v56, %v3463_v33 }
 0x88c   :  { %v3568_v60 = vmul.f32 %v3567_v57, %v3551_v46  ;;  %v3573_v28 = vperm.slane %v3567_v57, 1 }
 0x88e   :  { %v3570_v61 = vrot.slane %v3568_v60, 7  ;;  %v3574_v22 = vmul.f32 %v3573_v28, %v3529_v14  ;;  %v3575_v35 = vmul.f32 %v3573_v28, %v3530_v54 }
 0x890   :  { %v3572_v62 = vsub.f32 %v3463_v33, %v3570_v61 }
 0x892   :  { %v3576_v20 = vperm.slane %v3572_v62, 2 }
 0x894   :  { %v3577_v63 = vadd.f32 %v3576_v20, %v3574_v22  ;;  %v3578_v0 = vadd.f32 %v3576_v20, %v3575_v35 }
 0x896   :  { %v3579_v58 = vpack.c.bf16 %v3578_v0, %v3577_v63  ;;  %v5317_v0 = vld [vmem:[#allocation24] ss:$0 sm:$0xff] }
 0x898   :  { %4988 = vmatmul.msk.bf16.vlgmr.msrb.gmra.mxu0 %vm388_vm0, %v3579_v58 }
 0x915   :  { %v3702_v12 = vpop.f32.mrf.mxu0 }
 0x916   :  { %v3703_v49 = vadd.f32 %v3702_v12, %v3661_v6 }
 0x918   :  { %v3709_v3 = vadd.f32 %v3708_v9, %v3703_v49 }
 0x91a   :  { %v3711_v37 = vmul.f32 0.01, %v3709_v3 }
 0x91c   :  { %v3713_v15 = vmax.f32 %v3709_v3, %v3711_v37 }
 0x91d   :  { %v3704_v13 = vpop.f32.mrf.mxu0 }
 0x91e   :  { %v3705_v33 = vadd.f32 %v3704_v13, %v3663_v47  ;;  %v3724_v8 = vmul.f32 %v3713_v15, %v3713_v15  ;;  %v3715_v17 = vsel %vm388_vm0, %v3713_v15, 0.0 }
 0x920   :  { %v3710_v1 = vadd.f32 %v3708_v9, %v3705_v33  ;;  %v3726_v43 = vsel %vm388_vm0, %v3724_v8, 0.0 }
 0x922   :  { %v3712_v14 = vmul.f32 0.01, %v3710_v1 }
 0x924   :  { %v3714_v4 = vmax.f32 %v3710_v1, %v3712_v14 }
 0x926   :  { %v3716_v54 = vsel %vm388_vm0, %v3714_v4, 0.0  ;;  %v3725_v11 = vmul.f32 %v3714_v4, %v3714_v4 }
 0x927   :  { %v3717_v27 = vadd.f32 %v3716_v54, %v3715_v17 }
 0x928   :  { %v3727_v29 = vsel %vm388_vm0, %v3725_v11, 0.0 }
 0x929   :  { %v3718_v30 = vrot.slane %v3717_v27, 4  ;;  %v3728_v32 = vadd.f32 %v3727_v29, %v3726_v43 }
 0x92b   :  { %v3719_v24 = vadd.f32 %v3718_v30, %v3717_v27  ;;  %v3729_v38 = vrot.slane %v3728_v32, 4 }
 0x92d   :  { %v3720_v23 = vrot.slane %v3719_v24, 2  ;;  %v3730_v25 = vadd.f32 %v3729_v38, %v3728_v32 }
 0x92f   :  { %v3721_v31 = vadd.f32 %v3720_v23, %v3719_v24  ;;  %v3731_v39 = vrot.slane %v3730_v25, 2 }
 0x931   :  { %v3722_v42 = vrot.slane %v3721_v31, 1  ;;  %v3732_v48 = vadd.f32 %v3731_v39, %v3730_v25 }
 0x933   :  { %v3723_v44 = vadd.f32 %v3722_v42, %v3721_v31  ;;  %v3733_v40 = vrot.slane %v3732_v48, 1 }
 0x935   :  { %v3734_v34 = vadd.f32 %v3733_v40, %v3732_v48  ;;  %v3735_v26 = vmul.f32 0.0625, %v3723_v44 }
 0x937   :  { %v3736_v45 = vmul.f32 0.0625, %v3734_v34  ;;  %v3737_v46 = vmul.f32 %v3735_v26, %v3735_v26 }
 0x939   :  { %v3738_v36 = vsub.f32 %v3736_v45, %v3737_v46 }
 0x93b   :  { %v3739_v50 = vmax.f32 %v3738_v36, 0.0 }
 0x93d   :  { %v3740_v19 = vadd.f32 1e-05, %v3739_v50 }
 0x93f   :  { %5350 = vrsqrt.f32 %v3740_v19  ;;  %vm3747_vm7 = vweird.f32 %v3740_v19 }
 0x945   :  { %v5351_v51 = vpop.eup %5350 }
 0x946   :  { %v3742_v52 = vmul.f32 %v5351_v51, %v3740_v19  ;;  %vm3748_vm6 = vweird.f32 %v5351_v51 }
 0x947   :  { %vm3749_vm8 = vmor %vm3747_vm7, %vm3748_vm6 }
 0x948   :  { %v3743_v59 = vmul.f32 %v5351_v51, %v3742_v52 }
 0x94a   :  { %v3744_v10 = vmul.f32 0.5, %v3743_v59 }
 0x94c   :  { %v3745_v18 = vsub.f32 1.5, %v3744_v10 }
 0x94e   :  { %v3746_v41 = vmul.f32 %v5351_v51, %v3745_v18 }
 0x950   :  { %v3750_v53 = vsel %vm3749_vm8, %v5351_v51, %v3746_v41 }
 0x951   :  { %v3751_v55 = vmul.f32 %v3750_v53, %v7313_v2 }
 0x953   :  { %v3752_v56 = vmul.f32 %v3751_v55, %v3735_v26  ;;  %v3757_v60 = vperm.slane %v3751_v55, 1 }
 0x955   :  { %v3754_v57 = vrot.slane %v3752_v56, 7  ;;  %v3758_v28 = vmul.f32 %v3757_v60, %v3713_v15  ;;  %v3759_v62 = vmul.f32 %v3757_v60, %v3714_v4 }
 0x957   :  { %v3756_v61 = vsub.f32 %v7313_v2, %v3754_v57 }
 0x959   :  { %v3760_v22 = vperm.slane %v3756_v61, 2 }
 0x95b   :  { %v3762_v35 = vadd.f32 %v3760_v22, %v3759_v62  ;;  %v3761_v20 = vadd.f32 %v3760_v22, %v3758_v28 }
 0x95d   :  { %v3763_v63 = vpack.c.bf16 %v3762_v35, %v3761_v20 }
 0x95f   :  { %5005 = vmatmul.msk.bf16.vlgmr.msra.gmra.mxu0 %vm388_vm0, %v3763_v63 }
 0x9dc   :  { %v3812_v58 = vpop.f32.mrf.mxu0 }
 0x9dd   :  { %v3813_v6 = vadd.f32 %v5317_v0, %v3812_v58 }
 0x9df   :  { %5352 = vtanh.f32 %v3813_v6 }
 0x9e4   :  { %v3814_v9 = vpop.f32.mrf.mxu0 }
 0x9e5   :  { %v5353_v12 = vpop.eup %5352  ;;  %v3815_v49 = vadd.f32 %v5317_v0, %v3814_v9 }
 0x9e6   :  { %3819 = vst [vmem:[%s7395_s8] sm:$0xff] %v5353_v12 }
 0x9e7   :  { %5354 = vtanh.f32 %v3815_v49 }
 0x9ed   :  { %v5355_v2 = vpop.eup %5354 }
 0x9ee   :  { %3820 = vst [vmem:[%s7395_s8 + $0x8] sm:$0xff] %v5355_v2 }
 0x9ef   :  { %3825 = vsyncpa [#allocation3], 1 }
 0x9f0   :  { %3826 = vsyncpa [#allocation5], 1 }
 0x9f1   :  { %3827 = vsyncpa [#allocation8], 1 }
 0x9f2   :  { %3828 = vsyncpa [#allocation11], 1 }
 0x9f3   :  { %3829 = vsyncpa [#allocation14], 1 }
 0x9f4   :  { %3830 = vsyncpa [#allocation17], 1 }
 0x9f5   :  { %3831 = vsyncpa [#allocation20], 1 }
 0x9f6   :  { %3832 = vsyncpa [#allocation23], 1 }

</bundles_post_ra>
